<compile_context>
chip_gen: v6e
topology: v6e:2x2x1
jax: 0.10.0
libtpu: 0.0.40
codegen_flags: <defaults>
</compile_context>

<pallas_src>
import jax
import jax.numpy as jnp
from jax import lax
from jax.experimental import pallas as pl
from jax.experimental.pallas import tpu as pltpu

LANE = 128
_BN_EPS = 1e-5


def _ceil_to(x, m):
    return ((x + m - 1) // m) * m


def _pick_tile(n, target):
    """Largest divisor of n that is <= target (>= 1)."""
    t = max(1, min(n, target))
    while n % t:
        t -= 1
    return t


# ---------------------------------------------------------------------------
# Kernel 1: ConvTranspose2d(k=2, s=2) fused with torch.cat([up, skip], dim=1).
# Output layout (N, H, 2, W, 2*Cc) is row-major identical to (N, 2H, 2W, Cc).
# Skip channels are placed at concat columns (Cout + s) via a 0/1 matmul
# (Cout is not 128-aligned here, so a direct store would be a masked vst).
# ---------------------------------------------------------------------------
def _upconv_cat_kernel(x_ref, skip_ref, w_ref, b_ref, sel_ref, o_ref):
    _, ti, w, cinp = x_ref.shape
    two_cc = o_ref.shape[-1]
    two_csp = sel_ref.shape[0]
    xm = x_ref[0].reshape(ti * w, cinp)                       # (rows, Cinp) bf16
    for di in range(2):                                       # two output sub-rows
        y = jnp.dot(xm, w_ref[di], preferred_element_type=jnp.float32)
        y = y + b_ref[...]                                    # upconv bias (f32)
        sk = skip_ref[0, :, di].reshape(ti * w, two_csp)
        y = y + jnp.dot(sk, sel_ref[...], preferred_element_type=jnp.float32)
        o_ref[0, :, di] = y.reshape(ti, w, two_cc).astype(o_ref.dtype)


def upconv_cat(x, skip_v, w_up, b_up, sel):
    n, h, w, cinp = x.shape
    two_csp = skip_v.shape[-1]
    two_cc = w_up.shape[-1]
    ti = _pick_tile(h, max(1, 512 // max(w, 1)))              # ~512 rows / step
    return pl.pallas_call(
        _upconv_cat_kernel,
        out_shape=jax.ShapeDtypeStruct((n, h, 2, w, two_cc), jnp.bfloat16),
        grid=(n, h // ti),
        in_specs=[
            pl.BlockSpec((1, ti, w, cinp), lambda b, i: (b, i, 0, 0)),
            pl.BlockSpec((1, ti, 2, w, two_csp), lambda b, i: (b, i, 0, 0, 0)),
            pl.BlockSpec((2, cinp, two_cc), lambda b, i: (0, 0, 0)),
            pl.BlockSpec((1, two_cc), lambda b, i: (0, 0)),
            pl.BlockSpec((two_csp, two_cc), lambda b, i: (0, 0)),
        ],
        out_specs=pl.BlockSpec((1, ti, 2, w, two_cc),
                               lambda b, i: (b, i, 0, 0, 0)),
        compiler_params=pltpu.CompilerParams(
            dimension_semantics=("parallel", "parallel")),
    )(x, skip_v, w_up, b_up, sel)


# ---------------------------------------------------------------------------
# Kernel 2: 3x3 conv (pad=1) over a flattened spatially-padded image.
# Input stays in HBM; a manual double-buffered DMA streams (tr+3) padded rows
# per grid step.  The 9 taps are contiguous row windows of the flat buffer, so
# the only layout work is one valid-column slice on store.  BN partial sums
# are accumulated in a per-image resident output block.
# ---------------------------------------------------------------------------
def conv3x3_stats(xflat, w9, n, hh, wh, wp):
    """xflat: (n, (hh+3)*wp, ci) bf16 zero-padded; w9: (9, ci, co) bf16."""
    ci = xflat.shape[-1]
    co = w9.shape[-1]
    tr = _pick_tile(hh, max(8, 256 // wp))     # rows of output per step
    r_steps = hh // tr
    row_stride = tr * wp                       # flat elements per output row block
    blen = (tr + 3) * wp                       # halo rows (+1 slack row for taps)
    m_rows = tr * wp                           # M of each MXU dot

    def kernel(x_hbm, w_ref, y_ref, s_ref, buf, sem, acc_ref):
        b = pl.program_id(0)
        r = pl.program_id(1)
        nr = pl.num_programs(1)
        slot = r % 2

        def _start(rr, sl):
            pltpu.make_async_copy(
                x_hbm.at[b, pl.ds(rr * row_stride, blen)],
                buf.at[sl], sem.at[sl]).start()

        @pl.when(r == 0)                       # prime (per image -> megacore safe)
        def _():
            _start(0, 0)

        @pl.when(r + 1 < nr)                   # prefetch next row block
        def _():
            _start(r + 1, 1 - slot)

        pltpu.make_async_copy(                 # wait for the current block
            x_hbm.at[b, pl.ds(r * row_stride, blen)],
            buf.at[slot], sem.at[slot]).wait()

        bslot = buf.at[slot]
        for idx in range(9):                   # 9 accumulating MXU dots
            ki, kj = idx // 3, idx % 3
            tap = bslot[pl.ds(ki * wp + kj, m_rows), :]        # contiguous window
            part = jnp.dot(tap, w_ref[idx], preferred_element_type=jnp.float32)
            if idx == 0:
                acc_ref[...] = part
            else:
                acc_ref[...] += part

        valid = acc_ref[...].reshape(tr, wp, co)[:, :wh, :]    # drop junk cols
        y_ref[0] = valid.astype(y_ref.dtype)                   # bf16 out

        @pl.when(r == 0)
        def _():
            s_ref[...] = jnp.zeros_like(s_ref)
        s_ref[0, 0:1, :] += jnp.sum(valid, axis=(0, 1))[None, :]
        s_ref[0, 1:2, :] += jnp.sum(valid * valid, axis=(0, 1))[None, :]

    return pl.pallas_call(
        kernel,
        out_shape=(jax.ShapeDtypeStruct((n, hh, wh, co), jnp.bfloat16),
                   jax.ShapeDtypeStruct((n, 8, co), jnp.float32)),
        grid=(n, r_steps),
        in_specs=[
            pl.BlockSpec(memory_space=pl.ANY),                 # raw HBM, manual DMA
            pl.BlockSpec((9, ci, co), lambda b, r: (0, 0, 0)),
        ],
        out_specs=(
            pl.BlockSpec((1, tr, wh, co), lambda b, r: (b, r, 0, 0)),
            pl.BlockSpec((1, 8, co), lambda b, r: (b, 0, 0)),  # resident per image
        ),
        scratch_shapes=[
            pltpu.VMEM((2, blen, ci), jnp.bfloat16),           # halo double buffer
            pltpu.SemaphoreType.DMA((2,)),
            pltpu.VMEM((m_rows, co), jnp.float32),             # f32 accumulator
        ],
        compiler_params=pltpu.CompilerParams(
            dimension_semantics=("parallel", "arbitrary")),
    )(xflat, w9)


# ---------------------------------------------------------------------------
# Kernel 3: normalize + ReLU with precomputed per-channel scale/shift.
# ---------------------------------------------------------------------------
def _bn_relu_kernel(y_ref, sc_ref, sh_ref, o_ref):
    y = y_ref[...].astype(jnp.float32)
    o_ref[...] = jnp.maximum(y * sc_ref[...] + sh_ref[...], 0.0).astype(o_ref.dtype)


def bn_relu(y, scale, shift, out_dtype):
    n, hh, wh, c = y.shape
    tq = _pick_tile(hh, max(1, 1024 // max(wh, 1)))            # ~1024 rows / step
    return pl.pallas_call(
        _bn_relu_kernel,
        out_shape=jax.ShapeDtypeStruct((n, hh, wh, c), out_dtype),
        grid=(n, hh // tq),
        in_specs=[
            pl.BlockSpec((1, tq, wh, c), lambda b, q: (b, q, 0, 0)),
            pl.BlockSpec((1, 1, 1, c), lambda b, q: (0, 0, 0, 0)),
            pl.BlockSpec((1, 1, 1, c), lambda b, q: (0, 0, 0, 0)),
        ],
        out_specs=pl.BlockSpec((1, tq, wh, c), lambda b, q: (b, q, 0, 0)),
        compiler_params=pltpu.CompilerParams(
            dimension_semantics=("parallel", "parallel")),
    )(y, scale, shift)


# ------------------------------- glue (JAX) --------------------------------
def _bn_scale_shift(stats, gamma, beta, count):
    s = jnp.sum(stats, axis=0)                              # (8, C) tiny reduction
    mean = s[0] / count
    var = jnp.maximum(s[1] / count - mean * mean, 0.0)      # biased batch variance
    scale = gamma * lax.rsqrt(var + _BN_EPS)
    shift = beta - mean * scale
    c = scale.shape[0]
    return scale.reshape(1, 1, 1, c), shift.reshape(1, 1, 1, c)


def _pad_hw_flat(x):
    # Spatial pad for the 3x3 conv: 1 top row, 2 bottom rows (extra row gives
    # the flat taps slack), 1 left col + right cols to a multiple of 8, then a
    # free row-major flatten of (rows, cols).
    # TODO(synk): fold this zero-pad pass into the producing kernels' outputs.
    n, hh, wh, c = x.shape
    wp = _ceil_to(wh + 2, 8)
    xp = jnp.pad(x, ((0, 0), (1, 2), (1, wp - wh - 1), (0, 0)))
    return xp.reshape(n, (hh + 3) * wp, c), wp


def init_params(key, in_channels, out_channels):
    ks = jax.random.split(key, 8)
    p = {}
    # nn.ConvTranspose2d weight: (in_channels, out_channels, 2, 2)
    p["up_w"] = 0.1 * jax.random.normal(ks[0], (in_channels, out_channels, 2, 2), jnp.float32)
    p["up_b"] = 0.1 * jax.random.normal(ks[1], (out_channels,), jnp.float32)
    # conv1: Conv2d(in_channels, out_channels, 3, pad=1)
    p["c1_w"] = 0.1 * jax.random.normal(ks[2], (out_channels, in_channels, 3, 3), jnp.float32)
    p["c1_b"] = 0.1 * jax.random.normal(ks[3], (out_channels,), jnp.float32)
    p["bn1_g"] = 1.0 + 0.1 * jax.random.normal(ks[4], (out_channels,), jnp.float32)
    p["bn1_b"] = 0.1 * jax.random.normal(ks[5], (out_channels,), jnp.float32)
    # conv2: Conv2d(out_channels, out_channels, 3, pad=1)
    p["c2_w"] = 0.1 * jax.random.normal(ks[6], (out_channels, out_channels, 3, 3), jnp.float32)
    p["c2_b"] = 0.1 * jax.random.normal(ks[7], (out_channels,), jnp.float32)
    p["bn2_g"] = jnp.ones((out_channels,), jnp.float32)
    p["bn2_b"] = jnp.zeros((out_channels,), jnp.float32)
    return p


def upconv_block_forward(params, x_nchw, skip_nchw):
    n, cin, h, w = x_nchw.shape
    cout = params["up_b"].shape[0]
    cs = skip_nchw.shape[1]
    hh, wh = 2 * h, 2 * w
    ccat = cout + cs                       # channels after torch.cat([up, skip], 1)
    cc = _ceil_to(ccat, LANE)              # lane-dense (padded) concat channels
    co = _ceil_to(cout, LANE)              # lane-dense (padded) output channels
    cinp = _ceil_to(cin, LANE)             # lane-dense K for the upconv matmul
    csp = _ceil_to(cs, 64)                 # skip channels per dj (2*csp lane-dense)
    f32, bf16 = jnp.float32, jnp.bfloat16

    x = jnp.transpose(x_nchw, (0, 2, 3, 1))
    x = jnp.pad(x, ((0, 0), (0, 0), (0, 0), (0, cinp - cin))).astype(bf16)
    skip_v = jnp.transpose(skip_nchw, (0, 2, 3, 1))
    skip_v = jnp.pad(skip_v, ((0, 0), (0, 0), (0, 0), (0, csp - cs))).astype(bf16)
    skip_v = skip_v.reshape(n, h, 2, w, 2 * csp)   # free view: [n,i,di,j,(dj,s)]

    # ConvTranspose2d weights laid out so the kernel's matmul emits the final
    # interleaved layout directly: w_up[di, c, dj*Cc + o] = W[c, o, di, dj].
    w_src = jnp.transpose(params["up_w"], (2, 0, 3, 1))                 # [di,c,dj,o]
    w_up = jnp.zeros((2, cinp, 2, cc), f32).at[:, :cin, :, :cout].set(w_src)
    w_up = w_up.reshape(2, cinp, 2 * cc).astype(bf16)
    b_up = jnp.zeros((2, cc), f32).at[:, :cout].set(
        jnp.broadcast_to(params["up_b"], (2, cout))).reshape(1, 2 * cc)
    # 0/1 matrix placing skip channel s at concat channel (Cout + s), per dj.
    sel = jnp.zeros((2 * csp, 2 * cc), f32)
    eye = jnp.eye(cs, dtype=f32)
    sel = sel.at[:cs, cout:cout + cs].set(eye)
    sel = sel.at[csp:csp + cs, cc + cout:cc + cout + cs].set(eye).astype(bf16)

    cat = upconv_cat(x, skip_v, w_up, b_up, sel)        # (N,H,2,W,2*Cc) bf16
    cat = cat.reshape(n, hh, wh, cc)                    # row-major: free reshape

    # conv1 + BN1 + ReLU  (conv bias dropped: cancelled by batch-mean subtraction)
    w1 = jnp.transpose(params["c1_w"], (2, 3, 1, 0))    # (3,3,Ccat,Cout)
    w1p = jnp.zeros((3, 3, cc, co), f32).at[:, :, :ccat, :cout].set(w1)
    w1p = w1p.reshape(9, cc, co).astype(bf16)
    cat_p, wp1 = _pad_hw_flat(cat)
    y1, s1 = conv3x3_stats(cat_p, w1p, n, hh, wh, wp1)
    g1 = jnp.zeros((co,), f32).at[:cout].set(params["bn1_g"])
    be1 = jnp.zeros((co,), f32).at[:cout].set(params["bn1_b"])
    sc1, sh1 = _bn_scale_shift(s1, g1, be1, n * hh * wh)
    a1 = bn_relu(y1, sc1, sh1, bf16)                    # (N,2H,2W,Co) bf16

    # conv2 + BN2 + ReLU
    w2 = jnp.transpose(params["c2_w"], (2, 3, 1, 0))    # (3,3,Cout,Cout)
    w2p = jnp.zeros((3, 3, co, co), f32).at[:, :, :cout, :cout].set(w2)
    w2p = w2p.reshape(9, co, co).astype(bf16)
    a1_p, wp2 = _pad_hw_flat(a1)
    y2, s2 = conv3x3_stats(a1_p, w2p, n, hh, wh, wp2)
    g2 = jnp.zeros((co,), f32).at[:cout].set(params["bn2_g"])
    be2 = jnp.zeros((co,), f32).at[:cout].set(params["bn2_b"])
    sc2, sh2 = _bn_scale_shift(s2, g2, be2, n * hh * wh)
    out = bn_relu(y2, sc2, sh2, f32)
    out = out[..., :cout]                               # drop lane padding

    return jnp.transpose(out, (0, 3, 1, 2))             # back to NCHW


# --------------------------- pure-JAX reference -----------------------------
def ref_forward(params, x_nchw, skip_nchw):
    x = jnp.transpose(x_nchw, (0, 2, 3, 1))
    skip = jnp.transpose(skip_nchw, (0, 2, 3, 1))
    N, H, W, Cin = x.shape
    Cout = params["up_b"].shape[0]

    up = jnp.einsum("nijc,codx->nidjxo", x, params["up_w"],
                    precision=lax.Precision.HIGHEST)
    up = up.reshape(N, 2 * H, 2 * W, Cout) + params["up_b"]
    cat = jnp.concatenate([up, skip], axis=-1)

    def conv_bn_relu(inp, w, b, g, beta):
        w_hwio = jnp.transpose(w, (2, 3, 1, 0))
        y = lax.conv_general_dilated(
            inp, w_hwio, (1, 1), "SAME",
            dimension_numbers=("NHWC", "HWIO", "NHWC"),
            precision=lax.Precision.HIGHEST) + b
        m = jnp.mean(y, axis=(0, 1, 2), keepdims=True)
        v = jnp.mean((y - m) ** 2, axis=(0, 1, 2), keepdims=True)
        return jnp.maximum((y - m) * lax.rsqrt(v + _BN_EPS) * g + beta, 0.0)

    y = conv_bn_relu(cat, params["c1_w"], params["c1_b"], params["bn1_g"], params["bn1_b"])
    z = conv_bn_relu(y, params["c2_w"], params["c2_b"], params["bn2_g"], params["bn2_b"])
    return jnp.transpose(z, (0, 3, 1, 2))


# --------------------------------- main -------------------------------------
if __name__ == "__main__":
    key = jax.random.PRNGKey(0)
    k_p, k_x, k_s = jax.random.split(key, 3)

    N, Cin, Cout, H, W = 2, 8, 4, 8, 8      # UpConvBlock(in_channels=8, out_channels=4)
    params = init_params(k_p, Cin, Cout)
    x = jax.random.normal(k_x, (N, Cin, H, W), jnp.float32)                    # decoder feature
    skip = jax.random.normal(k_s, (N, Cin - Cout, 2 * H, 2 * W), jnp.float32)  # encoder skip

    out = jax.jit(upconv_block_forward)(params, x, skip)
    out = jax.block_until_ready(out)

    ref = ref_forward(params, x, skip)
    assert out.shape == (N, Cout, 2 * H, 2 * W), out.shape
    max_err = float(jnp.max(jnp.abs(out - ref)))
    assert jnp.allclose(out, ref, atol=3e-2, rtol=3e-2), max_err

    print("KERNEL_OK")
</pallas_src>

<mosaic_0001>
module attributes {stable_mosaic.version = 11 : i64} {
  func.func @_upconv_cat_kernel(%arg0: i32, %arg1: i32, %arg2: memref<1x8x8x128xbf16, #tpu.memory_space<vmem>>, %arg3: memref<1x8x2x8x128xbf16, #tpu.memory_space<vmem>>, %arg4: memref<2x128x256xbf16, #tpu.memory_space<vmem>>, %arg5: memref<1x256xf32, #tpu.memory_space<vmem>>, %arg6: memref<128x256xbf16, #tpu.memory_space<vmem>>, %arg7: memref<1x8x2x8x256xbf16, #tpu.memory_space<vmem>>) attributes {dimension_semantics = [#tpu.dimension_semantics<parallel>, #tpu.dimension_semantics<parallel>], iteration_bounds = array<i64: 2, 1>, scalar_prefetch = 0 : i64, scratch_operands = 0 : i64, tpu.core_type = #tpu.core_type<tc>, window_params = [{transform_indices = @transform_0, window_bounds = array<i64: 1, 8, 8, 128>}, {transform_indices = @transform_1, window_bounds = array<i64: 1, 8, 2, 8, 128>}, {pipeline_mode = #tpu.pipeline_mode<synchronous>, transform_indices = @transform_2, window_bounds = array<i64: 2, 128, 256>}, {pipeline_mode = #tpu.pipeline_mode<synchronous>, transform_indices = @transform_3, window_bounds = array<i64: 1, 256>}, {pipeline_mode = #tpu.pipeline_mode<synchronous>, transform_indices = @transform_4, window_bounds = array<i64: 128, 256>}, {transform_indices = @transform_5, window_bounds = array<i64: 1, 8, 2, 8, 256>}]} {
    %c0 = arith.constant 0 : index
    %c0_0 = arith.constant 0 : index
    %c0_1 = arith.constant 0 : index
    %c0_2 = arith.constant 0 : index
    %0 = vector.load %arg2[%c0, %c0_0, %c0_1, %c0_2] : memref<1x8x8x128xbf16, #tpu.memory_space<vmem>>, vector<1x8x8x128xbf16>
    %1 = vector.shape_cast %0 : vector<1x8x8x128xbf16> to vector<8x8x128xbf16>
    %2 = vector.shape_cast %1 : vector<8x8x128xbf16> to vector<64x128xbf16>
    %c0_3 = arith.constant 0 : index
    %c0_4 = arith.constant 0 : index
    %c0_5 = arith.constant 0 : index
    %3 = vector.load %arg4[%c0_3, %c0_4, %c0_5] : memref<2x128x256xbf16, #tpu.memory_space<vmem>>, vector<1x128x256xbf16>
    %4 = vector.shape_cast %3 : vector<1x128x256xbf16> to vector<128x256xbf16>
    %cst = arith.constant dense<0.000000e+00> : vector<64x256xf32>
    %5 = tpu.matmul %2, %4, %cst {dimension_numbers = #tpu.dot_dimension_numbers<[1], [0], [0], [1], [0, 0, 1, 1], [], []>} : vector<64x128xbf16>, vector<128x256xbf16>, vector<64x256xf32> -> vector<64x256xf32>
    %c0_6 = arith.constant 0 : index
    %c0_7 = arith.constant 0 : index
    %6 = vector.load %arg5[%c0_6, %c0_7] : memref<1x256xf32, #tpu.memory_space<vmem>>, vector<1x256xf32>
    %7 = vector.broadcast %6 : vector<1x256xf32> to vector<64x256xf32>
    %8 = arith.addf %5, %7 : vector<64x256xf32>
    %c0_8 = arith.constant 0 : index
    %c0_9 = arith.constant 0 : index
    %c0_10 = arith.constant 0 : index
    %c0_11 = arith.constant 0 : index
    %c0_12 = arith.constant 0 : index
    %9 = vector.load %arg3[%c0_8, %c0_9, %c0_10, %c0_11, %c0_12] : memref<1x8x2x8x128xbf16, #tpu.memory_space<vmem>>, vector<1x8x1x8x128xbf16>
    %10 = vector.shape_cast %9 : vector<1x8x1x8x128xbf16> to vector<8x8x128xbf16>
    %11 = vector.shape_cast %10 : vector<8x8x128xbf16> to vector<64x128xbf16>
    %c0_13 = arith.constant 0 : index
    %c0_14 = arith.constant 0 : index
    %12 = vector.load %arg6[%c0_13, %c0_14] : memref<128x256xbf16, #tpu.memory_space<vmem>>, vector<128x256xbf16>
    %cst_15 = arith.constant dense<0.000000e+00> : vector<64x256xf32>
    %13 = tpu.matmul %11, %12, %cst_15 {dimension_numbers = #tpu.dot_dimension_numbers<[1], [0], [0], [1], [0, 0, 1, 1], [], []>} : vector<64x128xbf16>, vector<128x256xbf16>, vector<64x256xf32> -> vector<64x256xf32>
    %14 = arith.addf %8, %13 : vector<64x256xf32>
    %15 = vector.shape_cast %14 : vector<64x256xf32> to vector<8x8x256xf32>
    %16 = arith.truncf %15 : vector<8x8x256xf32> to vector<8x8x256xbf16>
    %c0_16 = arith.constant 0 : index
    %c0_17 = arith.constant 0 : index
    %c0_18 = arith.constant 0 : index
    %c0_19 = arith.constant 0 : index
    %c0_20 = arith.constant 0 : index
    %17 = vector.load %arg7[%c0_16, %c0_17, %c0_18, %c0_19, %c0_20] : memref<1x8x2x8x256xbf16, #tpu.memory_space<vmem>>, vector<1x8x1x8x256xbf16>
    %18 = vector.shape_cast %17 : vector<1x8x1x8x256xbf16> to vector<8x8x256xbf16>
    %19 = vector.shape_cast %16 : vector<8x8x256xbf16> to vector<1x8x1x8x256xbf16>
    tpu.vector_store %arg7[%c0_16, %c0_17, %c0_18, %c0_19, %c0_20], %19 {strides = array<i32>} : memref<1x8x2x8x256xbf16, #tpu.memory_space<vmem>>, vector<1x8x1x8x256xbf16>,
    %c1 = arith.constant 1 : index
    %c0_21 = arith.constant 0 : index
    %c0_22 = arith.constant 0 : index
    %20 = vector.load %arg4[%c1, %c0_21, %c0_22] : memref<2x128x256xbf16, #tpu.memory_space<vmem>>, vector<1x128x256xbf16>
    %21 = vector.shape_cast %20 : vector<1x128x256xbf16> to vector<128x256xbf16>
    %cst_23 = arith.constant dense<0.000000e+00> : vector<64x256xf32>
    %22 = tpu.matmul %2, %21, %cst_23 {dimension_numbers = #tpu.dot_dimension_numbers<[1], [0], [0], [1], [0, 0, 1, 1], [], []>} : vector<64x128xbf16>, vector<128x256xbf16>, vector<64x256xf32> -> vector<64x256xf32>
    %c0_24 = arith.constant 0 : index
    %c0_25 = arith.constant 0 : index
    %23 = vector.load %arg5[%c0_24, %c0_25] : memref<1x256xf32, #tpu.memory_space<vmem>>, vector<1x256xf32>
    %24 = vector.broadcast %23 : vector<1x256xf32> to vector<64x256xf32>
    %25 = arith.addf %22, %24 : vector<64x256xf32>
    %c0_26 = arith.constant 0 : index
    %c0_27 = arith.constant 0 : index
    %c1_28 = arith.constant 1 : index
    %c0_29 = arith.constant 0 : index
    %c0_30 = arith.constant 0 : index
    %26 = vector.load %arg3[%c0_26, %c0_27, %c1_28, %c0_29, %c0_30] : memref<1x8x2x8x128xbf16, #tpu.memory_space<vmem>>, vector<1x8x1x8x128xbf16>
    %27 = vector.shape_cast %26 : vector<1x8x1x8x128xbf16> to vector<8x8x128xbf16>
    %28 = vector.shape_cast %27 : vector<8x8x128xbf16> to vector<64x128xbf16>
    %c0_31 = arith.constant 0 : index
    %c0_32 = arith.constant 0 : index
    %29 = vector.load %arg6[%c0_31, %c0_32] : memref<128x256xbf16, #tpu.memory_space<vmem>>, vector<128x256xbf16>
    %cst_33 = arith.constant dense<0.000000e+00> : vector<64x256xf32>
    %30 = tpu.matmul %28, %29, %cst_33 {dimension_numbers = #tpu.dot_dimension_numbers<[1], [0], [0], [1], [0, 0, 1, 1], [], []>} : vector<64x128xbf16>, vector<128x256xbf16>, vector<64x256xf32> -> vector<64x256xf32>
    %31 = arith.addf %25, %30 : vector<64x256xf32>
    %32 = vector.shape_cast %31 : vector<64x256xf32> to vector<8x8x256xf32>
    %33 = arith.truncf %32 : vector<8x8x256xf32> to vector<8x8x256xbf16>
    %c0_34 = arith.constant 0 : index
    %c0_35 = arith.constant 0 : index
    %c1_36 = arith.constant 1 : index
    %c0_37 = arith.constant 0 : index
    %c0_38 = arith.constant 0 : index
    %34 = vector.load %arg7[%c0_34, %c0_35, %c1_36, %c0_37, %c0_38] : memref<1x8x2x8x256xbf16, #tpu.memory_space<vmem>>, vector<1x8x1x8x256xbf16>
    %35 = vector.shape_cast %34 : vector<1x8x1x8x256xbf16> to vector<8x8x256xbf16>
    %36 = vector.shape_cast %33 : vector<8x8x256xbf16> to vector<1x8x1x8x256xbf16>
    tpu.vector_store %arg7[%c0_34, %c0_35, %c1_36, %c0_37, %c0_38], %36 {strides = array<i32>} : memref<1x8x2x8x256xbf16, #tpu.memory_space<vmem>>, vector<1x8x1x8x256xbf16>,
    return
  }
  func.func @transform_0(%arg0: i32, %arg1: i32) -> (i32, i32, i32, i32) {
    %c0_i32 = arith.constant 0 : i32
    %c0_i32_0 = arith.constant 0 : i32
    %c0_i32_1 = arith.constant 0 : i32
    return %arg0, %arg1, %c0_i32, %c0_i32_0 : i32, i32, i32, i32
  }
  func.func @transform_1(%arg0: i32, %arg1: i32) -> (i32, i32, i32, i32, i32) {
    %c0_i32 = arith.constant 0 : i32
    %c0_i32_0 = arith.constant 0 : i32
    %c0_i32_1 = arith.constant 0 : i32
    %c0_i32_2 = arith.constant 0 : i32
    return %arg0, %arg1, %c0_i32, %c0_i32_0, %c0_i32_1 : i32, i32, i32, i32, i32
  }
  func.func @transform_2(%arg0: i32, %arg1: i32) -> (i32, i32, i32) {
    %c0_i32 = arith.constant 0 : i32
    %c0_i32_0 = arith.constant 0 : i32
    %c0_i32_1 = arith.constant 0 : i32
    %c0_i32_2 = arith.constant 0 : i32
    return %c0_i32, %c0_i32_0, %c0_i32_1 : i32, i32, i32
  }
  func.func @transform_3(%arg0: i32, %arg1: i32) -> (i32, i32) {
    %c0_i32 = arith.constant 0 : i32
    %c0_i32_0 = arith.constant 0 : i32
    %c0_i32_1 = arith.constant 0 : i32
    return %c0_i32, %c0_i32_0 : i32, i32
  }
  func.func @transform_4(%arg0: i32, %arg1: i32) -> (i32, i32) {
    %c0_i32 = arith.constant 0 : i32
    %c0_i32_0 = arith.constant 0 : i32
    %c0_i32_1 = arith.constant 0 : i32
    return %c0_i32, %c0_i32_0 : i32, i32
  }
  func.func @transform_5(%arg0: i32, %arg1: i32) -> (i32, i32, i32, i32, i32) {
    %c0_i32 = arith.constant 0 : i32
    %c0_i32_0 = arith.constant 0 : i32
    %c0_i32_1 = arith.constant 0 : i32
    %c0_i32_2 = arith.constant 0 : i32
    return %arg0, %arg1, %c0_i32, %c0_i32_0, %c0_i32_1 : i32, i32, i32, i32, i32
  }
}

module attributes {stable_mosaic.version = 11 : i64} {
  func.func @kernel(%arg0: i32, %arg1: i32, %arg2: memref<2x456x128xbf16, #tpu.memory_space<any>>, %arg3: memref<9x128x128xbf16, #tpu.memory_space<vmem>>, %arg4: memref<1x8x16x128xbf16, #tpu.memory_space<vmem>>, %arg5: memref<1x8x128xf32, #tpu.memory_space<vmem>>, %arg6: memref<2x264x128xbf16, #tpu.memory_space<vmem>>, %arg7: memref<2x!tpu.dma_semaphore, #tpu.memory_space<semaphore_mem>>, %arg8: memref<192x128xf32, #tpu.memory_space<vmem>>) attributes {dimension_semantics = [#tpu.dimension_semantics<parallel>, #tpu.dimension_semantics<arbitrary>], iteration_bounds = array<i64: 2, 2>, scalar_prefetch = 0 : i64, scratch_operands = 3 : i64, tpu.core_type = #tpu.core_type<tc>, window_params = [{}, {pipeline_mode = #tpu.pipeline_mode<synchronous>, transform_indices = @transform_1, window_bounds = array<i64: 9, 128, 128>}, {transform_indices = @transform_2, window_bounds = array<i64: 1, 8, 16, 128>}, {transform_indices = @transform_3, window_bounds = array<i64: 1, 8, 128>}]} {
    %c2_i32 = arith.constant 2 : i32
    %c0_i32 = arith.constant 0 : i32
    %0 = arith.cmpi eq, %c2_i32, %c0_i32 : i32
    %c1_i32 = arith.constant 1 : i32
    %1 = arith.select %0, %c1_i32, %c2_i32 : i32
    %2 = arith.remsi %arg1, %1 : i32
    %c0_i32_0 = arith.constant 0 : i32
    %3 = arith.cmpi ne, %2, %c0_i32_0 : i32
    %c0_i32_1 = arith.constant 0 : i32
    %4 = arith.cmpi slt, %2, %c0_i32_1 : i32
    %c0_i32_2 = arith.constant 0 : i32
    %5 = arith.cmpi slt, %1, %c0_i32_2 : i32
    %6 = arith.xori %4, %5 : i1
    %7 = arith.andi %6, %3 : i1
    %8 = arith.addi %2, %1 : i32
    %9 = arith.select %7, %8, %2 : i32
    %c0_i32_3 = arith.constant 0 : i32
    %10 = arith.cmpi eq, %arg1, %c0_i32_3 : i32
    %11 = arith.extui %10 : i1 to i32
    %c0_i32_4 = arith.constant 0 : i32
    %12 = arith.cmpi ne, %11, %c0_i32_4 : i32
    scf.if %12 {
      %c0_i32_123 = arith.constant 0 : i32
      %c0_i32_124 = arith.constant 0 : i32
      %c0_i32_125 = arith.constant 0 : i32
      %c0_i32_126 = arith.constant 0 : i32
      %130 = tpu.memref_slice %arg2[%arg0, %c0_i32_125, %c0_i32_126] : memref<2x456x128xbf16, #tpu.memory_space<any>> -> memref<1x264x128xbf16, #tpu.memory_space<any>>
      %131 = tpu.memref_squeeze %130 : memref<1x264x128xbf16, #tpu.memory_space<any>> -> memref<264x128xbf16, #tpu.memory_space<any>>
      %c0_i32_127 = arith.constant 0 : i32
      %c0_i32_128 = arith.constant 0 : i32
      %132 = tpu.memref_slice %arg6[%c0_i32_123, %c0_i32_127, %c0_i32_128] : memref<2x264x128xbf16, #tpu.memory_space<vmem>> -> memref<1x264x128xbf16, #tpu.memory_space<vmem>>
      %133 = tpu.memref_squeeze %132 : memref<1x264x128xbf16, #tpu.memory_space<vmem>> -> memref<264x128xbf16, #tpu.memory_space<vmem>>
      %134 = tpu.memref_slice %arg7[%c0_i32_124] : memref<2x!tpu.dma_semaphore, #tpu.memory_space<semaphore_mem>> -> memref<1x!tpu.dma_semaphore, #tpu.memory_space<semaphore_mem>>
      %135 = tpu.memref_squeeze %134 : memref<1x!tpu.dma_semaphore, #tpu.memory_space<semaphore_mem>> -> memref<!tpu.dma_semaphore, #tpu.memory_space<semaphore_mem>>
      tpu.enqueue_dma source(%131 : memref<264x128xbf16, #tpu.memory_space<any>>) target(%133 : memref<264x128xbf16, #tpu.memory_space<vmem>>) target_semaphore(%135 : memref<!tpu.dma_semaphore, #tpu.memory_space<semaphore_mem>>)
    } else {
    }
    %c1_i32_5 = arith.constant 1 : i32
    %13 = arith.addi %arg1, %c1_i32_5 : i32
    %c2_i32_6 = arith.constant 2 : i32
    %14 = arith.cmpi slt, %13, %c2_i32_6 : i32
    %15 = arith.extui %14 : i1 to i32
    %c0_i32_7 = arith.constant 0 : i32
    %16 = arith.cmpi ne, %15, %c0_i32_7 : i32
    scf.if %16 {
      %c1_i32_123 = arith.constant 1 : i32
      %130 = arith.addi %arg1, %c1_i32_123 : i32
      %c1_i32_124 = arith.constant 1 : i32
      %131 = arith.subi %c1_i32_124, %9 : i32
      %c192_i32_125 = arith.constant 192 : i32
      %132 = arith.muli %130, %c192_i32_125 : i32
      %c0_i32_126 = arith.constant 0 : i32
      %133 = tpu.memref_slice %arg2[%arg0, %132, %c0_i32_126] : memref<2x456x128xbf16, #tpu.memory_space<any>> -> memref<1x264x128xbf16, #tpu.memory_space<any>>
      %134 = tpu.memref_squeeze %133 : memref<1x264x128xbf16, #tpu.memory_space<any>> -> memref<264x128xbf16, #tpu.memory_space<any>>
      %c0_i32_127 = arith.constant 0 : i32
      %c0_i32_128 = arith.constant 0 : i32
      %135 = tpu.memref_slice %arg6[%131, %c0_i32_127, %c0_i32_128] : memref<2x264x128xbf16, #tpu.memory_space<vmem>> -> memref<1x264x128xbf16, #tpu.memory_space<vmem>>
      %136 = tpu.memref_squeeze %135 : memref<1x264x128xbf16, #tpu.memory_space<vmem>> -> memref<264x128xbf16, #tpu.memory_space<vmem>>
      %137 = tpu.memref_slice %arg7[%131] : memref<2x!tpu.dma_semaphore, #tpu.memory_space<semaphore_mem>> -> memref<1x!tpu.dma_semaphore, #tpu.memory_space<semaphore_mem>>
      %138 = tpu.memref_squeeze %137 : memref<1x!tpu.dma_semaphore, #tpu.memory_space<semaphore_mem>> -> memref<!tpu.dma_semaphore, #tpu.memory_space<semaphore_mem>>
      tpu.enqueue_dma source(%134 : memref<264x128xbf16, #tpu.memory_space<any>>) target(%136 : memref<264x128xbf16, #tpu.memory_space<vmem>>) target_semaphore(%138 : memref<!tpu.dma_semaphore, #tpu.memory_space<semaphore_mem>>)
    } else {
    }
    %c192_i32 = arith.constant 192 : i32
    %17 = arith.muli %arg1, %c192_i32 : i32
    %c0_i32_8 = arith.constant 0 : i32
    %18 = tpu.memref_slice %arg2[%arg0, %17, %c0_i32_8] : memref<2x456x128xbf16, #tpu.memory_space<any>> -> memref<1x264x128xbf16, #tpu.memory_space<any>>
    %19 = tpu.memref_squeeze %18 : memref<1x264x128xbf16, #tpu.memory_space<any>> -> memref<264x128xbf16, #tpu.memory_space<any>>
    %c0_i32_9 = arith.constant 0 : i32
    %c0_i32_10 = arith.constant 0 : i32
    %20 = tpu.memref_slice %arg6[%9, %c0_i32_9, %c0_i32_10] : memref<2x264x128xbf16, #tpu.memory_space<vmem>> -> memref<1x264x128xbf16, #tpu.memory_space<vmem>>
    %21 = tpu.memref_squeeze %20 : memref<1x264x128xbf16, #tpu.memory_space<vmem>> -> memref<264x128xbf16, #tpu.memory_space<vmem>>
    %22 = tpu.memref_slice %arg7[%9] : memref<2x!tpu.dma_semaphore, #tpu.memory_space<semaphore_mem>> -> memref<1x!tpu.dma_semaphore, #tpu.memory_space<semaphore_mem>>
    %23 = tpu.memref_squeeze %22 : memref<1x!tpu.dma_semaphore, #tpu.memory_space<semaphore_mem>> -> memref<!tpu.dma_semaphore, #tpu.memory_space<semaphore_mem>>
    tpu.wait_dma2 semaphore(%23 : memref<!tpu.dma_semaphore, #tpu.memory_space<semaphore_mem>>) src(%19 : memref<264x128xbf16, #tpu.memory_space<any>>) dst(%21 : memref<264x128xbf16, #tpu.memory_space<vmem>>)
    %c0_i32_11 = arith.constant 0 : i32
    %c0_i32_12 = arith.constant 0 : i32
    %24 = tpu.memref_slice %arg6[%9, %c0_i32_11, %c0_i32_12] : memref<2x264x128xbf16, #tpu.memory_space<vmem>> -> memref<1x264x128xbf16, #tpu.memory_space<vmem>>
    %25 = tpu.memref_squeeze %24 : memref<1x264x128xbf16, #tpu.memory_space<vmem>> -> memref<264x128xbf16, #tpu.memory_space<vmem>>
    %c0 = arith.constant 0 : index
    %c0_13 = arith.constant 0 : index
    %26 = vector.load %25[%c0, %c0_13] : memref<264x128xbf16, #tpu.memory_space<vmem>>, vector<192x128xbf16>
    %c0_14 = arith.constant 0 : index
    %c0_15 = arith.constant 0 : index
    %c0_16 = arith.constant 0 : index
    %27 = vector.load %arg3[%c0_14, %c0_15, %c0_16] : memref<9x128x128xbf16, #tpu.memory_space<vmem>>, vector<1x128x128xbf16>
    %28 = vector.shape_cast %27 : vector<1x128x128xbf16> to vector<128x128xbf16>
    %cst = arith.constant dense<0.000000e+00> : vector<192x128xf32>
    %29 = tpu.matmul %26, %28, %cst {dimension_numbers = #tpu.dot_dimension_numbers<[1], [0], [0], [1], [0, 0, 1, 1], [], []>} : vector<192x128xbf16>, vector<128x128xbf16>, vector<192x128xf32> -> vector<192x128xf32>
    %c0_17 = arith.constant 0 : index
    %c0_18 = arith.constant 0 : index
    %30 = vector.load %arg8[%c0_17, %c0_18] : memref<192x128xf32, #tpu.memory_space<vmem>>, vector<192x128xf32>
    tpu.vector_store %arg8[%c0_17, %c0_18], %29 {strides = array<i32>} : memref<192x128xf32, #tpu.memory_space<vmem>>, vector<192x128xf32>,
    %c0_i32_19 = arith.constant 0 : i32
    %c0_i32_20 = arith.constant 0 : i32
    %31 = tpu.memref_slice %arg6[%9, %c0_i32_19, %c0_i32_20] : memref<2x264x128xbf16, #tpu.memory_space<vmem>> -> memref<1x264x128xbf16, #tpu.memory_space<vmem>>
    %32 = tpu.memref_squeeze %31 : memref<1x264x128xbf16, #tpu.memory_space<vmem>> -> memref<264x128xbf16, #tpu.memory_space<vmem>>
    %c1 = arith.constant 1 : index
    %c0_21 = arith.constant 0 : index
    %33 = vector.load %32[%c1, %c0_21] : memref<264x128xbf16, #tpu.memory_space<vmem>>, vector<192x128xbf16>
    %c1_22 = arith.constant 1 : index
    %c0_23 = arith.constant 0 : index
    %c0_24 = arith.constant 0 : index
    %34 = vector.load %arg3[%c1_22, %c0_23, %c0_24] : memref<9x128x128xbf16, #tpu.memory_space<vmem>>, vector<1x128x128xbf16>
    %35 = vector.shape_cast %34 : vector<1x128x128xbf16> to vector<128x128xbf16>
    %cst_25 = arith.constant dense<0.000000e+00> : vector<192x128xf32>
    %36 = tpu.matmul %33, %35, %cst_25 {dimension_numbers = #tpu.dot_dimension_numbers<[1], [0], [0], [1], [0, 0, 1, 1], [], []>} : vector<192x128xbf16>, vector<128x128xbf16>, vector<192x128xf32> -> vector<192x128xf32>
    %c0_26 = arith.constant 0 : index
    %c0_27 = arith.constant 0 : index
    %37 = vector.load %arg8[%c0_26, %c0_27] : memref<192x128xf32, #tpu.memory_space<vmem>>, vector<192x128xf32>
    %38 = arith.addf %37, %36 : vector<192x128xf32>
    %c0_28 = arith.constant 0 : index
    %c0_29 = arith.constant 0 : index
    %39 = vector.load %arg8[%c0_28, %c0_29] : memref<192x128xf32, #tpu.memory_space<vmem>>, vector<192x128xf32>
    tpu.vector_store %arg8[%c0_28, %c0_29], %38 {strides = array<i32>} : memref<192x128xf32, #tpu.memory_space<vmem>>, vector<192x128xf32>,
    %c0_i32_30 = arith.constant 0 : i32
    %c0_i32_31 = arith.constant 0 : i32
    %40 = tpu.memref_slice %arg6[%9, %c0_i32_30, %c0_i32_31] : memref<2x264x128xbf16, #tpu.memory_space<vmem>> -> memref<1x264x128xbf16, #tpu.memory_space<vmem>>
    %41 = tpu.memref_squeeze %40 : memref<1x264x128xbf16, #tpu.memory_space<vmem>> -> memref<264x128xbf16, #tpu.memory_space<vmem>>
    %c2 = arith.constant 2 : index
    %c0_32 = arith.constant 0 : index
    %42 = vector.load %41[%c2, %c0_32] : memref<264x128xbf16, #tpu.memory_space<vmem>>, vector<192x128xbf16>
    %c2_33 = arith.constant 2 : index
    %c0_34 = arith.constant 0 : index
    %c0_35 = arith.constant 0 : index
    %43 = vector.load %arg3[%c2_33, %c0_34, %c0_35] : memref<9x128x128xbf16, #tpu.memory_space<vmem>>, vector<1x128x128xbf16>
    %44 = vector.shape_cast %43 : vector<1x128x128xbf16> to vector<128x128xbf16>
    %cst_36 = arith.constant dense<0.000000e+00> : vector<192x128xf32>
    %45 = tpu.matmul %42, %44, %cst_36 {dimension_numbers = #tpu.dot_dimension_numbers<[1], [0], [0], [1], [0, 0, 1, 1], [], []>} : vector<192x128xbf16>, vector<128x128xbf16>, vector<192x128xf32> -> vector<192x128xf32>
    %c0_37 = arith.constant 0 : index
    %c0_38 = arith.constant 0 : index
    %46 = vector.load %arg8[%c0_37, %c0_38] : memref<192x128xf32, #tpu.memory_space<vmem>>, vector<192x128xf32>
    %47 = arith.addf %46, %45 : vector<192x128xf32>
    %c0_39 = arith.constant 0 : index
    %c0_40 = arith.constant 0 : index
    %48 = vector.load %arg8[%c0_39, %c0_40] : memref<192x128xf32, #tpu.memory_space<vmem>>, vector<192x128xf32>
    tpu.vector_store %arg8[%c0_39, %c0_40], %47 {strides = array<i32>} : memref<192x128xf32, #tpu.memory_space<vmem>>, vector<192x128xf32>,
    %c0_i32_41 = arith.constant 0 : i32
    %c0_i32_42 = arith.constant 0 : i32
    %49 = tpu.memref_slice %arg6[%9, %c0_i32_41, %c0_i32_42] : memref<2x264x128xbf16, #tpu.memory_space<vmem>> -> memref<1x264x128xbf16, #tpu.memory_space<vmem>>
    %50 = tpu.memref_squeeze %49 : memref<1x264x128xbf16, #tpu.memory_space<vmem>> -> memref<264x128xbf16, #tpu.memory_space<vmem>>
    %c24 = arith.constant 24 : index
    %c0_43 = arith.constant 0 : index
    %51 = vector.load %50[%c24, %c0_43] : memref<264x128xbf16, #tpu.memory_space<vmem>>, vector<192x128xbf16>
    %c3 = arith.constant 3 : index
    %c0_44 = arith.constant 0 : index
    %c0_45 = arith.constant 0 : index
    %52 = vector.load %arg3[%c3, %c0_44, %c0_45] : memref<9x128x128xbf16, #tpu.memory_space<vmem>>, vector<1x128x128xbf16>
    %53 = vector.shape_cast %52 : vector<1x128x128xbf16> to vector<128x128xbf16>
    %cst_46 = arith.constant dense<0.000000e+00> : vector<192x128xf32>
    %54 = tpu.matmul %51, %53, %cst_46 {dimension_numbers = #tpu.dot_dimension_numbers<[1], [0], [0], [1], [0, 0, 1, 1], [], []>} : vector<192x128xbf16>, vector<128x128xbf16>, vector<192x128xf32> -> vector<192x128xf32>
    %c0_47 = arith.constant 0 : index
    %c0_48 = arith.constant 0 : index
    %55 = vector.load %arg8[%c0_47, %c0_48] : memref<192x128xf32, #tpu.memory_space<vmem>>, vector<192x128xf32>
    %56 = arith.addf %55, %54 : vector<192x128xf32>
    %c0_49 = arith.constant 0 : index
    %c0_50 = arith.constant 0 : index
    %57 = vector.load %arg8[%c0_49, %c0_50] : memref<192x128xf32, #tpu.memory_space<vmem>>, vector<192x128xf32>
    tpu.vector_store %arg8[%c0_49, %c0_50], %56 {strides = array<i32>} : memref<192x128xf32, #tpu.memory_space<vmem>>, vector<192x128xf32>,
    %c0_i32_51 = arith.constant 0 : i32
    %c0_i32_52 = arith.constant 0 : i32
    %58 = tpu.memref_slice %arg6[%9, %c0_i32_51, %c0_i32_52] : memref<2x264x128xbf16, #tpu.memory_space<vmem>> -> memref<1x264x128xbf16, #tpu.memory_space<vmem>>
    %59 = tpu.memref_squeeze %58 : memref<1x264x128xbf16, #tpu.memory_space<vmem>> -> memref<264x128xbf16, #tpu.memory_space<vmem>>
    %c25 = arith.constant 25 : index
    %c0_53 = arith.constant 0 : index
    %60 = vector.load %59[%c25, %c0_53] : memref<264x128xbf16, #tpu.memory_space<vmem>>, vector<192x128xbf16>
    %c4 = arith.constant 4 : index
    %c0_54 = arith.constant 0 : index
    %c0_55 = arith.constant 0 : index
    %61 = vector.load %arg3[%c4, %c0_54, %c0_55] : memref<9x128x128xbf16, #tpu.memory_space<vmem>>, vector<1x128x128xbf16>
    %62 = vector.shape_cast %61 : vector<1x128x128xbf16> to vector<128x128xbf16>
    %cst_56 = arith.constant dense<0.000000e+00> : vector<192x128xf32>
    %63 = tpu.matmul %60, %62, %cst_56 {dimension_numbers = #tpu.dot_dimension_numbers<[1], [0], [0], [1], [0, 0, 1, 1], [], []>} : vector<192x128xbf16>, vector<128x128xbf16>, vector<192x128xf32> -> vector<192x128xf32>
    %c0_57 = arith.constant 0 : index
    %c0_58 = arith.constant 0 : index
    %64 = vector.load %arg8[%c0_57, %c0_58] : memref<192x128xf32, #tpu.memory_space<vmem>>, vector<192x128xf32>
    %65 = arith.addf %64, %63 : vector<192x128xf32>
    %c0_59 = arith.constant 0 : index
    %c0_60 = arith.constant 0 : index
    %66 = vector.load %arg8[%c0_59, %c0_60] : memref<192x128xf32, #tpu.memory_space<vmem>>, vector<192x128xf32>
    tpu.vector_store %arg8[%c0_59, %c0_60], %65 {strides = array<i32>} : memref<192x128xf32, #tpu.memory_space<vmem>>, vector<192x128xf32>,
    %c0_i32_61 = arith.constant 0 : i32
    %c0_i32_62 = arith.constant 0 : i32
    %67 = tpu.memref_slice %arg6[%9, %c0_i32_61, %c0_i32_62] : memref<2x264x128xbf16, #tpu.memory_space<vmem>> -> memref<1x264x128xbf16, #tpu.memory_space<vmem>>
    %68 = tpu.memref_squeeze %67 : memref<1x264x128xbf16, #tpu.memory_space<vmem>> -> memref<264x128xbf16, #tpu.memory_space<vmem>>
    %c26 = arith.constant 26 : index
    %c0_63 = arith.constant 0 : index
    %69 = vector.load %68[%c26, %c0_63] : memref<264x128xbf16, #tpu.memory_space<vmem>>, vector<192x128xbf16>
    %c5 = arith.constant 5 : index
    %c0_64 = arith.constant 0 : index
    %c0_65 = arith.constant 0 : index
    %70 = vector.load %arg3[%c5, %c0_64, %c0_65] : memref<9x128x128xbf16, #tpu.memory_space<vmem>>, vector<1x128x128xbf16>
    %71 = vector.shape_cast %70 : vector<1x128x128xbf16> to vector<128x128xbf16>
    %cst_66 = arith.constant dense<0.000000e+00> : vector<192x128xf32>
    %72 = tpu.matmul %69, %71, %cst_66 {dimension_numbers = #tpu.dot_dimension_numbers<[1], [0], [0], [1], [0, 0, 1, 1], [], []>} : vector<192x128xbf16>, vector<128x128xbf16>, vector<192x128xf32> -> vector<192x128xf32>
    %c0_67 = arith.constant 0 : index
    %c0_68 = arith.constant 0 : index
    %73 = vector.load %arg8[%c0_67, %c0_68] : memref<192x128xf32, #tpu.memory_space<vmem>>, vector<192x128xf32>
    %74 = arith.addf %73, %72 : vector<192x128xf32>
    %c0_69 = arith.constant 0 : index
    %c0_70 = arith.constant 0 : index
    %75 = vector.load %arg8[%c0_69, %c0_70] : memref<192x128xf32, #tpu.memory_space<vmem>>, vector<192x128xf32>
    tpu.vector_store %arg8[%c0_69, %c0_70], %74 {strides = array<i32>} : memref<192x128xf32, #tpu.memory_space<vmem>>, vector<192x128xf32>,
    %c0_i32_71 = arith.constant 0 : i32
    %c0_i32_72 = arith.constant 0 : i32
    %76 = tpu.memref_slice %arg6[%9, %c0_i32_71, %c0_i32_72] : memref<2x264x128xbf16, #tpu.memory_space<vmem>> -> memref<1x264x128xbf16, #tpu.memory_space<vmem>>
    %77 = tpu.memref_squeeze %76 : memref<1x264x128xbf16, #tpu.memory_space<vmem>> -> memref<264x128xbf16, #tpu.memory_space<vmem>>
    %c48 = arith.constant 48 : index
    %c0_73 = arith.constant 0 : index
    %78 = vector.load %77[%c48, %c0_73] : memref<264x128xbf16, #tpu.memory_space<vmem>>, vector<192x128xbf16>
    %c6 = arith.constant 6 : index
    %c0_74 = arith.constant 0 : index
    %c0_75 = arith.constant 0 : index
    %79 = vector.load %arg3[%c6, %c0_74, %c0_75] : memref<9x128x128xbf16, #tpu.memory_space<vmem>>, vector<1x128x128xbf16>
    %80 = vector.shape_cast %79 : vector<1x128x128xbf16> to vector<128x128xbf16>
    %cst_76 = arith.constant dense<0.000000e+00> : vector<192x128xf32>
    %81 = tpu.matmul %78, %80, %cst_76 {dimension_numbers = #tpu.dot_dimension_numbers<[1], [0], [0], [1], [0, 0, 1, 1], [], []>} : vector<192x128xbf16>, vector<128x128xbf16>, vector<192x128xf32> -> vector<192x128xf32>
    %c0_77 = arith.constant 0 : index
    %c0_78 = arith.constant 0 : index
    %82 = vector.load %arg8[%c0_77, %c0_78] : memref<192x128xf32, #tpu.memory_space<vmem>>, vector<192x128xf32>
    %83 = arith.addf %82, %81 : vector<192x128xf32>
    %c0_79 = arith.constant 0 : index
    %c0_80 = arith.constant 0 : index
    %84 = vector.load %arg8[%c0_79, %c0_80] : memref<192x128xf32, #tpu.memory_space<vmem>>, vector<192x128xf32>
    tpu.vector_store %arg8[%c0_79, %c0_80], %83 {strides = array<i32>} : memref<192x128xf32, #tpu.memory_space<vmem>>, vector<192x128xf32>,
    %c0_i32_81 = arith.constant 0 : i32
    %c0_i32_82 = arith.constant 0 : i32
    %85 = tpu.memref_slice %arg6[%9, %c0_i32_81, %c0_i32_82] : memref<2x264x128xbf16, #tpu.memory_space<vmem>> -> memref<1x264x128xbf16, #tpu.memory_space<vmem>>
    %86 = tpu.memref_squeeze %85 : memref<1x264x128xbf16, #tpu.memory_space<vmem>> -> memref<264x128xbf16, #tpu.memory_space<vmem>>
    %c49 = arith.constant 49 : index
    %c0_83 = arith.constant 0 : index
    %87 = vector.load %86[%c49, %c0_83] : memref<264x128xbf16, #tpu.memory_space<vmem>>, vector<192x128xbf16>
    %c7 = arith.constant 7 : index
    %c0_84 = arith.constant 0 : index
    %c0_85 = arith.constant 0 : index
    %88 = vector.load %arg3[%c7, %c0_84, %c0_85] : memref<9x128x128xbf16, #tpu.memory_space<vmem>>, vector<1x128x128xbf16>
    %89 = vector.shape_cast %88 : vector<1x128x128xbf16> to vector<128x128xbf16>
    %cst_86 = arith.constant dense<0.000000e+00> : vector<192x128xf32>
    %90 = tpu.matmul %87, %89, %cst_86 {dimension_numbers = #tpu.dot_dimension_numbers<[1], [0], [0], [1], [0, 0, 1, 1], [], []>} : vector<192x128xbf16>, vector<128x128xbf16>, vector<192x128xf32> -> vector<192x128xf32>
    %c0_87 = arith.constant 0 : index
    %c0_88 = arith.constant 0 : index
    %91 = vector.load %arg8[%c0_87, %c0_88] : memref<192x128xf32, #tpu.memory_space<vmem>>, vector<192x128xf32>
    %92 = arith.addf %91, %90 : vector<192x128xf32>
    %c0_89 = arith.constant 0 : index
    %c0_90 = arith.constant 0 : index
    %93 = vector.load %arg8[%c0_89, %c0_90] : memref<192x128xf32, #tpu.memory_space<vmem>>, vector<192x128xf32>
    tpu.vector_store %arg8[%c0_89, %c0_90], %92 {strides = array<i32>} : memref<192x128xf32, #tpu.memory_space<vmem>>, vector<192x128xf32>,
    %c0_i32_91 = arith.constant 0 : i32
    %c0_i32_92 = arith.constant 0 : i32
    %94 = tpu.memref_slice %arg6[%9, %c0_i32_91, %c0_i32_92] : memref<2x264x128xbf16, #tpu.memory_space<vmem>> -> memref<1x264x128xbf16, #tpu.memory_space<vmem>>
    %95 = tpu.memref_squeeze %94 : memref<1x264x128xbf16, #tpu.memory_space<vmem>> -> memref<264x128xbf16, #tpu.memory_space<vmem>>
    %c50 = arith.constant 50 : index
    %c0_93 = arith.constant 0 : index
    %96 = vector.load %95[%c50, %c0_93] : memref<264x128xbf16, #tpu.memory_space<vmem>>, vector<192x128xbf16>
    %c8 = arith.constant 8 : index
    %c0_94 = arith.constant 0 : index
    %c0_95 = arith.constant 0 : index
    %97 = vector.load %arg3[%c8, %c0_94, %c0_95] : memref<9x128x128xbf16, #tpu.memory_space<vmem>>, vector<1x128x128xbf16>
    %98 = vector.shape_cast %97 : vector<1x128x128xbf16> to vector<128x128xbf16>
    %cst_96 = arith.constant dense<0.000000e+00> : vector<192x128xf32>
    %99 = tpu.matmul %96, %98, %cst_96 {dimension_numbers = #tpu.dot_dimension_numbers<[1], [0], [0], [1], [0, 0, 1, 1], [], []>} : vector<192x128xbf16>, vector<128x128xbf16>, vector<192x128xf32> -> vector<192x128xf32>
    %c0_97 = arith.constant 0 : index
    %c0_98 = arith.constant 0 : index
    %100 = vector.load %arg8[%c0_97, %c0_98] : memref<192x128xf32, #tpu.memory_space<vmem>>, vector<192x128xf32>
    %101 = arith.addf %100, %99 : vector<192x128xf32>
    %c0_99 = arith.constant 0 : index
    %c0_100 = arith.constant 0 : index
    %102 = vector.load %arg8[%c0_99, %c0_100] : memref<192x128xf32, #tpu.memory_space<vmem>>, vector<192x128xf32>
    tpu.vector_store %arg8[%c0_99, %c0_100], %101 {strides = array<i32>} : memref<192x128xf32, #tpu.memory_space<vmem>>, vector<192x128xf32>,
    %c0_101 = arith.constant 0 : index
    %c0_102 = arith.constant 0 : index
    %103 = vector.load %arg8[%c0_101, %c0_102] : memref<192x128xf32, #tpu.memory_space<vmem>>, vector<192x128xf32>
    %104 = vector.shape_cast %103 : vector<192x128xf32> to vector<8x24x128xf32>
    %105 = vector.extract_strided_slice %104 {offsets = [0, 0, 0], sizes = [8, 16, 128], strides = [1, 1, 1]} : vector<8x24x128xf32> to vector<8x16x128xf32>
    %106 = arith.truncf %105 : vector<8x16x128xf32> to vector<8x16x128xbf16>
    %c0_103 = arith.constant 0 : index
    %c0_104 = arith.constant 0 : index
    %c0_105 = arith.constant 0 : index
    %c0_106 = arith.constant 0 : index
    %107 = vector.load %arg4[%c0_103, %c0_104, %c0_105, %c0_106] : memref<1x8x16x128xbf16, #tpu.memory_space<vmem>>, vector<1x8x16x128xbf16>
    %108 = vector.shape_cast %107 : vector<1x8x16x128xbf16> to vector<8x16x128xbf16>
    %109 = vector.shape_cast %106 : vector<8x16x128xbf16> to vector<1x8x16x128xbf16>
    tpu.vector_store %arg4[%c0_103, %c0_104, %c0_105, %c0_106], %109 {strides = array<i32>} : memref<1x8x16x128xbf16, #tpu.memory_space<vmem>>, vector<1x8x16x128xbf16>,
    %c0_i32_107 = arith.constant 0 : i32
    %110 = arith.cmpi eq, %arg1, %c0_i32_107 : i32
    %111 = arith.extui %110 : i1 to i32
    %c0_i32_108 = arith.constant 0 : i32
    %112 = arith.cmpi ne, %111, %c0_i32_108 : i32
    scf.if %112 {
      %cst_123 = arith.constant 0.000000e+00 : f32
      %130 = vector.broadcast %cst_123 : f32 to vector<1x8x128xf32>
      %c0_124 = arith.constant 0 : index
      %c0_125 = arith.constant 0 : index
      %c0_126 = arith.constant 0 : index
      %131 = vector.load %arg5[%c0_124, %c0_125, %c0_126] : memref<1x8x128xf32, #tpu.memory_space<vmem>>, vector<1x8x128xf32>
      tpu.vector_store %arg5[%c0_124, %c0_125, %c0_126], %130 {strides = array<i32>} : memref<1x8x128xf32, #tpu.memory_space<vmem>>, vector<1x8x128xf32>,
    } else {
    }
    %c0_109 = arith.constant 0 : index
    %c0_110 = arith.constant 0 : index
    %c0_111 = arith.constant 0 : index
    %113 = vector.load %arg5[%c0_109, %c0_110, %c0_111] : memref<1x8x128xf32, #tpu.memory_space<vmem>>, vector<1x1x128xf32>
    %114 = vector.shape_cast %113 : vector<1x1x128xf32> to vector<1x128xf32>
    %cst_112 = arith.constant dense<0.000000e+00> : vector<128xf32>
    %115 = vector.multi_reduction <add>, %105, %cst_112 [0, 1] : vector<8x16x128xf32> to vector<128xf32>
    %116 = vector.shape_cast %115 : vector<128xf32> to vector<1x128xf32>
    %117 = arith.addf %114, %116 : vector<1x128xf32>
    %c0_113 = arith.constant 0 : index
    %c0_114 = arith.constant 0 : index
    %c0_115 = arith.constant 0 : index
    %118 = vector.load %arg5[%c0_113, %c0_114, %c0_115] : memref<1x8x128xf32, #tpu.memory_space<vmem>>, vector<1x1x128xf32>
    %119 = vector.shape_cast %118 : vector<1x1x128xf32> to vector<1x128xf32>
    %120 = vector.shape_cast %117 : vector<1x128xf32> to vector<1x1x128xf32>
    tpu.vector_store %arg5[%c0_113, %c0_114, %c0_115], %120 {strides = array<i32>} : memref<1x8x128xf32, #tpu.memory_space<vmem>>, vector<1x1x128xf32>,
    %c0_116 = arith.constant 0 : index
    %c1_117 = arith.constant 1 : index
    %c0_118 = arith.constant 0 : index
    %121 = vector.load %arg5[%c0_116, %c1_117, %c0_118] : memref<1x8x128xf32, #tpu.memory_space<vmem>>, vector<1x1x128xf32>
    %122 = vector.shape_cast %121 : vector<1x1x128xf32> to vector<1x128xf32>
    %123 = arith.mulf %105, %105 : vector<8x16x128xf32>
    %cst_119 = arith.constant dense<0.000000e+00> : vector<128xf32>
    %124 = vector.multi_reduction <add>, %123, %cst_119 [0, 1] : vector<8x16x128xf32> to vector<128xf32>
    %125 = vector.shape_cast %124 : vector<128xf32> to vector<1x128xf32>
    %126 = arith.addf %122, %125 : vector<1x128xf32>
    %c0_120 = arith.constant 0 : index
    %c1_121 = arith.constant 1 : index
    %c0_122 = arith.constant 0 : index
    %127 = vector.load %arg5[%c0_120, %c1_121, %c0_122] : memref<1x8x128xf32, #tpu.memory_space<vmem>>, vector<1x1x128xf32>
    %128 = vector.shape_cast %127 : vector<1x1x128xf32> to vector<1x128xf32>
    %129 = vector.shape_cast %126 : vector<1x128xf32> to vector<1x1x128xf32>
    tpu.vector_store %arg5[%c0_120, %c1_121, %c0_122], %129 {strides = array<i32>} : memref<1x8x128xf32, #tpu.memory_space<vmem>>, vector<1x1x128xf32>,
    return
  }
  func.func @transform_1(%arg0: i32, %arg1: i32) -> (i32, i32, i32) {
    %c0_i32 = arith.constant 0 : i32
    %c0_i32_0 = arith.constant 0 : i32
    %c0_i32_1 = arith.constant 0 : i32
    %c0_i32_2 = arith.constant 0 : i32
    return %c0_i32, %c0_i32_0, %c0_i32_1 : i32, i32, i32
  }
  func.func @transform_2(%arg0: i32, %arg1: i32) -> (i32, i32, i32, i32) {
    %c0_i32 = arith.constant 0 : i32
    %c0_i32_0 = arith.constant 0 : i32
    %c0_i32_1 = arith.constant 0 : i32
    return %arg0, %arg1, %c0_i32, %c0_i32_0 : i32, i32, i32, i32
  }
  func.func @transform_3(%arg0: i32, %arg1: i32) -> (i32, i32, i32) {
    %c0_i32 = arith.constant 0 : i32
    %c0_i32_0 = arith.constant 0 : i32
    %c0_i32_1 = arith.constant 0 : i32
    return %arg0, %c0_i32, %c0_i32_0 : i32, i32, i32
  }
}

module attributes {stable_mosaic.version = 11 : i64} {
  func.func @_bn_relu_kernel(%arg0: i32, %arg1: i32, %arg2: memref<1x16x16x128xbf16, #tpu.memory_space<vmem>>, %arg3: memref<1x1x1x128xf32, #tpu.memory_space<vmem>>, %arg4: memref<1x1x1x128xf32, #tpu.memory_space<vmem>>, %arg5: memref<1x16x16x128xbf16, #tpu.memory_space<vmem>>) attributes {dimension_semantics = [#tpu.dimension_semantics<parallel>, #tpu.dimension_semantics<parallel>], iteration_bounds = array<i64: 2, 1>, scalar_prefetch = 0 : i64, scratch_operands = 0 : i64, tpu.core_type = #tpu.core_type<tc>, window_params = [{transform_indices = @transform_0, window_bounds = array<i64: 1, 16, 16, 128>}, {pipeline_mode = #tpu.pipeline_mode<synchronous>, transform_indices = @transform_1, window_bounds = array<i64: 1, 1, 1, 128>}, {pipeline_mode = #tpu.pipeline_mode<synchronous>, transform_indices = @transform_2, window_bounds = array<i64: 1, 1, 1, 128>}, {transform_indices = @transform_3, window_bounds = array<i64: 1, 16, 16, 128>}]} {
    %c0 = arith.constant 0 : index
    %c0_0 = arith.constant 0 : index
    %c0_1 = arith.constant 0 : index
    %c0_2 = arith.constant 0 : index
    %0 = vector.load %arg2[%c0, %c0_0, %c0_1, %c0_2] : memref<1x16x16x128xbf16, #tpu.memory_space<vmem>>, vector<1x16x16x128xbf16>
    %1 = arith.extf %0 : vector<1x16x16x128xbf16> to vector<1x16x16x128xf32>
    %c0_3 = arith.constant 0 : index
    %c0_4 = arith.constant 0 : index
    %c0_5 = arith.constant 0 : index
    %c0_6 = arith.constant 0 : index
    %2 = vector.load %arg3[%c0_3, %c0_4, %c0_5, %c0_6] : memref<1x1x1x128xf32, #tpu.memory_space<vmem>>, vector<1x1x1x128xf32>
    %3 = vector.broadcast %2 : vector<1x1x1x128xf32> to vector<1x16x16x128xf32>
    %4 = arith.mulf %1, %3 : vector<1x16x16x128xf32>
    %c0_7 = arith.constant 0 : index
    %c0_8 = arith.constant 0 : index
    %c0_9 = arith.constant 0 : index
    %c0_10 = arith.constant 0 : index
    %5 = vector.load %arg4[%c0_7, %c0_8, %c0_9, %c0_10] : memref<1x1x1x128xf32, #tpu.memory_space<vmem>>, vector<1x1x1x128xf32>
    %6 = vector.broadcast %5 : vector<1x1x1x128xf32> to vector<1x16x16x128xf32>
    %7 = arith.addf %4, %6 : vector<1x16x16x128xf32>
    %cst = arith.constant 0.000000e+00 : f32
    %8 = vector.broadcast %cst : f32 to vector<1x16x16x128xf32>
    %9 = arith.maximumf %7, %8 : vector<1x16x16x128xf32>
    %10 = arith.truncf %9 : vector<1x16x16x128xf32> to vector<1x16x16x128xbf16>
    %c0_11 = arith.constant 0 : index
    %c0_12 = arith.constant 0 : index
    %c0_13 = arith.constant 0 : index
    %c0_14 = arith.constant 0 : index
    %11 = vector.load %arg5[%c0_11, %c0_12, %c0_13, %c0_14] : memref<1x16x16x128xbf16, #tpu.memory_space<vmem>>, vector<1x16x16x128xbf16>
    tpu.vector_store %arg5[%c0_11, %c0_12, %c0_13, %c0_14], %10 {strides = array<i32>} : memref<1x16x16x128xbf16, #tpu.memory_space<vmem>>, vector<1x16x16x128xbf16>,
    return
  }
  func.func @transform_0(%arg0: i32, %arg1: i32) -> (i32, i32, i32, i32) {
    %c0_i32 = arith.constant 0 : i32
    %c0_i32_0 = arith.constant 0 : i32
    %c0_i32_1 = arith.constant 0 : i32
    return %arg0, %arg1, %c0_i32, %c0_i32_0 : i32, i32, i32, i32
  }
  func.func @transform_1(%arg0: i32, %arg1: i32) -> (i32, i32, i32, i32) {
    %c0_i32 = arith.constant 0 : i32
    %c0_i32_0 = arith.constant 0 : i32
    %c0_i32_1 = arith.constant 0 : i32
    %c0_i32_2 = arith.constant 0 : i32
    %c0_i32_3 = arith.constant 0 : i32
    return %c0_i32, %c0_i32_0, %c0_i32_1, %c0_i32_2 : i32, i32, i32, i32
  }
  func.func @transform_2(%arg0: i32, %arg1: i32) -> (i32, i32, i32, i32) {
    %c0_i32 = arith.constant 0 : i32
    %c0_i32_0 = arith.constant 0 : i32
    %c0_i32_1 = arith.constant 0 : i32
    %c0_i32_2 = arith.constant 0 : i32
    %c0_i32_3 = arith.constant 0 : i32
    return %c0_i32, %c0_i32_0, %c0_i32_1, %c0_i32_2 : i32, i32, i32, i32
  }
  func.func @transform_3(%arg0: i32, %arg1: i32) -> (i32, i32, i32, i32) {
    %c0_i32 = arith.constant 0 : i32
    %c0_i32_0 = arith.constant 0 : i32
    %c0_i32_1 = arith.constant 0 : i32
    return %arg0, %arg1, %c0_i32, %c0_i32_0 : i32, i32, i32, i32
  }
}

module attributes {stable_mosaic.version = 11 : i64} {
  func.func @_bn_relu_kernel(%arg0: i32, %arg1: i32, %arg2: memref<1x16x16x128xbf16, #tpu.memory_space<vmem>>, %arg3: memref<1x1x1x128xf32, #tpu.memory_space<vmem>>, %arg4: memref<1x1x1x128xf32, #tpu.memory_space<vmem>>, %arg5: memref<1x16x16x128xf32, #tpu.memory_space<vmem>>) attributes {dimension_semantics = [#tpu.dimension_semantics<parallel>, #tpu.dimension_semantics<parallel>], iteration_bounds = array<i64: 2, 1>, scalar_prefetch = 0 : i64, scratch_operands = 0 : i64, tpu.core_type = #tpu.core_type<tc>, window_params = [{transform_indices = @transform_0, window_bounds = array<i64: 1, 16, 16, 128>}, {pipeline_mode = #tpu.pipeline_mode<synchronous>, transform_indices = @transform_1, window_bounds = array<i64: 1, 1, 1, 128>}, {pipeline_mode = #tpu.pipeline_mode<synchronous>, transform_indices = @transform_2, window_bounds = array<i64: 1, 1, 1, 128>}, {transform_indices = @transform_3, window_bounds = array<i64: 1, 16, 16, 128>}]} {
    %c0 = arith.constant 0 : index
    %c0_0 = arith.constant 0 : index
    %c0_1 = arith.constant 0 : index
    %c0_2 = arith.constant 0 : index
    %0 = vector.load %arg2[%c0, %c0_0, %c0_1, %c0_2] : memref<1x16x16x128xbf16, #tpu.memory_space<vmem>>, vector<1x16x16x128xbf16>
    %1 = arith.extf %0 : vector<1x16x16x128xbf16> to vector<1x16x16x128xf32>
    %c0_3 = arith.constant 0 : index
    %c0_4 = arith.constant 0 : index
    %c0_5 = arith.constant 0 : index
    %c0_6 = arith.constant 0 : index
    %2 = vector.load %arg3[%c0_3, %c0_4, %c0_5, %c0_6] : memref<1x1x1x128xf32, #tpu.memory_space<vmem>>, vector<1x1x1x128xf32>
    %3 = vector.broadcast %2 : vector<1x1x1x128xf32> to vector<1x16x16x128xf32>
    %4 = arith.mulf %1, %3 : vector<1x16x16x128xf32>
    %c0_7 = arith.constant 0 : index
    %c0_8 = arith.constant 0 : index
    %c0_9 = arith.constant 0 : index
    %c0_10 = arith.constant 0 : index
    %5 = vector.load %arg4[%c0_7, %c0_8, %c0_9, %c0_10] : memref<1x1x1x128xf32, #tpu.memory_space<vmem>>, vector<1x1x1x128xf32>
    %6 = vector.broadcast %5 : vector<1x1x1x128xf32> to vector<1x16x16x128xf32>
    %7 = arith.addf %4, %6 : vector<1x16x16x128xf32>
    %cst = arith.constant 0.000000e+00 : f32
    %8 = vector.broadcast %cst : f32 to vector<1x16x16x128xf32>
    %9 = arith.maximumf %7, %8 : vector<1x16x16x128xf32>
    %c0_11 = arith.constant 0 : index
    %c0_12 = arith.constant 0 : index
    %c0_13 = arith.constant 0 : index
    %c0_14 = arith.constant 0 : index
    %10 = vector.load %arg5[%c0_11, %c0_12, %c0_13, %c0_14] : memref<1x16x16x128xf32, #tpu.memory_space<vmem>>, vector<1x16x16x128xf32>
    tpu.vector_store %arg5[%c0_11, %c0_12, %c0_13, %c0_14], %9 {strides = array<i32>} : memref<1x16x16x128xf32, #tpu.memory_space<vmem>>, vector<1x16x16x128xf32>,
    return
  }
  func.func @transform_0(%arg0: i32, %arg1: i32) -> (i32, i32, i32, i32) {
    %c0_i32 = arith.constant 0 : i32
    %c0_i32_0 = arith.constant 0 : i32
    %c0_i32_1 = arith.constant 0 : i32
    return %arg0, %arg1, %c0_i32, %c0_i32_0 : i32, i32, i32, i32
  }
  func.func @transform_1(%arg0: i32, %arg1: i32) -> (i32, i32, i32, i32) {
    %c0_i32 = arith.constant 0 : i32
    %c0_i32_0 = arith.constant 0 : i32
    %c0_i32_1 = arith.constant 0 : i32
    %c0_i32_2 = arith.constant 0 : i32
    %c0_i32_3 = arith.constant 0 : i32
    return %c0_i32, %c0_i32_0, %c0_i32_1, %c0_i32_2 : i32, i32, i32, i32
  }
  func.func @transform_2(%arg0: i32, %arg1: i32) -> (i32, i32, i32, i32) {
    %c0_i32 = arith.constant 0 : i32
    %c0_i32_0 = arith.constant 0 : i32
    %c0_i32_1 = arith.constant 0 : i32
    %c0_i32_2 = arith.constant 0 : i32
    %c0_i32_3 = arith.constant 0 : i32
    return %c0_i32, %c0_i32_0, %c0_i32_1, %c0_i32_2 : i32, i32, i32, i32
  }
  func.func @transform_3(%arg0: i32, %arg1: i32) -> (i32, i32, i32, i32) {
    %c0_i32 = arith.constant 0 : i32
    %c0_i32_0 = arith.constant 0 : i32
    %c0_i32_1 = arith.constant 0 : i32
    return %arg0, %arg1, %c0_i32, %c0_i32_0 : i32, i32, i32, i32
  }
}

</mosaic_0001>

<bundles_post_ra>
// kernel: upconv_block_forward.5
= control target key start
LH: loop header
LB: loop body
LE: loop exit
PB: predicated region body
PF: predicated region fallthrough
CT: control target
= control target key end

     0   :  { %s1715_s18 = smov 0   ;;  %s1717_s19 = smov 0   ;;  %s2080_s0 = inlined_call_operand.vmem [shape: bf16[2,8,8,128], index: 0, kind: input, shape index: {}]   ;;  %s2081_s1 = inlined_call_operand.vmem [shape: bf16[2,8,2,8,128], index: 1, kind: input, shape index: {}]   ;;  %s2082_s2 = inlined_call_operand.vmem [shape: bf16[2,128,256], index: 2, kind: input, shape index: {}]   ;;  %s2083_s3 = inlined_call_operand.vmem [shape: f32[1,256], index: 3, kind: input, shape index: {}]   ;;  %s2084_s4 = inlined_call_operand.vmem [shape: bf16[128,256], index: 4, kind: input, shape index: {}]   ;;  %s2085_s5 = inlined_call_operand.vmem [shape: bf16[2,8,2,8,256], index: 5, kind: output, shape index: {}]  }
   0x1   :  { %s1719_s20 = smov 0  }
   0x2 LB: > { %s27_s21 = sadd.s32 1, %s1678_s19  ;;  %p1399_p0 = scmp.ge.s32.totalorder %s1682_s20, 1  ;;  %s1682_s20 = sphi %s1719_s20, %s15_s20   ;;  %s1678_s19 = sphi %s1717_s19, %s2087_s19   ;;  %s1674_s18 = sphi %s1715_s18, %s2086_s18  }
   0x3   : > { %p29_p1 = scmp.ge.s32.totalorder %s27_s21, 2  ;;  %p226_p2 = scmp.lt.s32.totalorder %s1682_s20, 3 }
   0x5   : > { %s2089_s21 = smov (%p29_p1, %s27_s21), 0  ;;  %p227_p3 = pnand %p1399_p0, %p226_p2 }
   0x6   : > { %p274_p4 = scmp.lt.s32.totalorder (!%p227_p3), %s1674_s18, 1 }
   0x7   : > { %230 = sbr.rel (%p227_p3) target bundleno = 308 (0x134), region = 40 }
   0xc   : > { %v1576_v0 = vld [vmem:[%s2082_s2 + $0x74] ss:$8 sps:$4 sm:$0xff]   ;;  %v1684_v2 = vmov 0   ;;  %v1580_v3 = vld [vmem:[%s2082_s2 + $0x70] ss:$8 sps:$4 sm:$0xff]   ;;  %s2091_s18 = smov (!%p274_p4, %s1674_s18), 1  ;;  %v332_v61 = vlaneseq }
   0xd   : > { %v1741_v1 = vld [vmem:[%s2084_s4 + $0x74] ss:$8 sps:$4 sm:$0xff]   ;;  %478 = vmatprep.mubr.bf16.mxu0 %v1684_v2  ;;  %679 = vmatprep.mubr.bf16.mxu1 %v1684_v2  ;;  %v1751_v4 = vld [vmem:[%s2084_s4 + $0x70] ss:$8 sps:$4 sm:$0xff]   ;;  %v1582_v5 = vld [vmem:[%s2082_s2 + $0x64] ss:$8 sps:$4 sm:$0xff]  }
   0xe   : > { %446 = vmatprep.subr.bf16.mxu0 %v1576_v0  ;;  %647 = vmatprep.subr.bf16.mxu1 %v1741_v1  ;;  %v1761_v6 = vld [vmem:[%s2084_s4 + $0x64] ss:$8 sps:$4 sm:$0xff]   ;;  %v1586_v7 = vld [vmem:[%s2082_s2 + $0x60] ss:$8 sps:$4 sm:$0xff]   ;;  %v1588_v9 = vld [vmem:[%s2082_s2 + $0x54] ss:$8 sps:$4 sm:$0xff]  }
   0xf   : > { %447 = vmatpush1.bf16.msra.mxu0 %v1580_v3  ;;  %648 = vmatpush1.bf16.msra.mxu1 %v1751_v4  ;;  %v1769_v8 = vld [vmem:[%s2084_s4 + $0x60] ss:$8 sps:$4 sm:$0xff]   ;;  %v1778_v10 = vld [vmem:[%s2084_s4 + $0x54] ss:$8 sps:$4 sm:$0xff]   ;;  %v1592_v11 = vld [vmem:[%s2082_s2 + $0x50] ss:$8 sps:$4 sm:$0xff]  }
  0x10   : > { %448 = vmatprep.subr.bf16.mxu0 %v1582_v5  ;;  %649 = vmatprep.subr.bf16.mxu1 %v1761_v6  ;;  %v1786_v12 = vld [vmem:[%s2084_s4 + $0x50] ss:$8 sps:$4 sm:$0xff]   ;;  %v1594_v13 = vld [vmem:[%s2082_s2 + $0x44] ss:$8 sps:$4 sm:$0xff]   ;;  %v1598_v15 = vld [vmem:[%s2082_s2 + $0x40] ss:$8 sps:$4 sm:$0xff]  }
  0x11   : > { %v1796_v14 = vld [vmem:[%s2084_s4 + $0x44] ss:$8 sps:$4 sm:$0xff]   ;;  %v1806_v16 = vld [vmem:[%s2084_s4 + $0x40] ss:$8 sps:$4 sm:$0xff]   ;;  %v1600_v17 = vld [vmem:[%s2082_s2 + $0x34] ss:$8 sps:$4 sm:$0xff]  }
  0x12   : > { %v1815_v18 = vld [vmem:[%s2084_s4 + $0x34] ss:$8 sps:$4 sm:$0xff]   ;;  %v1604_v19 = vld [vmem:[%s2082_s2 + $0x30] ss:$8 sps:$4 sm:$0xff]   ;;  %v1606_v21 = vld [vmem:[%s2082_s2 + $0x24] ss:$8 sps:$4 sm:$0xff]  }
  0x13   : > { %449 = vmatpush1.bf16.msra.mxu0 %v1586_v7  ;;  %650 = vmatpush1.bf16.msra.mxu1 %v1769_v8  ;;  %v1826_v20 = vld [vmem:[%s2084_s4 + $0x30] ss:$8 sps:$4 sm:$0xff]   ;;  %v1836_v22 = vld [vmem:[%s2084_s4 + $0x24] ss:$8 sps:$4 sm:$0xff]   ;;  %s1532_s24 = sshll.u32 %s2091_s18, 5  ;;  %s1533_s25 = sshll.u32 %s2091_s18, 6 }
  0x14   : > { %450 = vmatprep.subr.bf16.mxu0 %v1588_v9  ;;  %651 = vmatprep.subr.bf16.mxu1 %v1778_v10  ;;  %v1610_v23 = vld [vmem:[%s2082_s2 + $0x20] ss:$8 sps:$4 sm:$0xff]   ;;  %v1612_v25 = vld [vmem:[%s2082_s2 + $0x14] ss:$8 sps:$4 sm:$0xff]   ;;  %s1855_s9 = scalar_lea.vmem %s2080_s0, %s1532_s24  ;;  %s1866_s14 = scalar_lea.vmem %s2081_s1, %s1533_s25  ;;  %v1616_v27 = vld [vmem:[%s2082_s2 + $0x10] ss:$8 sps:$4 sm:$0xff]  }
  0x15   : > { %v1847_v24 = vld [vmem:[%s2084_s4 + $0x20] ss:$8 sps:$4 sm:$0xff]   ;;  %v1861_v26 = vld [vmem:[%s2084_s4 + $0x14] ss:$8 sps:$4 sm:$0xff]   ;;  %v1875_v28 = vld [vmem:[%s2084_s4 + $0x10] ss:$8 sps:$4 sm:$0xff]  }
  0x16   : > { %v1618_v29 = vld [vmem:[%s2082_s2 + $0x4] ss:$8 sps:$4 sm:$0xff]   ;;  %v1622_v31 = vld [vmem:[%s2082_s2] ss:$8 sps:$4 sm:$0xff]   ;;  %v1628_v33 = vld [vmem:[%s2082_s2 + $0xf4] ss:$8 sps:$4 sm:$0xff]  }
  0x17   : > { %451 = vmatpush1.bf16.msra.mxu0 %v1592_v11  ;;  %652 = vmatpush1.bf16.msra.mxu1 %v1786_v12  ;;  %v1884_v30 = vld [vmem:[%s2084_s4 + $0x4] ss:$8 sps:$4 sm:$0xff]   ;;  %v1893_v32 = vld [vmem:[%s2084_s4] ss:$8 sps:$4 sm:$0xff]   ;;  %v1626_v36 = vld [vmem:[%s2082_s2 + $0xf0] ss:$8 sps:$4 sm:$0xff]  }
  0x18   : > { %452 = vmatprep.subr.bf16.mxu0 %v1594_v13  ;;  %653 = vmatprep.subr.bf16.mxu1 %v1796_v14  ;;  %v1900_v34 = vld [vmem:[%s1855_s9] sm:$0xff]   ;;  %v1636_v39 = vld [vmem:[%s2082_s2 + $0xd4] ss:$8 sps:$4 sm:$0xff]   ;;  %v1632_v40 = vld [vmem:[%s1855_s9 + $0x8] sm:$0xff]   ;;  %v1991_v62 = vshrl.u32 %v332_v61, 7 }
  0x19   : > { %v1625_v35 = vld [vmem:[%s1866_s14] ss:$8 sps:$4 sm:$0xff]   ;;  %v1631_v37 = vld [vmem:[%s2082_s2 + $0xe4] ss:$8 sps:$4 sm:$0xff]   ;;  %v1633_v41 = vld [vmem:[%s1866_s14 + $0x10] ss:$8 sps:$4 sm:$0xff]  }
  0x1a   : > { %v1629_v38 = vld [vmem:[%s2082_s2 + $0xe0] ss:$8 sps:$4 sm:$0xff]   ;;  %v1634_v42 = vld [vmem:[%s2082_s2 + $0xd0] ss:$8 sps:$4 sm:$0xff]   ;;  %v1639_v43 = vld [vmem:[%s2082_s2 + $0xc4] ss:$8 sps:$4 sm:$0xff]  }
  0x1b   : > { %453 = vmatpush1.bf16.msra.mxu0 %v1598_v15  ;;  %654 = vmatpush1.bf16.msra.mxu1 %v1806_v16  ;;  %v1637_v44 = vld [vmem:[%s2082_s2 + $0xc0] ss:$8 sps:$4 sm:$0xff]   ;;  %v1644_v45 = vld [vmem:[%s2082_s2 + $0xb4] ss:$8 sps:$4 sm:$0xff]   ;;  %v1642_v48 = vld [vmem:[%s2082_s2 + $0xb0] ss:$8 sps:$4 sm:$0xff]  }
  0x1c   : > { %454 = vmatprep.subr.bf16.mxu0 %v1600_v17  ;;  %655 = vmatprep.subr.bf16.mxu1 %v1815_v18  ;;  %v1640_v46 = vld [vmem:[%s1855_s9 + $0x10] sm:$0xff]   ;;  %v1641_v47 = vld [vmem:[%s1866_s14 + $0x20] ss:$8 sps:$4 sm:$0xff]   ;;  %v1647_v49 = vld [vmem:[%s2082_s2 + $0xa4] ss:$8 sps:$4 sm:$0xff]   ;;  %v334_v63 = vsub.s32 0, %v1991_v62 }
  0x1d   : > { %v1645_v50 = vld [vmem:[%s2082_s2 + $0xa0] ss:$8 sps:$4 sm:$0xff]   ;;  %v1652_v51 = vld [vmem:[%s2082_s2 + $0x94] ss:$8 sps:$4 sm:$0xff]   ;;  %v1649_v53 = vld [vmem:[%s1866_s14 + $0x30] ss:$8 sps:$4 sm:$0xff]  }
  0x1e   : > { %v1648_v52 = vld [vmem:[%s1855_s9 + $0x18] sm:$0xff]   ;;  %v1655_v55 = vld [vmem:[%s2082_s2 + $0x84] ss:$8 sps:$4 sm:$0xff]   ;;  %v1653_v56 = vld [vmem:[%s2082_s2 + $0x80] ss:$8 sps:$4 sm:$0xff]  }
  0x1f   : > { %455 = vmatpush1.bf16.msra.mxu0 %v1604_v19  ;;  %656 = vmatpush1.bf16.msra.mxu1 %v1826_v20  ;;  %v1650_v54 = vld [vmem:[%s2082_s2 + $0x90] ss:$8 sps:$4 sm:$0xff]   ;;  %v1656_v57 = vld [vmem:[%s1866_s14 + $0x4] ss:$8 sps:$4 sm:$0xff]   ;;  %v1657_v58 = vld [vmem:[%s1866_s14 + $0x14] ss:$8 sps:$4 sm:$0xff]  }
  0x20   : > { %456 = vmatprep.subr.bf16.mxu0 %v1606_v21  ;;  %657 = vmatprep.subr.bf16.mxu1 %v1836_v22  ;;  %v1658_v59 = vld [vmem:[%s1866_s14 + $0x24] ss:$8 sps:$4 sm:$0xff]   ;;  %v1659_v60 = vld [vmem:[%s1866_s14 + $0x34] ss:$8 sps:$4 sm:$0xff]   ;;  %v330_v0 = vld [vmem:[%s2083_s3] sm:$0x3] }
  0x21   : > { %v2000_v3 = vrot.slane %v330_v0, %v334_v63  ;;  %s1534_s14 = sshll.u32 %s2091_s18, 7 }
  0x22   : > { %s2013_s28 = scalar_lea.vmem %s2085_s5, %s1534_s14 }
  0x23   : > { %457 = vmatpush1.bf16.msra.mxu0 %v1610_v23  ;;  %658 = vmatpush1.bf16.msra.mxu1 %v1847_v24 }
  0x24   : > { %458 = vmatprep.subr.bf16.mxu0 %v1612_v25  ;;  %659 = vmatprep.subr.bf16.mxu1 %v1861_v26 }
  0x27   : > { %459 = vmatpush1.bf16.msra.mxu0 %v1616_v27  ;;  %660 = vmatpush1.bf16.msra.mxu1 %v1875_v28 }
  0x28   : > { %460 = vmatprep.subr.bf16.mxu0 %v1618_v29  ;;  %661 = vmatprep.subr.bf16.mxu1 %v1884_v30 }
  0x2b   : > { %461 = vmatpush1.bf16.msra.mxu0 %v1622_v31  ;;  %662 = vmatpush1.bf16.msra.mxu1 %v1893_v32 }
  0x2c   : > { %917 = vmatprep.subr.bf16.mxu0 %v1628_v33  ;;  %1119 = vmatprep.subr.bf16.mxu1 %v1741_v1  ;;  %v338_v1 = vsub.s32 1, %v1991_v62 }
  0x2e   : > { %479 = vmatmul.mubr.bf16.vlgmr.msra.gmra.mxu0 %v1900_v34  ;;  %680 = vmatmul.mubr.bf16.vlgmr.msra.gmra.mxu1 %v1625_v35 }
  0x2f   : > { %918 = vmatpush1.bf16.msra.mxu0 %v1626_v36  ;;  %1120 = vmatpush1.bf16.msra.mxu1 %v1751_v4 }
  0x30   : > { %919 = vmatprep.subr.bf16.mxu0 %v1631_v37  ;;  %1121 = vmatprep.subr.bf16.mxu1 %v1761_v6 }
  0x31   : > { %488 = vmatprep.mubr.bf16.mxu0 %v1684_v2  ;;  %689 = vmatprep.mubr.bf16.mxu1 %v1684_v2 }
  0x33   : > { %920 = vmatpush1.bf16.msra.mxu0 %v1629_v38  ;;  %1122 = vmatpush1.bf16.msra.mxu1 %v1769_v8 }
  0x34   : > { %921 = vmatprep.subr.bf16.mxu0 %v1636_v39  ;;  %1123 = vmatprep.subr.bf16.mxu1 %v1778_v10 }
  0x36   : > { %489 = vmatmul.mubr.bf16.gmra.mxu0 %v1632_v40  ;;  %690 = vmatmul.mubr.bf16.gmra.mxu1 %v1633_v41 }
  0x37   : > { %922 = vmatpush1.bf16.msra.mxu0 %v1634_v42  ;;  %1124 = vmatpush1.bf16.msra.mxu1 %v1786_v12 }
  0x38   : > { %923 = vmatprep.subr.bf16.mxu0 %v1639_v43  ;;  %1125 = vmatprep.subr.bf16.mxu1 %v1796_v14 }
  0x39   : > { %498 = vmatprep.mubr.bf16.mxu0 %v1684_v2  ;;  %699 = vmatprep.mubr.bf16.mxu1 %v1684_v2 }
  0x3b   : > { %924 = vmatpush1.bf16.msra.mxu0 %v1637_v44  ;;  %1126 = vmatpush1.bf16.msra.mxu1 %v1806_v16 }
  0x3c   : > { %925 = vmatprep.subr.bf16.mxu0 %v1644_v45  ;;  %1127 = vmatprep.subr.bf16.mxu1 %v1815_v18 }
  0x3e   : > { %499 = vmatmul.mubr.bf16.gmra.mxu0 %v1640_v46  ;;  %700 = vmatmul.mubr.bf16.gmra.mxu1 %v1641_v47 }
  0x3f   : > { %926 = vmatpush1.bf16.msra.mxu0 %v1642_v48  ;;  %1128 = vmatpush1.bf16.msra.mxu1 %v1826_v20 }
  0x40   : > { %927 = vmatprep.subr.bf16.mxu0 %v1647_v49  ;;  %1129 = vmatprep.subr.bf16.mxu1 %v1836_v22 }
  0x41   : > { %508 = vmatprep.mubr.bf16.mxu0 %v1684_v2  ;;  %709 = vmatprep.mubr.bf16.mxu1 %v1684_v2 }
  0x43   : > { %928 = vmatpush1.bf16.msra.mxu0 %v1645_v50  ;;  %1130 = vmatpush1.bf16.msra.mxu1 %v1847_v24 }
  0x44   : > { %929 = vmatprep.subr.bf16.mxu0 %v1652_v51  ;;  %1131 = vmatprep.subr.bf16.mxu1 %v1861_v26 }
  0x46   : > { %509 = vmatmul.mubr.bf16.gmra.mxu0 %v1648_v52  ;;  %710 = vmatmul.mubr.bf16.gmra.mxu1 %v1649_v53 }
  0x47   : > { %930 = vmatpush1.bf16.msra.mxu0 %v1650_v54  ;;  %1132 = vmatpush1.bf16.msra.mxu1 %v1875_v28 }
  0x48   : > { %931 = vmatprep.subr.bf16.mxu0 %v1655_v55  ;;  %1133 = vmatprep.subr.bf16.mxu1 %v1884_v30 }
  0x49   : > { %949 = vmatprep.mubr.bf16.mxu0 %v1684_v2  ;;  %1151 = vmatprep.mubr.bf16.mxu1 %v1684_v2 }
  0x4b   : > { %932 = vmatpush1.bf16.msra.mxu0 %v1653_v56  ;;  %1134 = vmatpush1.bf16.msra.mxu1 %v1893_v32 }
  0x4e   : > { %950 = vmatmul.mubr.bf16.vlgmr.msra.gmra.mxu0 %v1900_v34  ;;  %1152 = vmatmul.mubr.bf16.vlgmr.msra.gmra.mxu1 %v1656_v57 }
  0x4f   : > { %959 = vmatprep.mubr.bf16.mxu0 %v1684_v2  ;;  %1161 = vmatprep.mubr.bf16.mxu1 %v1684_v2 }
  0x56   : > { %960 = vmatmul.mubr.bf16.gmra.mxu0 %v1632_v40  ;;  %1162 = vmatmul.mubr.bf16.gmra.mxu1 %v1657_v58 }
  0x57   : > { %969 = vmatprep.mubr.bf16.mxu0 %v1684_v2  ;;  %1171 = vmatprep.mubr.bf16.mxu1 %v1684_v2 }
  0x5e   : > { %970 = vmatmul.mubr.bf16.gmra.mxu0 %v1640_v46  ;;  %1172 = vmatmul.mubr.bf16.gmra.mxu1 %v1658_v59 }
  0x5f   : > { %979 = vmatprep.mubr.bf16.mxu0 %v1684_v2  ;;  %1181 = vmatprep.mubr.bf16.mxu1 %v1684_v2  ;;  %v2004_v2 = vrot.slane %v330_v0, %v338_v1  ;;  %v825_v0 = vld [vmem:[%s2083_s3] sm:$0x3] }
  0x66   : > { %980 = vmatmul.mubr.bf16.gmra.mxu0 %v1648_v52  ;;  %1182 = vmatmul.mubr.bf16.gmra.mxu1 %v1659_v60 }
  0xee   : > { %v480_v4 = vpop.f32.mrf.mxu0  ;;  %v681_v5 = vpop.f32.mrf.mxu1 }
  0xef   : > { %v481_v6 = vadd.f32 %v480_v4, %v2000_v3 }
  0xf0   : > { %v482_v7 = vpop.f32.mrf.mxu0  ;;  %v683_v8 = vpop.f32.mrf.mxu1 }
  0xf1   : > { %v483_v9 = vadd.f32 %v482_v7, %v2004_v2  ;;  %v720_v12 = vadd.f32 %v681_v5, %v481_v6 }
  0xf2   : > { %v484_v10 = vpop.f32.mrf.mxu0  ;;  %v685_v11 = vpop.f32.mrf.mxu1 }
  0xf3   : > { %v721_v13 = vadd.f32 %v683_v8, %v483_v9  ;;  %v485_v14 = vadd.f32 %v484_v10, %v2000_v3 }
  0xf4   : > { %v486_v15 = vpop.f32.mrf.mxu0  ;;  %v687_v16 = vpop.f32.mrf.mxu1 }
  0xf5   : > { %v1535_v17 = vpack.c.bf16 %v721_v13, %v720_v12  ;;  %v487_v18 = vadd.f32 %v486_v15, %v2004_v2  ;;  %v722_v21 = vadd.f32 %v685_v11, %v485_v14  ;;  %v2038_v11 = vrot.slane %v825_v0, %v334_v63 }
  0xf6   : > { %v490_v19 = vpop.f32.mrf.mxu0  ;;  %v691_v20 = vpop.f32.mrf.mxu1 }
  0xf7   : > { %800 = vst [vmem:[%s2013_s28] sm:$0xff] %v1535_v17  ;;  %v723_v22 = vadd.f32 %v687_v16, %v487_v18  ;;  %v491_v23 = vadd.f32 %v490_v19, %v2000_v3  ;;  %v2043_v16 = vrot.slane %v825_v0, %v338_v1 }
  0xf8   : > { %v492_v24 = vpop.f32.mrf.mxu0  ;;  %v693_v25 = vpop.f32.mrf.mxu1 }
  0xf9   : > { %v1536_v26 = vpack.c.bf16 %v723_v22, %v722_v21  ;;  %v493_v27 = vadd.f32 %v492_v24, %v2004_v2  ;;  %v724_v30 = vadd.f32 %v691_v20, %v491_v23 }
  0xfa   : > { %v494_v28 = vpop.f32.mrf.mxu0  ;;  %v695_v29 = vpop.f32.mrf.mxu1 }
  0xfb   : > { %801 = vst [vmem:[%s2013_s28 + $0x10] sm:$0xff] %v1536_v26  ;;  %v725_v31 = vadd.f32 %v693_v25, %v493_v27  ;;  %v495_v32 = vadd.f32 %v494_v28, %v2000_v3 }
  0xfc   : > { %v496_v33 = vpop.f32.mrf.mxu0  ;;  %v697_v34 = vpop.f32.mrf.mxu1 }
  0xfd   : > { %v1537_v35 = vpack.c.bf16 %v725_v31, %v724_v30  ;;  %v497_v36 = vadd.f32 %v496_v33, %v2004_v2  ;;  %v726_v39 = vadd.f32 %v695_v29, %v495_v32 }
  0xfe   : > { %v500_v37 = vpop.f32.mrf.mxu0  ;;  %v701_v38 = vpop.f32.mrf.mxu1 }
  0xff   : > { %802 = vst [vmem:[%s2013_s28 + $0x20] sm:$0xff] %v1537_v35  ;;  %v727_v40 = vadd.f32 %v697_v34, %v497_v36  ;;  %v501_v41 = vadd.f32 %v500_v37, %v2000_v3 }
 0x100   : > { %v502_v42 = vpop.f32.mrf.mxu0  ;;  %v703_v43 = vpop.f32.mrf.mxu1 }
 0x101   : > { %v1538_v44 = vpack.c.bf16 %v727_v40, %v726_v39  ;;  %v503_v45 = vadd.f32 %v502_v42, %v2004_v2  ;;  %v728_v48 = vadd.f32 %v701_v38, %v501_v41 }
 0x102   : > { %v504_v46 = vpop.f32.mrf.mxu0  ;;  %v705_v47 = vpop.f32.mrf.mxu1 }
 0x103   : > { %803 = vst [vmem:[%s2013_s28 + $0x30] sm:$0xff] %v1538_v44  ;;  %v729_v49 = vadd.f32 %v703_v43, %v503_v45  ;;  %v505_v50 = vadd.f32 %v504_v46, %v2000_v3 }
 0x104   : > { %v506_v51 = vpop.f32.mrf.mxu0  ;;  %v707_v52 = vpop.f32.mrf.mxu1 }
 0x105   : > { %v1539_v53 = vpack.c.bf16 %v729_v49, %v728_v48  ;;  %v507_v54 = vadd.f32 %v506_v51, %v2004_v2  ;;  %v730_v57 = vadd.f32 %v705_v47, %v505_v50 }
 0x106   : > { %v510_v55 = vpop.f32.mrf.mxu0  ;;  %v711_v56 = vpop.f32.mrf.mxu1 }
 0x107   : > { %804 = vst [vmem:[%s2013_s28 + $0x40] sm:$0xff] %v1539_v53  ;;  %v731_v58 = vadd.f32 %v707_v52, %v507_v54  ;;  %v511_v59 = vadd.f32 %v510_v55, %v2000_v3 }
 0x108   : > { %v512_v60 = vpop.f32.mrf.mxu0  ;;  %v713_v61 = vpop.f32.mrf.mxu1 }
 0x109   : > { %v1540_v4 = vpack.c.bf16 %v731_v58, %v730_v57  ;;  %v513_v5 = vadd.f32 %v512_v60, %v2004_v2  ;;  %v732_v8 = vadd.f32 %v711_v56, %v511_v59 }
 0x10a   : > { %v514_v6 = vpop.f32.mrf.mxu0  ;;  %v715_v7 = vpop.f32.mrf.mxu1 }
 0x10b   : > { %805 = vst [vmem:[%s2013_s28 + $0x50] sm:$0xff] %v1540_v4  ;;  %v733_v9 = vadd.f32 %v713_v61, %v513_v5  ;;  %v515_v10 = vadd.f32 %v514_v6, %v2000_v3 }
 0x10c   : > { %v516_v12 = vpop.f32.mrf.mxu0  ;;  %v717_v13 = vpop.f32.mrf.mxu1 }
 0x10d   : > { %v1541_v14 = vpack.c.bf16 %v733_v9, %v732_v8  ;;  %v517_v15 = vadd.f32 %v516_v12, %v2004_v2  ;;  %v734_v19 = vadd.f32 %v715_v7, %v515_v10 }
 0x10e   : > { %v951_v17 = vpop.f32.mrf.mxu0  ;;  %v1153_v18 = vpop.f32.mrf.mxu1 }
 0x10f   : > { %806 = vst [vmem:[%s2013_s28 + $0x60] sm:$0xff] %v1541_v14  ;;  %v735_v20 = vadd.f32 %v717_v13, %v517_v15  ;;  %v952_v3 = vadd.f32 %v951_v17, %v2038_v11 }
 0x110   : > { %v953_v21 = vpop.f32.mrf.mxu0  ;;  %v1155_v63 = vpop.f32.mrf.mxu1 }
 0x111   : > { %v1542_v22 = vpack.c.bf16 %v735_v20, %v734_v19  ;;  %v954_v23 = vadd.f32 %v953_v21, %v2043_v16  ;;  %v1192_v2 = vadd.f32 %v1153_v18, %v952_v3 }
 0x112   : > { %v955_v24 = vpop.f32.mrf.mxu0  ;;  %v1157_v25 = vpop.f32.mrf.mxu1 }
 0x113   : > { %807 = vst [vmem:[%s2013_s28 + $0x70] sm:$0xff] %v1542_v22  ;;  %v1193_v62 = vadd.f32 %v1155_v63, %v954_v23  ;;  %v956_v1 = vadd.f32 %v955_v24, %v2038_v11 }
 0x114   : > { %v957_v26 = vpop.f32.mrf.mxu0  ;;  %v1159_v27 = vpop.f32.mrf.mxu1 }
 0x115   : > { %v1543_v28 = vpack.c.bf16 %v1193_v62, %v1192_v2  ;;  %v958_v29 = vadd.f32 %v957_v26, %v2043_v16  ;;  %v1194_v32 = vadd.f32 %v1157_v25, %v956_v1 }
 0x116   : > { %v961_v30 = vpop.f32.mrf.mxu0  ;;  %v1163_v31 = vpop.f32.mrf.mxu1 }
 0x117   : > { %1522 = vst [vmem:[%s2013_s28 + $0x8] sm:$0xff] %v1543_v28  ;;  %v1195_v33 = vadd.f32 %v1159_v27, %v958_v29  ;;  %v962_v34 = vadd.f32 %v961_v30, %v2038_v11 }
 0x118   : > { %v963_v35 = vpop.f32.mrf.mxu0  ;;  %v1165_v36 = vpop.f32.mrf.mxu1 }
 0x119   : > { %v1544_v37 = vpack.c.bf16 %v1195_v33, %v1194_v32  ;;  %v964_v38 = vadd.f32 %v963_v35, %v2043_v16  ;;  %v1196_v41 = vadd.f32 %v1163_v31, %v962_v34 }
 0x11a   : > { %v965_v39 = vpop.f32.mrf.mxu0  ;;  %v1167_v40 = vpop.f32.mrf.mxu1 }
 0x11b   : > { %1523 = vst [vmem:[%s2013_s28 + $0x18] sm:$0xff] %v1544_v37  ;;  %v1197_v42 = vadd.f32 %v1165_v36, %v964_v38  ;;  %v966_v43 = vadd.f32 %v965_v39, %v2038_v11 }
 0x11c   : > { %v967_v44 = vpop.f32.mrf.mxu0  ;;  %v1169_v45 = vpop.f32.mrf.mxu1 }
 0x11d   : > { %v1545_v46 = vpack.c.bf16 %v1197_v42, %v1196_v41  ;;  %v968_v47 = vadd.f32 %v967_v44, %v2043_v16  ;;  %v1198_v50 = vadd.f32 %v1167_v40, %v966_v43 }
 0x11e   : > { %v971_v48 = vpop.f32.mrf.mxu0  ;;  %v1173_v49 = vpop.f32.mrf.mxu1 }
 0x11f   : > { %1524 = vst [vmem:[%s2013_s28 + $0x28] sm:$0xff] %v1545_v46  ;;  %v1199_v51 = vadd.f32 %v1169_v45, %v968_v47  ;;  %v972_v52 = vadd.f32 %v971_v48, %v2038_v11 }
 0x120   : > { %v973_v53 = vpop.f32.mrf.mxu0  ;;  %v1175_v54 = vpop.f32.mrf.mxu1 }
 0x121   : > { %v1546_v55 = vpack.c.bf16 %v1199_v51, %v1198_v50  ;;  %v974_v56 = vadd.f32 %v973_v53, %v2043_v16  ;;  %v1200_v59 = vadd.f32 %v1173_v49, %v972_v52 }
 0x122   : > { %v975_v57 = vpop.f32.mrf.mxu0  ;;  %v1177_v58 = vpop.f32.mrf.mxu1 }
 0x123   : > { %1525 = vst [vmem:[%s2013_s28 + $0x38] sm:$0xff] %v1546_v55  ;;  %v1201_v60 = vadd.f32 %v1175_v54, %v974_v56  ;;  %v976_v61 = vadd.f32 %v975_v57, %v2038_v11 }
 0x124   : > { %v977_v0 = vpop.f32.mrf.mxu0  ;;  %v1179_v4 = vpop.f32.mrf.mxu1 }
 0x125   : > { %v1547_v5 = vpack.c.bf16 %v1201_v60, %v1200_v59  ;;  %v978_v6 = vadd.f32 %v977_v0, %v2043_v16  ;;  %v1202_v9 = vadd.f32 %v1177_v58, %v976_v61 }
 0x126   : > { %v981_v7 = vpop.f32.mrf.mxu0  ;;  %v1183_v8 = vpop.f32.mrf.mxu1 }
 0x127   : > { %1526 = vst [vmem:[%s2013_s28 + $0x48] sm:$0xff] %v1547_v5  ;;  %v1203_v10 = vadd.f32 %v1179_v4, %v978_v6  ;;  %v982_v12 = vadd.f32 %v981_v7, %v2038_v11 }
 0x128   : > { %v983_v13 = vpop.f32.mrf.mxu0  ;;  %v1185_v14 = vpop.f32.mrf.mxu1 }
 0x129   : > { %v1548_v15 = vpack.c.bf16 %v1203_v10, %v1202_v9  ;;  %v984_v17 = vadd.f32 %v983_v13, %v2043_v16  ;;  %v1204_v20 = vadd.f32 %v1183_v8, %v982_v12 }
 0x12a   : > { %v985_v18 = vpop.f32.mrf.mxu0  ;;  %v1187_v19 = vpop.f32.mrf.mxu1 }
 0x12b   : > { %1527 = vst [vmem:[%s2013_s28 + $0x58] sm:$0xff] %v1548_v15  ;;  %v1205_v3 = vadd.f32 %v1185_v14, %v984_v17  ;;  %v986_v21 = vadd.f32 %v985_v18, %v2038_v11 }
 0x12c   : > { %v987_v63 = vpop.f32.mrf.mxu0  ;;  %v1189_v24 = vpop.f32.mrf.mxu1 }
 0x12d   : > { %v1549_v22 = vpack.c.bf16 %v1205_v3, %v1204_v20  ;;  %v988_v23 = vadd.f32 %v987_v63, %v2043_v16  ;;  %v1206_v25 = vadd.f32 %v1187_v19, %v986_v21 }
 0x12f   : > { %1528 = vst [vmem:[%s2013_s28 + $0x68] sm:$0xff] %v1549_v22  ;;  %v1207_v2 = vadd.f32 %v1189_v24, %v988_v23 }
 0x131   : > { %v1550_v62 = vpack.c.bf16 %v1207_v2, %v1206_v25 }
 0x133   : > { %1529 = vst [vmem:[%s2013_s28 + $0x78] sm:$0xff] %v1550_v62 }
 0x134 PF: > { %s15_s20 = sadd.s32 1, %s1682_s20   ;;  %s2086_s18 = smov %s1678_s19 }
 0x135   : > { %p12_p5 = scmp.ge.s32.totalorder %s15_s20, 4   ;;  %s2087_s19 = smov %s2089_s21 }
 0x137   :  { %14 = sbr.rel (!%p12_p5) target bundleno = 2 (0x2), region = 76 }

// kernel: upconv_block_forward.7
= control target key start
LH: loop header
LB: loop body
LE: loop exit
PB: predicated region body
PF: predicated region fallthrough
CT: control target
= control target key end

     0   :  { %s966_s12 = smov 0   ;;  %s968_s13 = smov 0   ;;  %s1116_s0 = inlined_call_operand.vmem [shape: bf16[2,16,16,128], index: 0, kind: input, shape index: {}]   ;;  %s1117_s1 = inlined_call_operand.vmem [shape: f32[1,1,1,128], index: 1, kind: input, shape index: {}]   ;;  %s1118_s2 = inlined_call_operand.vmem [shape: f32[1,1,1,128], index: 2, kind: input, shape index: {}]   ;;  %s1119_s3 = inlined_call_operand.vmem [shape: bf16[2,16,16,128], index: 3, kind: output, shape index: {}]  }
   0x1   :  { %s970_s14 = smov 0  }
   0x2 LB: > { %s25_s15 = sadd.s32 1, %s940_s13  ;;  %p649_p0 = scmp.ge.s32.totalorder %s944_s14, 1  ;;  %s944_s14 = sphi %s970_s14, %s13_s14   ;;  %s940_s13 = sphi %s968_s13, %s1121_s13   ;;  %s936_s12 = sphi %s966_s12, %s1120_s12  }
   0x3   : > { %p27_p1 = scmp.ge.s32.totalorder %s25_s15, 2  ;;  %p159_p2 = scmp.lt.s32.totalorder %s944_s14, 3 }
   0x5   : > { %s1123_s15 = smov (%p27_p1, %s25_s15), 0  ;;  %p160_p3 = pnand %p649_p0, %p159_p2 }
   0x6   : > { %p194_p4 = scmp.lt.s32.totalorder (!%p160_p3), %s936_s12, 1 }
   0x7   : > { %163 = sbr.rel (%p160_p3) target bundleno = 58 (0x3a), region = 32 }
   0xc   : > { %s1125_s12 = smov (!%p194_p4, %s936_s12), 1  ;;  %v997_v0 = vld [vmem:[%s1117_s1] ss:$0 sm:$0xff] }
   0xd   : > { %s690_s16 = sshll.u32 %s1125_s12, 7  ;;  %v1006_v9 = vld [vmem:[%s1118_s2] ss:$0 sm:$0xff] }
   0xe   : > { %s992_s19 = scalar_lea.vmem %s1116_s0, %s690_s16  ;;  %s1031_s26 = scalar_lea.vmem %s1119_s3, %s690_s16 }
   0xf   : > { %v725_v1 = vld [vmem:[%s992_s19] sm:$0xff]   ;;  %v868_v2 = vld [vmem:[%s992_s19 + $0x8] sm:$0xff]   ;;  %v869_v3 = vld [vmem:[%s992_s19 + $0x10] sm:$0xff]  }
  0x10   : > { %v726_v4 = vunpack.c.l.bf16 %v725_v1  ;;  %v727_v5 = vunpack.c.h.bf16 %v725_v1  ;;  %v730_v6 = vunpack.c.l.bf16 %v868_v2  ;;  %v731_v7 = vunpack.c.h.bf16 %v868_v2  ;;  %v870_v8 = vld [vmem:[%s992_s19 + $0x18] sm:$0xff]   ;;  %v871_v30 = vld [vmem:[%s992_s19 + $0x20] sm:$0xff]   ;;  %v872_v35 = vld [vmem:[%s992_s19 + $0x28] sm:$0xff]  }
  0x11   : > { %v734_v10 = vunpack.c.l.bf16 %v869_v3  ;;  %v735_v11 = vunpack.c.h.bf16 %v869_v3  ;;  %v738_v12 = vunpack.c.l.bf16 %v870_v8  ;;  %v739_v13 = vunpack.c.h.bf16 %v870_v8  ;;  %v873_v40 = vld [vmem:[%s992_s19 + $0x30] sm:$0xff]   ;;  %v874_v45 = vld [vmem:[%s992_s19 + $0x38] sm:$0xff]   ;;  %v875_v3 = vld [vmem:[%s992_s19 + $0x40] sm:$0xff]  }
  0x12   : > { %v286_v14 = vmul.f32 %v726_v4, %v997_v0  ;;  %v287_v15 = vmul.f32 %v727_v5, %v997_v0  ;;  %v288_v16 = vmul.f32 %v730_v6, %v997_v0  ;;  %v289_v17 = vmul.f32 %v731_v7, %v997_v0 }
  0x13   : > { %v290_v18 = vmul.f32 %v734_v10, %v997_v0  ;;  %v291_v19 = vmul.f32 %v735_v11, %v997_v0  ;;  %v292_v20 = vmul.f32 %v738_v12, %v997_v0  ;;  %v293_v21 = vmul.f32 %v739_v13, %v997_v0  ;;  %v876_v13 = vld [vmem:[%s992_s19 + $0x48] sm:$0xff]  }
  0x14   : > { %v325_v22 = vadd.f32 %v1006_v9, %v286_v14  ;;  %v326_v23 = vadd.f32 %v1006_v9, %v287_v15  ;;  %v327_v24 = vadd.f32 %v1006_v9, %v288_v16  ;;  %v328_v25 = vadd.f32 %v1006_v9, %v289_v17 }
  0x15   : > { %v329_v26 = vadd.f32 %v1006_v9, %v290_v18  ;;  %v330_v27 = vadd.f32 %v1006_v9, %v291_v19  ;;  %v331_v28 = vadd.f32 %v1006_v9, %v292_v20  ;;  %v332_v29 = vadd.f32 %v1006_v9, %v293_v21  ;;  %v877_v18 = vld [vmem:[%s992_s19 + $0x50] sm:$0xff]  }
  0x16   : > { %v357_v31 = vmax.f32 %v325_v22, 0.0  ;;  %v358_v32 = vmax.f32 %v326_v23, 0.0  ;;  %v359_v33 = vmax.f32 %v327_v24, 0.0  ;;  %v360_v34 = vmax.f32 %v328_v25, 0.0  ;;  %v878_v23 = vld [vmem:[%s992_s19 + $0x58] sm:$0xff]  }
  0x17   : > { %v361_v36 = vmax.f32 %v329_v26, 0.0  ;;  %v362_v37 = vmax.f32 %v330_v27, 0.0  ;;  %v363_v38 = vmax.f32 %v331_v28, 0.0  ;;  %v364_v39 = vmax.f32 %v332_v29, 0.0 }
  0x18   : > { %v791_v41 = vpack.c.bf16 %v358_v32, %v357_v31  ;;  %v796_v42 = vpack.c.bf16 %v360_v34, %v359_v33  ;;  %v742_v43 = vunpack.c.l.bf16 %v871_v30  ;;  %v743_v44 = vunpack.c.h.bf16 %v871_v30 }
  0x19   : > { %v801_v46 = vpack.c.bf16 %v362_v37, %v361_v36  ;;  %v806_v47 = vpack.c.bf16 %v364_v39, %v363_v38  ;;  %v746_v48 = vunpack.c.l.bf16 %v872_v35  ;;  %v747_v49 = vunpack.c.h.bf16 %v872_v35 }
  0x1a   : > { %792 = vst [vmem:[%s1031_s26] sm:$0xff] %v791_v41   ;;  %883 = vst [vmem:[%s1031_s26 + $0x8] sm:$0xff] %v796_v42   ;;  %v294_v50 = vmul.f32 %v742_v43, %v997_v0  ;;  %v295_v51 = vmul.f32 %v743_v44, %v997_v0  ;;  %v750_v52 = vunpack.c.l.bf16 %v873_v40  ;;  %v751_v53 = vunpack.c.h.bf16 %v873_v40  ;;  %v879_v40 = vld [vmem:[%s992_s19 + $0x60] sm:$0xff]  }
  0x1b   : > { %884 = vst [vmem:[%s1031_s26 + $0x10] sm:$0xff] %v801_v46   ;;  %885 = vst [vmem:[%s1031_s26 + $0x18] sm:$0xff] %v806_v47   ;;  %v296_v54 = vmul.f32 %v746_v48, %v997_v0  ;;  %v297_v55 = vmul.f32 %v747_v49, %v997_v0  ;;  %v754_v56 = vunpack.c.l.bf16 %v874_v45  ;;  %v755_v57 = vunpack.c.h.bf16 %v874_v45 }
  0x1c   : > { %v333_v58 = vadd.f32 %v1006_v9, %v294_v50  ;;  %v334_v59 = vadd.f32 %v1006_v9, %v295_v51  ;;  %v298_v60 = vmul.f32 %v750_v52, %v997_v0  ;;  %v299_v61 = vmul.f32 %v751_v53, %v997_v0  ;;  %v880_v53 = vld [vmem:[%s992_s19 + $0x68] sm:$0xff]  }
  0x1d   : > { %v335_v62 = vadd.f32 %v1006_v9, %v296_v54  ;;  %v336_v63 = vadd.f32 %v1006_v9, %v297_v55  ;;  %v300_v1 = vmul.f32 %v754_v56, %v997_v0  ;;  %v301_v2 = vmul.f32 %v755_v57, %v997_v0 }
  0x1e   : > { %v365_v4 = vmax.f32 %v333_v58, 0.0  ;;  %v366_v5 = vmax.f32 %v334_v59, 0.0  ;;  %v337_v6 = vadd.f32 %v1006_v9, %v298_v60  ;;  %v338_v7 = vadd.f32 %v1006_v9, %v299_v61  ;;  %v881_v58 = vld [vmem:[%s992_s19 + $0x70] sm:$0xff]  }
  0x1f   : > { %v367_v8 = vmax.f32 %v335_v62, 0.0  ;;  %v368_v10 = vmax.f32 %v336_v63, 0.0  ;;  %v339_v11 = vadd.f32 %v1006_v9, %v300_v1  ;;  %v340_v12 = vadd.f32 %v1006_v9, %v301_v2  ;;  %v882_v63 = vld [vmem:[%s992_s19 + $0x78] sm:$0xff]  }
  0x20   : > { %v811_v14 = vpack.c.bf16 %v366_v5, %v365_v4  ;;  %v369_v15 = vmax.f32 %v337_v6, 0.0  ;;  %v370_v16 = vmax.f32 %v338_v7, 0.0  ;;  %v758_v17 = vunpack.c.l.bf16 %v875_v3 }
  0x21   : > { %v816_v19 = vpack.c.bf16 %v368_v10, %v367_v8  ;;  %v371_v20 = vmax.f32 %v339_v11, 0.0  ;;  %v372_v21 = vmax.f32 %v340_v12, 0.0  ;;  %v759_v22 = vunpack.c.h.bf16 %v875_v3 }
  0x22   : > { %886 = vst [vmem:[%s1031_s26 + $0x20] sm:$0xff] %v811_v14   ;;  %v821_v24 = vpack.c.bf16 %v370_v16, %v369_v15  ;;  %v302_v25 = vmul.f32 %v758_v17, %v997_v0  ;;  %v762_v26 = vunpack.c.l.bf16 %v876_v13  ;;  %v763_v27 = vunpack.c.h.bf16 %v876_v13 }
  0x23   : > { %887 = vst [vmem:[%s1031_s26 + $0x28] sm:$0xff] %v816_v19   ;;  %v826_v28 = vpack.c.bf16 %v372_v21, %v371_v20  ;;  %v303_v29 = vmul.f32 %v759_v22, %v997_v0  ;;  %v766_v30 = vunpack.c.l.bf16 %v877_v18  ;;  %v767_v31 = vunpack.c.h.bf16 %v877_v18 }
  0x24   : > { %888 = vst [vmem:[%s1031_s26 + $0x30] sm:$0xff] %v821_v24   ;;  %v341_v32 = vadd.f32 %v1006_v9, %v302_v25  ;;  %v304_v33 = vmul.f32 %v762_v26, %v997_v0  ;;  %v305_v34 = vmul.f32 %v763_v27, %v997_v0  ;;  %v770_v35 = vunpack.c.l.bf16 %v878_v23 }
  0x25   : > { %889 = vst [vmem:[%s1031_s26 + $0x38] sm:$0xff] %v826_v28   ;;  %v342_v36 = vadd.f32 %v1006_v9, %v303_v29  ;;  %v306_v37 = vmul.f32 %v766_v30, %v997_v0  ;;  %v307_v38 = vmul.f32 %v767_v31, %v997_v0  ;;  %v771_v39 = vunpack.c.h.bf16 %v878_v23 }
  0x26   : > { %v373_v41 = vmax.f32 %v341_v32, 0.0  ;;  %v343_v42 = vadd.f32 %v1006_v9, %v304_v33  ;;  %v344_v43 = vadd.f32 %v1006_v9, %v305_v34  ;;  %v308_v44 = vmul.f32 %v770_v35, %v997_v0 }
  0x27   : > { %v374_v45 = vmax.f32 %v342_v36, 0.0  ;;  %v345_v46 = vadd.f32 %v1006_v9, %v306_v37  ;;  %v346_v47 = vadd.f32 %v1006_v9, %v307_v38  ;;  %v309_v48 = vmul.f32 %v771_v39, %v997_v0 }
  0x28   : > { %v375_v49 = vmax.f32 %v343_v42, 0.0  ;;  %v376_v50 = vmax.f32 %v344_v43, 0.0  ;;  %v347_v51 = vadd.f32 %v1006_v9, %v308_v44  ;;  %v774_v52 = vunpack.c.l.bf16 %v879_v40 }
  0x29   : > { %v831_v54 = vpack.c.bf16 %v374_v45, %v373_v41  ;;  %v377_v55 = vmax.f32 %v345_v46, 0.0  ;;  %v378_v56 = vmax.f32 %v346_v47, 0.0  ;;  %v348_v57 = vadd.f32 %v1006_v9, %v309_v48 }
  0x2a   : > { %v836_v59 = vpack.c.bf16 %v376_v50, %v375_v49  ;;  %v379_v60 = vmax.f32 %v347_v51, 0.0  ;;  %v775_v61 = vunpack.c.h.bf16 %v879_v40  ;;  %v310_v62 = vmul.f32 %v774_v52, %v997_v0 }
  0x2b   : > { %890 = vst [vmem:[%s1031_s26 + $0x40] sm:$0xff] %v831_v54   ;;  %v841_v1 = vpack.c.bf16 %v378_v56, %v377_v55  ;;  %v380_v2 = vmax.f32 %v348_v57, 0.0  ;;  %v778_v3 = vunpack.c.l.bf16 %v880_v53  ;;  %v779_v4 = vunpack.c.h.bf16 %v880_v53 }
  0x2c   : > { %891 = vst [vmem:[%s1031_s26 + $0x48] sm:$0xff] %v836_v59   ;;  %v311_v5 = vmul.f32 %v775_v61, %v997_v0  ;;  %v349_v6 = vadd.f32 %v1006_v9, %v310_v62  ;;  %v782_v7 = vunpack.c.l.bf16 %v881_v58  ;;  %v783_v8 = vunpack.c.h.bf16 %v881_v58 }
  0x2d   : > { %892 = vst [vmem:[%s1031_s26 + $0x50] sm:$0xff] %v841_v1   ;;  %v846_v10 = vpack.c.bf16 %v380_v2, %v379_v60  ;;  %v312_v11 = vmul.f32 %v778_v3, %v997_v0  ;;  %v313_v12 = vmul.f32 %v779_v4, %v997_v0  ;;  %v786_v13 = vunpack.c.l.bf16 %v882_v63 }
  0x2e   : > { %v350_v14 = vadd.f32 %v1006_v9, %v311_v5  ;;  %v381_v15 = vmax.f32 %v349_v6, 0.0  ;;  %v314_v16 = vmul.f32 %v782_v7, %v997_v0  ;;  %v315_v17 = vmul.f32 %v783_v8, %v997_v0 }
  0x2f   : > { %893 = vst [vmem:[%s1031_s26 + $0x58] sm:$0xff] %v846_v10   ;;  %v351_v18 = vadd.f32 %v1006_v9, %v312_v11  ;;  %v352_v19 = vadd.f32 %v1006_v9, %v313_v12  ;;  %v787_v20 = vunpack.c.h.bf16 %v882_v63  ;;  %v316_v21 = vmul.f32 %v786_v13, %v997_v0 }
  0x30   : > { %v382_v22 = vmax.f32 %v350_v14, 0.0  ;;  %v353_v23 = vadd.f32 %v1006_v9, %v314_v16  ;;  %v354_v24 = vadd.f32 %v1006_v9, %v315_v17 }
  0x31   : > { %v383_v25 = vmax.f32 %v351_v18, 0.0  ;;  %v384_v26 = vmax.f32 %v352_v19, 0.0  ;;  %v317_v27 = vmul.f32 %v787_v20, %v997_v0  ;;  %v355_v28 = vadd.f32 %v1006_v9, %v316_v21 }
  0x32   : > { %v851_v29 = vpack.c.bf16 %v382_v22, %v381_v15  ;;  %v385_v30 = vmax.f32 %v353_v23, 0.0  ;;  %v386_v31 = vmax.f32 %v354_v24, 0.0 }
  0x33   : > { %v856_v32 = vpack.c.bf16 %v384_v26, %v383_v25  ;;  %v356_v33 = vadd.f32 %v1006_v9, %v317_v27  ;;  %v387_v34 = vmax.f32 %v355_v28, 0.0 }
  0x34   : > { %894 = vst [vmem:[%s1031_s26 + $0x60] sm:$0xff] %v851_v29   ;;  %v861_v35 = vpack.c.bf16 %v386_v31, %v385_v30 }
  0x35   : > { %895 = vst [vmem:[%s1031_s26 + $0x68] sm:$0xff] %v856_v32   ;;  %v388_v36 = vmax.f32 %v356_v33, 0.0 }
  0x36   : > { %896 = vst [vmem:[%s1031_s26 + $0x70] sm:$0xff] %v861_v35  }
  0x37   : > { %v866_v37 = vpack.c.bf16 %v388_v36, %v387_v34 }
  0x39   : > { %897 = vst [vmem:[%s1031_s26 + $0x78] sm:$0xff] %v866_v37  }
  0x3a PF: > { %s13_s14 = sadd.s32 1, %s944_s14   ;;  %s1120_s12 = smov %s940_s13 }
  0x3b   : > { %p10_p5 = scmp.ge.s32.totalorder %s13_s14, 4   ;;  %s1121_s13 = smov %s1123_s15 }
  0x3d   :  { %12 = sbr.rel (!%p10_p5) target bundleno = 2 (0x2), region = 62 }

// kernel: upconv_block_forward.9
= control target key start
LH: loop header
LB: loop body
LE: loop exit
PB: predicated region body
PF: predicated region fallthrough
CT: control target
= control target key end

     0   :  { %s679_s12 = smov 0   ;;  %s681_s13 = smov 0   ;;  %s842_s0 = inlined_call_operand.vmem [shape: bf16[2,16,16,128], index: 0, kind: input, shape index: {}]   ;;  %s843_s1 = inlined_call_operand.vmem [shape: f32[1,1,1,128], index: 1, kind: input, shape index: {}]   ;;  %s844_s2 = inlined_call_operand.vmem [shape: f32[1,1,1,128], index: 2, kind: input, shape index: {}]   ;;  %s845_s3 = inlined_call_operand.vmem [shape: f32[2,16,16,128], index: 3, kind: output, shape index: {}]  }
   0x1   :  { %s683_s14 = smov 0  }
   0x2 LB: > { %s25_s15 = sadd.s32 1, %s653_s13  ;;  %p521_p0 = scmp.ge.s32.totalorder %s657_s14, 1  ;;  %s657_s14 = sphi %s683_s14, %s13_s14   ;;  %s653_s13 = sphi %s681_s13, %s847_s13   ;;  %s649_s12 = sphi %s679_s12, %s846_s12  }
   0x3   : > { %p27_p1 = scmp.ge.s32.totalorder %s25_s15, 2  ;;  %p159_p2 = scmp.lt.s32.totalorder %s657_s14, 3 }
   0x5   : > { %s849_s15 = smov (%p27_p1, %s25_s15), 0  ;;  %p160_p3 = pnand %p521_p0, %p159_p2 }
   0x6   : > { %p194_p4 = scmp.lt.s32.totalorder (!%p160_p3), %s649_s12, 1 }
   0x7   : > { %163 = sbr.rel (%p160_p3) target bundleno = 52 (0x34), region = 32 }
   0xc   : > { %s851_s12 = smov (!%p194_p4, %s649_s12), 1  ;;  %v708_v0 = vld [vmem:[%s843_s1] ss:$0 sm:$0xff] }
   0xd   : > { %s530_s16 = sshll.u32 %s851_s12, 7  ;;  %v717_v9 = vld [vmem:[%s844_s2] ss:$0 sm:$0xff]  ;;  %s531_s24 = sshll.u32 %s851_s12, 8 }
   0xe   : > { %s703_s19 = scalar_lea.vmem %s842_s0, %s530_s16  ;;  %s735_s27 = scalar_lea.vmem %s845_s3, %s531_s24 }
   0xf   : > { %v533_v1 = vld [vmem:[%s703_s19] sm:$0xff]   ;;  %v596_v2 = vld [vmem:[%s703_s19 + $0x8] sm:$0xff]   ;;  %v597_v3 = vld [vmem:[%s703_s19 + $0x10] sm:$0xff]  }
  0x10   : > { %v534_v4 = vunpack.c.l.bf16 %v533_v1  ;;  %v535_v5 = vunpack.c.h.bf16 %v533_v1  ;;  %v538_v6 = vunpack.c.l.bf16 %v596_v2  ;;  %v539_v7 = vunpack.c.h.bf16 %v596_v2  ;;  %v598_v8 = vld [vmem:[%s703_s19 + $0x18] sm:$0xff]   ;;  %v599_v30 = vld [vmem:[%s703_s19 + $0x20] sm:$0xff]   ;;  %v600_v31 = vld [vmem:[%s703_s19 + $0x28] sm:$0xff]  }
  0x11   : > { %v542_v10 = vunpack.c.l.bf16 %v597_v3  ;;  %v543_v11 = vunpack.c.h.bf16 %v597_v3  ;;  %v546_v12 = vunpack.c.l.bf16 %v598_v8  ;;  %v547_v13 = vunpack.c.h.bf16 %v598_v8  ;;  %v601_v36 = vld [vmem:[%s703_s19 + $0x30] sm:$0xff]   ;;  %v602_v37 = vld [vmem:[%s703_s19 + $0x38] sm:$0xff]   ;;  %v603_v3 = vld [vmem:[%s703_s19 + $0x40] sm:$0xff]  }
  0x12   : > { %v286_v14 = vmul.f32 %v534_v4, %v708_v0  ;;  %v287_v15 = vmul.f32 %v535_v5, %v708_v0  ;;  %v288_v16 = vmul.f32 %v538_v6, %v708_v0  ;;  %v289_v17 = vmul.f32 %v539_v7, %v708_v0  ;;  %v604_v4 = vld [vmem:[%s703_s19 + $0x48] sm:$0xff]  }
  0x13   : > { %v290_v18 = vmul.f32 %v542_v10, %v708_v0  ;;  %v291_v19 = vmul.f32 %v543_v11, %v708_v0  ;;  %v292_v20 = vmul.f32 %v546_v12, %v708_v0  ;;  %v293_v21 = vmul.f32 %v547_v13, %v708_v0  ;;  %v605_v10 = vld [vmem:[%s703_s19 + $0x50] sm:$0xff]   ;;  %v606_v11 = vld [vmem:[%s703_s19 + $0x58] sm:$0xff]  }
  0x14   : > { %v325_v22 = vadd.f32 %v717_v9, %v286_v14  ;;  %v326_v23 = vadd.f32 %v717_v9, %v287_v15  ;;  %v327_v24 = vadd.f32 %v717_v9, %v288_v16  ;;  %v328_v25 = vadd.f32 %v717_v9, %v289_v17 }
  0x15   : > { %v329_v26 = vadd.f32 %v717_v9, %v290_v18  ;;  %v330_v27 = vadd.f32 %v717_v9, %v291_v19  ;;  %v331_v28 = vadd.f32 %v717_v9, %v292_v20  ;;  %v332_v29 = vadd.f32 %v717_v9, %v293_v21 }
  0x16   : > { %v357_v32 = vmax.f32 %v325_v22, 0.0  ;;  %v358_v33 = vmax.f32 %v326_v23, 0.0  ;;  %v359_v34 = vmax.f32 %v327_v24, 0.0  ;;  %v360_v35 = vmax.f32 %v328_v25, 0.0 }
  0x17   : > { %v361_v38 = vmax.f32 %v329_v26, 0.0  ;;  %v362_v39 = vmax.f32 %v330_v27, 0.0  ;;  %v363_v40 = vmax.f32 %v331_v28, 0.0  ;;  %v364_v41 = vmax.f32 %v332_v29, 0.0 }
  0x18   : > { %389 = vst [vmem:[%s735_s27] sm:$0xff] %v357_v32  ;;  %390 = vst [vmem:[%s735_s27 + $0x8] sm:$0xff] %v358_v33  ;;  %v550_v42 = vunpack.c.l.bf16 %v599_v30  ;;  %v551_v43 = vunpack.c.h.bf16 %v599_v30  ;;  %v554_v44 = vunpack.c.l.bf16 %v600_v31  ;;  %v555_v45 = vunpack.c.h.bf16 %v600_v31 }
  0x19   : > { %391 = vst [vmem:[%s735_s27 + $0x10] sm:$0xff] %v359_v34  ;;  %392 = vst [vmem:[%s735_s27 + $0x18] sm:$0xff] %v360_v35  ;;  %v558_v46 = vunpack.c.l.bf16 %v601_v36  ;;  %v559_v47 = vunpack.c.h.bf16 %v601_v36  ;;  %v562_v48 = vunpack.c.l.bf16 %v602_v37  ;;  %v563_v49 = vunpack.c.h.bf16 %v602_v37 }
  0x1a   : > { %393 = vst [vmem:[%s735_s27 + $0x20] sm:$0xff] %v361_v38  ;;  %394 = vst [vmem:[%s735_s27 + $0x28] sm:$0xff] %v362_v39  ;;  %v294_v50 = vmul.f32 %v550_v42, %v708_v0  ;;  %v295_v51 = vmul.f32 %v551_v43, %v708_v0  ;;  %v296_v52 = vmul.f32 %v554_v44, %v708_v0  ;;  %v566_v16 = vunpack.c.l.bf16 %v603_v3 }
  0x1b   : > { %395 = vst [vmem:[%s735_s27 + $0x30] sm:$0xff] %v363_v40  ;;  %396 = vst [vmem:[%s735_s27 + $0x38] sm:$0xff] %v364_v41  ;;  %v297_v53 = vmul.f32 %v555_v45, %v708_v0  ;;  %v298_v54 = vmul.f32 %v558_v46, %v708_v0  ;;  %v299_v55 = vmul.f32 %v559_v47, %v708_v0  ;;  %v567_v17 = vunpack.c.h.bf16 %v603_v3  ;;  %v607_v40 = vld [vmem:[%s703_s19 + $0x60] sm:$0xff]   ;;  %v608_v41 = vld [vmem:[%s703_s19 + $0x68] sm:$0xff]  }
  0x1c   : > { %v300_v56 = vmul.f32 %v562_v48, %v708_v0  ;;  %v301_v57 = vmul.f32 %v563_v49, %v708_v0  ;;  %v333_v58 = vadd.f32 %v717_v9, %v294_v50  ;;  %v334_v59 = vadd.f32 %v717_v9, %v295_v51  ;;  %v609_v46 = vld [vmem:[%s703_s19 + $0x70] sm:$0xff]   ;;  %v610_v47 = vld [vmem:[%s703_s19 + $0x78] sm:$0xff]  }
  0x1d   : > { %v335_v60 = vadd.f32 %v717_v9, %v296_v52  ;;  %v336_v61 = vadd.f32 %v717_v9, %v297_v53  ;;  %v337_v62 = vadd.f32 %v717_v9, %v298_v54  ;;  %v338_v63 = vadd.f32 %v717_v9, %v299_v55 }
  0x1e   : > { %v339_v1 = vadd.f32 %v717_v9, %v300_v56  ;;  %v340_v2 = vadd.f32 %v717_v9, %v301_v57  ;;  %v365_v5 = vmax.f32 %v333_v58, 0.0  ;;  %v366_v6 = vmax.f32 %v334_v59, 0.0 }
  0x1f   : > { %v367_v7 = vmax.f32 %v335_v60, 0.0  ;;  %v368_v8 = vmax.f32 %v336_v61, 0.0  ;;  %v369_v12 = vmax.f32 %v337_v62, 0.0  ;;  %v370_v13 = vmax.f32 %v338_v63, 0.0 }
  0x20   : > { %v371_v14 = vmax.f32 %v339_v1, 0.0  ;;  %v372_v15 = vmax.f32 %v340_v2, 0.0  ;;  %397 = vst [vmem:[%s735_s27 + $0x40] sm:$0xff] %v365_v5  ;;  %398 = vst [vmem:[%s735_s27 + $0x48] sm:$0xff] %v366_v6  ;;  %v570_v18 = vunpack.c.l.bf16 %v604_v4  ;;  %v571_v19 = vunpack.c.h.bf16 %v604_v4 }
  0x21   : > { %399 = vst [vmem:[%s735_s27 + $0x50] sm:$0xff] %v367_v7  ;;  %400 = vst [vmem:[%s735_s27 + $0x58] sm:$0xff] %v368_v8  ;;  %v574_v20 = vunpack.c.l.bf16 %v605_v10  ;;  %v575_v21 = vunpack.c.h.bf16 %v605_v10  ;;  %v578_v22 = vunpack.c.l.bf16 %v606_v11  ;;  %v579_v23 = vunpack.c.h.bf16 %v606_v11 }
  0x22   : > { %401 = vst [vmem:[%s735_s27 + $0x60] sm:$0xff] %v369_v12  ;;  %402 = vst [vmem:[%s735_s27 + $0x68] sm:$0xff] %v370_v13  ;;  %v302_v24 = vmul.f32 %v566_v16, %v708_v0  ;;  %v303_v25 = vmul.f32 %v567_v17, %v708_v0  ;;  %v304_v26 = vmul.f32 %v570_v18, %v708_v0  ;;  %v582_v52 = vunpack.c.l.bf16 %v607_v40 }
  0x23   : > { %403 = vst [vmem:[%s735_s27 + $0x70] sm:$0xff] %v371_v14  ;;  %404 = vst [vmem:[%s735_s27 + $0x78] sm:$0xff] %v372_v15  ;;  %v305_v27 = vmul.f32 %v571_v19, %v708_v0  ;;  %v306_v28 = vmul.f32 %v574_v20, %v708_v0  ;;  %v307_v29 = vmul.f32 %v575_v21, %v708_v0  ;;  %v583_v53 = vunpack.c.h.bf16 %v607_v40 }
  0x24   : > { %v308_v30 = vmul.f32 %v578_v22, %v708_v0  ;;  %v309_v31 = vmul.f32 %v579_v23, %v708_v0  ;;  %v341_v32 = vadd.f32 %v717_v9, %v302_v24  ;;  %v342_v33 = vadd.f32 %v717_v9, %v303_v25 }
  0x25   : > { %v343_v34 = vadd.f32 %v717_v9, %v304_v26  ;;  %v344_v35 = vadd.f32 %v717_v9, %v305_v27  ;;  %v345_v36 = vadd.f32 %v717_v9, %v306_v28  ;;  %v346_v37 = vadd.f32 %v717_v9, %v307_v29 }
  0x26   : > { %v347_v38 = vadd.f32 %v717_v9, %v308_v30  ;;  %v348_v39 = vadd.f32 %v717_v9, %v309_v31  ;;  %v373_v42 = vmax.f32 %v341_v32, 0.0  ;;  %v374_v43 = vmax.f32 %v342_v33, 0.0 }
  0x27   : > { %v375_v44 = vmax.f32 %v343_v34, 0.0  ;;  %v376_v45 = vmax.f32 %v344_v35, 0.0  ;;  %v377_v48 = vmax.f32 %v345_v36, 0.0  ;;  %v378_v49 = vmax.f32 %v346_v37, 0.0 }
  0x28   : > { %v379_v50 = vmax.f32 %v347_v38, 0.0  ;;  %v380_v51 = vmax.f32 %v348_v39, 0.0  ;;  %405 = vst [vmem:[%s735_s27 + $0x80] sm:$0xff] %v373_v42  ;;  %406 = vst [vmem:[%s735_s27 + $0x88] sm:$0xff] %v374_v43  ;;  %v586_v54 = vunpack.c.l.bf16 %v608_v41  ;;  %v587_v55 = vunpack.c.h.bf16 %v608_v41 }
  0x29   : > { %407 = vst [vmem:[%s735_s27 + $0x90] sm:$0xff] %v375_v44  ;;  %408 = vst [vmem:[%s735_s27 + $0x98] sm:$0xff] %v376_v45  ;;  %v590_v56 = vunpack.c.l.bf16 %v609_v46  ;;  %v591_v57 = vunpack.c.h.bf16 %v609_v46  ;;  %v594_v58 = vunpack.c.l.bf16 %v610_v47  ;;  %v595_v59 = vunpack.c.h.bf16 %v610_v47 }
  0x2a   : > { %409 = vst [vmem:[%s735_s27 + $0xa0] sm:$0xff] %v377_v48  ;;  %410 = vst [vmem:[%s735_s27 + $0xa8] sm:$0xff] %v378_v49  ;;  %v310_v60 = vmul.f32 %v582_v52, %v708_v0  ;;  %v311_v61 = vmul.f32 %v583_v53, %v708_v0  ;;  %v312_v62 = vmul.f32 %v586_v54, %v708_v0 }
  0x2b   : > { %411 = vst [vmem:[%s735_s27 + $0xb0] sm:$0xff] %v379_v50  ;;  %412 = vst [vmem:[%s735_s27 + $0xb8] sm:$0xff] %v380_v51  ;;  %v313_v63 = vmul.f32 %v587_v55, %v708_v0  ;;  %v314_v1 = vmul.f32 %v590_v56, %v708_v0  ;;  %v315_v2 = vmul.f32 %v591_v57, %v708_v0 }
  0x2c   : > { %v316_v3 = vmul.f32 %v594_v58, %v708_v0  ;;  %v317_v4 = vmul.f32 %v595_v59, %v708_v0  ;;  %v349_v5 = vadd.f32 %v717_v9, %v310_v60  ;;  %v350_v6 = vadd.f32 %v717_v9, %v311_v61 }
  0x2d   : > { %v351_v7 = vadd.f32 %v717_v9, %v312_v62  ;;  %v352_v8 = vadd.f32 %v717_v9, %v313_v63  ;;  %v353_v10 = vadd.f32 %v717_v9, %v314_v1  ;;  %v354_v11 = vadd.f32 %v717_v9, %v315_v2 }
  0x2e   : > { %v355_v0 = vadd.f32 %v717_v9, %v316_v3  ;;  %v356_v12 = vadd.f32 %v717_v9, %v317_v4  ;;  %v381_v13 = vmax.f32 %v349_v5, 0.0  ;;  %v382_v14 = vmax.f32 %v350_v6, 0.0 }
  0x2f   : > { %v383_v15 = vmax.f32 %v351_v7, 0.0  ;;  %v384_v16 = vmax.f32 %v352_v8, 0.0  ;;  %v385_v17 = vmax.f32 %v353_v10, 0.0  ;;  %v386_v18 = vmax.f32 %v354_v11, 0.0 }
  0x30   : > { %v387_v19 = vmax.f32 %v355_v0, 0.0  ;;  %v388_v20 = vmax.f32 %v356_v12, 0.0  ;;  %413 = vst [vmem:[%s735_s27 + $0xc0] sm:$0xff] %v381_v13  ;;  %414 = vst [vmem:[%s735_s27 + $0xc8] sm:$0xff] %v382_v14 }
  0x31   : > { %415 = vst [vmem:[%s735_s27 + $0xd0] sm:$0xff] %v383_v15  ;;  %416 = vst [vmem:[%s735_s27 + $0xd8] sm:$0xff] %v384_v16 }
  0x32   : > { %417 = vst [vmem:[%s735_s27 + $0xe0] sm:$0xff] %v385_v17  ;;  %418 = vst [vmem:[%s735_s27 + $0xe8] sm:$0xff] %v386_v18 }
  0x33   : > { %419 = vst [vmem:[%s735_s27 + $0xf0] sm:$0xff] %v387_v19  ;;  %420 = vst [vmem:[%s735_s27 + $0xf8] sm:$0xff] %v388_v20 }
  0x34 PF: > { %s13_s14 = sadd.s32 1, %s657_s14   ;;  %s846_s12 = smov %s653_s13 }
  0x35   : > { %p10_p5 = scmp.ge.s32.totalorder %s13_s14, 4   ;;  %s847_s13 = smov %s849_s15 }
  0x37   :  { %12 = sbr.rel (!%p10_p5) target bundleno = 2 (0x2), region = 62 }

// kernel: upconv_block_forward.6
= control target key start
LH: loop header
LB: loop body
LE: loop exit
PB: predicated region body
PF: predicated region fallthrough
CT: control target
= control target key end

     0   :  { %s5582_s12 = smov 0   ;;  %s5584_s13 = smov 0   ;;  %s6402_s0 = inlined_call_operand.vmem [shape: bf16[2,456,128], index: 0, kind: input, shape index: {}]   ;;  %s6403_s1 = inlined_call_operand.vmem [shape: bf16[9,128,128], index: 1, kind: input, shape index: {}]   ;;  %s6404_s2 = inlined_call_operand.vmem [shape: bf16[2,16,16,128], index: 2, kind: output, shape index: {0}]   ;;  %s6405_s3 = inlined_call_operand.vmem [shape: f32[2,8,128], index: 3, kind: output, shape index: {1}]  }
   0x1   :  { %s5586_s14 = smov 0   ;;  %s5588_s15 = smov 0  }
   0x2   :  { %s5590_s16 = smov 0  }
   0x3 LB: > { %s23_s17 = sadd.s32 1, %s5551_s14  ;;  %s26_s18 = sadd.s32 1, %s5555_s15  ;;  %s5559_s16 = sphi %s5590_s16, %s14_s16   ;;  %s5555_s15 = sphi %s5588_s15, %s6409_s15   ;;  %s5551_s14 = sphi %s5586_s14, %s6408_s14   ;;  %s5547_s13 = sphi %s5584_s13, %s6407_s13   ;;  %s5543_s12 = sphi %s5582_s12, %s6406_s12  }
   0x4   : > { %p24_p0 = scmp.ge.s32.totalorder %s23_s17, 2  ;;  %p4317_p1 = scmp.ge.s32.totalorder %s5559_s16, 1 }
   0x5   : > { %p120_p2 = scmp.lt.s32.totalorder %s5559_s16, 5 }
   0x6   : > { %s6411_s17 = smov (%p24_p0, %s23_s17), 0  ;;  %s6413_s18 = smov (!%p24_p0, %s26_s18), %s5555_s15 }
   0x7   : > { %p121_p3 = pnand %p4317_p1, %p120_p2  ;;  %p28_p4 = scmp.ge.s32.totalorder %s6413_s18, 2 }
   0x8   : > { %s4318_s19 = sshll.u32 (!%p121_p3), %s5543_s12, 3  ;;  %p147_p5 = scmp.lt.s32.totalorder (!%p121_p3), %s5547_s13, 1 }
   0x9   : > { %s6415_s18 = smov (%p28_p4, %s6413_s18), 0  ;;  %124 = sbr.rel (%p121_p3) target bundleno = 556 (0x22c), region = 24 }
   0xa   : > { %p149_p6 = scmp.lt.s32.totalorder (!%p121_p3), %s4318_s19, 15  ;;  %p162_p7 = scmp.lt.s32.totalorder (!%p121_p3), %s5543_s12, 0 }
   0xb   : > { %s163_s28 = ssub.s32 (!%p121_p3), 0, %s5543_s12  ;;  %p4326_p9 = scmp.ne.s32.totalorder (!%p121_p3), %s5543_s12, 0 }
   0xc   : > { %s4323_s30 = smin.u32 (!%p121_p3), %s5543_s12, %s163_s28 }
   0xd   : > { %s165_s7 = sand.u32 (!%p121_p3), 1, %s4323_s30  }
   0xe   : > { %s148_s20 = scalar_select %p147_p5, %s5547_s13, 1 }
   0xf   : > { %s6417_s19 = smov (!%p149_p6, %s4318_s19), 15  ;;  %s166_s8 = ssub.s32 0, %s165_s7 }
  0x10   : > { %s4320_s21 = sshll.u32 %s148_s20, 5  ;;  %s4322_s22 = sshll.u32 %s148_s20, 3 }
  0x11   : > { %s4319_s23 = sshll.u32 %s6417_s19, 1  ;;  %s5623_s26 = scalar_lea.vmem %s6405_s3, %s4322_s22 }
  0x12   : > { %s153_s27 = sadd.s32 %s4320_s21, %s4319_s23  ;;  %s6419_s8 = smov (!%p162_p7, %s166_s8), %s165_s7 }
  0x13   : > { %s4321_s29 = sshll.u32 %s153_s27, 2  ;;  %p4325_p8 = scmp.lt.s32.totalorder %s6419_s8, 0 }
  0x14   : > { %s5630_s6 = scalar_lea.vmem %s6404_s2, %s4321_s29  ;;  %s172_s9 = sadd.s32 2, %s6419_s8 }
  0x15   : > { %s6421_s9 = smov (!%p4325_p8, %s172_s9), %s6419_s8  ;;  %177 = sbr.rel (%p4326_p9) target bundleno = 37 (0x25), region = 28 }
  0x16   : > { %s4670_s10 = smul.u32 (!%p4326_p9), 228, %s5547_s13 }
  0x18   : > { %s5643_s20 = scalar_lea.vmem (!%p4326_p9), %s6402_s0, %s4670_s10 }
  0x1a   : > { %v219_v0 = vld [vmem:[%s5643_s20] sm:$0xff]  ;;  %v221_v1 = vld [vmem:[%s5643_s20 + $0x8] sm:$0xff]  ;;  %v223_v2 = vld [vmem:[%s5643_s20 + $0x10] sm:$0xff] }
  0x1b   : > { %220 = vst [vmem:[#allocation2] sm:$0xff] %v219_v0  ;;  %222 = vst [vmem:[#allocation2 + $0x8] sm:$0xff] %v221_v1  ;;  %v225_v3 = vld [vmem:[%s5643_s20 + $0x18] sm:$0xff]  ;;  %v227_v4 = vld [vmem:[%s5643_s20 + $0x20] sm:$0xff] }
  0x1c   : > { %224 = vst [vmem:[#allocation2 + $0x10] sm:$0xff] %v223_v2  ;;  %v229_v5 = vld [vmem:[%s5643_s20 + $0x28] sm:$0xff]  ;;  %226 = vst [vmem:[#allocation2 + $0x18] sm:$0xff] %v225_v3  ;;  %v231_v6 = vld [vmem:[%s5643_s20 + $0x30] sm:$0xff] }
  0x1d   : > { %228 = vst [vmem:[#allocation2 + $0x20] sm:$0xff] %v227_v4  ;;  %230 = vst [vmem:[#allocation2 + $0x28] sm:$0xff] %v229_v5  ;;  %v233_v7 = vld [vmem:[%s5643_s20 + $0x38] sm:$0xff]  ;;  %v235_v8 = vld [vmem:[%s5643_s20 + $0x40] sm:$0xff] }
  0x1e   : > { %232 = vst [vmem:[#allocation2 + $0x30] sm:$0xff] %v231_v6  ;;  %234 = vst [vmem:[#allocation2 + $0x38] sm:$0xff] %v233_v7  ;;  %v237_v9 = vld [vmem:[%s5643_s20 + $0x48] sm:$0xff]  ;;  %v239_v10 = vld [vmem:[%s5643_s20 + $0x50] sm:$0xff] }
  0x1f   : > { %236 = vst [vmem:[#allocation2 + $0x40] sm:$0xff] %v235_v8  ;;  %v241_v11 = vld [vmem:[%s5643_s20 + $0x58] sm:$0xff]  ;;  %238 = vst [vmem:[#allocation2 + $0x48] sm:$0xff] %v237_v9  ;;  %v243_v12 = vld [vmem:[%s5643_s20 + $0x60] sm:$0xff] }
  0x20   : > { %240 = vst [vmem:[#allocation2 + $0x50] sm:$0xff] %v239_v10  ;;  %242 = vst [vmem:[#allocation2 + $0x58] sm:$0xff] %v241_v11  ;;  %v245_v13 = vld [vmem:[%s5643_s20 + $0x68] sm:$0xff]  ;;  %v247_v14 = vld [vmem:[%s5643_s20 + $0x70] sm:$0xff] }
  0x21   : > { %244 = vst [vmem:[#allocation2 + $0x60] sm:$0xff] %v243_v12  ;;  %246 = vst [vmem:[#allocation2 + $0x68] sm:$0xff] %v245_v13  ;;  %v249_v15 = vld [vmem:[%s5643_s20 + $0x78] sm:$0xff]  ;;  %v4328_v16 = vld [vmem:[%s5643_s20 + $0x80] sm:$0xf] }
  0x22   : > { %248 = vst [vmem:[#allocation2 + $0x70] sm:$0xff] %v247_v14  ;;  %250 = vst [vmem:[#allocation2 + $0x78] sm:$0xff] %v249_v15 }
  0x23   : > { %262 = vst [vmem:[#allocation2 + $0x80] sm:$0xf] %v4328_v16 }
  0x24   : > { %266 = vsyncadd [#allocation3], 2112 }
  0x25 PF: > { %s267_s21 = sadd.s32 1, %s5543_s12 }
  0x26   : > { %p4329_p10 = scmp.ge.s32.totalorder %s267_s21, 2 }
  0x27   : > { %s272_s22 = ssub.s32 (!%p4329_p10), 1, %s6421_s9  ;;  %s273_s23 = smul.u32 (!%p4329_p10), 192, %s267_s21 }
  0x28   : > { %271 = sbr.rel (%p4329_p10) target bundleno = 57 (0x39), region = 69  ;;  %s283_s7 = scalar_lea.sflag (!%p4329_p10), [#allocation3], %s272_s22 }
  0x29   : > { %s276_s24 = smul.u32 (!%p4329_p10), 57, %s5547_s13  ;;  %s274_s25 = sshra.s32 (!%p4329_p10), %s273_s23, 3 }
  0x2a   : > { %s4671_s27 = smul.u32 (!%p4329_p10), 132, %s272_s22 }
  0x2b   : > { %s277_s28 = sadd.s32 (!%p4329_p10), %s276_s24, %s274_s25 }
  0x2c   : > { %s4330_s29 = sshll.u32 (!%p4329_p10), %s277_s28, 2  ;;  %s5675_s13 = scalar_lea.vmem (!%p4329_p10), [#allocation2], %s4671_s27 }
  0x2d   : > { %s5670_s5 = scalar_lea.vmem %s6402_s0, %s4330_s29 }
  0x2e   : > { %v322_v17 = vld [vmem:[%s5670_s5] sm:$0xff]  ;;  %v324_v18 = vld [vmem:[%s5670_s5 + $0x8] sm:$0xff]  ;;  %v326_v19 = vld [vmem:[%s5670_s5 + $0x10] sm:$0xff] }
  0x2f   : > { %323 = vst [vmem:[%s5675_s13] sm:$0xff] %v322_v17  ;;  %325 = vst [vmem:[%s5675_s13 + $0x8] sm:$0xff] %v324_v18  ;;  %v328_v20 = vld [vmem:[%s5670_s5 + $0x18] sm:$0xff]  ;;  %v330_v21 = vld [vmem:[%s5670_s5 + $0x20] sm:$0xff] }
  0x30   : > { %327 = vst [vmem:[%s5675_s13 + $0x10] sm:$0xff] %v326_v19  ;;  %v332_v22 = vld [vmem:[%s5670_s5 + $0x28] sm:$0xff]  ;;  %329 = vst [vmem:[%s5675_s13 + $0x18] sm:$0xff] %v328_v20  ;;  %v334_v23 = vld [vmem:[%s5670_s5 + $0x30] sm:$0xff] }
  0x31   : > { %331 = vst [vmem:[%s5675_s13 + $0x20] sm:$0xff] %v330_v21  ;;  %333 = vst [vmem:[%s5675_s13 + $0x28] sm:$0xff] %v332_v22  ;;  %v336_v24 = vld [vmem:[%s5670_s5 + $0x38] sm:$0xff]  ;;  %v338_v25 = vld [vmem:[%s5670_s5 + $0x40] sm:$0xff] }
  0x32   : > { %335 = vst [vmem:[%s5675_s13 + $0x30] sm:$0xff] %v334_v23  ;;  %337 = vst [vmem:[%s5675_s13 + $0x38] sm:$0xff] %v336_v24  ;;  %v340_v26 = vld [vmem:[%s5670_s5 + $0x48] sm:$0xff]  ;;  %v342_v27 = vld [vmem:[%s5670_s5 + $0x50] sm:$0xff] }
  0x33   : > { %339 = vst [vmem:[%s5675_s13 + $0x40] sm:$0xff] %v338_v25  ;;  %v344_v28 = vld [vmem:[%s5670_s5 + $0x58] sm:$0xff]  ;;  %341 = vst [vmem:[%s5675_s13 + $0x48] sm:$0xff] %v340_v26  ;;  %v346_v29 = vld [vmem:[%s5670_s5 + $0x60] sm:$0xff] }
  0x34   : > { %343 = vst [vmem:[%s5675_s13 + $0x50] sm:$0xff] %v342_v27  ;;  %345 = vst [vmem:[%s5675_s13 + $0x58] sm:$0xff] %v344_v28  ;;  %v348_v30 = vld [vmem:[%s5670_s5 + $0x68] sm:$0xff]  ;;  %v350_v31 = vld [vmem:[%s5670_s5 + $0x70] sm:$0xff] }
  0x35   : > { %347 = vst [vmem:[%s5675_s13 + $0x60] sm:$0xff] %v346_v29  ;;  %349 = vst [vmem:[%s5675_s13 + $0x68] sm:$0xff] %v348_v30  ;;  %v352_v32 = vld [vmem:[%s5670_s5 + $0x78] sm:$0xff]  ;;  %v4332_v33 = vld [vmem:[%s5670_s5 + $0x80] sm:$0xf] }
  0x36   : > { %351 = vst [vmem:[%s5675_s13 + $0x70] sm:$0xff] %v350_v31  ;;  %353 = vst [vmem:[%s5675_s13 + $0x78] sm:$0xff] %v352_v32 }
  0x37   : > { %4333 = vst [vmem:[%s5675_s13 + $0x80] sm:$0xf] %v4332_v33 }
  0x38   : > { %369 = vsyncadd %s283_s7, 2112 }
  0x39 PF: > { %s4672_s8 = smul.u32 132, %s6421_s9  ;;  %s373_s11 = scalar_lea.sflag [#allocation3], %s6421_s9 }
  0x3b   : > { %s5711_s10 = scalar_lea.vmem [#allocation2], %s4672_s8 }
  0x3c   : > { %5539 = dma.done.wait %s373_s11, 2112 }
  0x3d   : > { %5540 = vsyncadd %s373_s11, 4294965184  ;;  %v5333_v34 = vld [vmem:[%s6403_s1 + $0x38] sm:$0xff]   ;;  %v5335_v36 = vld [vmem:[%s6403_s1 + $0x30] sm:$0xff]   ;;  %vm796_vm0 = vsmask.f32 7424  ;;  %vm1263_vm1 = vcmask 1046528  }
  0x3e   : > { %v5334_v35 = vld [vmem:[%s6403_s1 + $0x78] sm:$0xff]   ;;  %4916 = vmatprep.subr.bf16.mxu0 %v5333_v34  ;;  %v5336_v37 = vld [vmem:[%s6403_s1 + $0x70] sm:$0xff]   ;;  %v5337_v38 = vld [vmem:[%s6403_s1 + $0x28] sm:$0xff]  }
  0x3f   : > { %4956 = vmatprep.subr.bf16.mxu1 %v5334_v35  ;;  %4917 = vmatpush3.bf16.msra.mxu0 %v5333_v34  ;;  %v5338_v39 = vld [vmem:[%s6403_s1 + $0x68] sm:$0xff]   ;;  %v5339_v40 = vld [vmem:[%s6403_s1 + $0x20] sm:$0xff]   ;;  %v5341_v42 = vld [vmem:[%s6403_s1 + $0x18] sm:$0xff]  }
  0x40   : > { %4957 = vmatpush3.bf16.msra.mxu1 %v5334_v35  ;;  %4918 = vmatprep.subr.bf16.mxu0 %v5335_v36  ;;  %v5340_v41 = vld [vmem:[%s6403_s1 + $0x60] sm:$0xff]   ;;  %v5342_v43 = vld [vmem:[%s6403_s1 + $0x58] sm:$0xff]   ;;  %v5343_v44 = vld [vmem:[%s6403_s1 + $0x10] sm:$0xff]  }
  0x41   : > { %4958 = vmatprep.subr.bf16.mxu1 %v5336_v37  ;;  %v5344_v45 = vld [vmem:[%s6403_s1 + $0x50] sm:$0xff]   ;;  %v5349_v46 = vld [vmem:[%s5711_s10] sm:$0xff]   ;;  %v5359_v63 = vld [vmem:[%s5711_s10 + $0x18] sm:$0xff]  }
  0x42   : > { %4932 = vmatprep.mubr.bf16.mxu0 %v5349_v46  ;;  %v5350_v47 = vld [vmem:[%s5711_s10] sm:$0xff]   ;;  %v5351_v48 = vld [vmem:[%s5711_s10 + $0x8] sm:$0xff]   ;;  %v5353_v53 = vld [vmem:[%s5711_s10 + $0x10] sm:$0xff]   ;;  %v821_v6 = vshll.u32 %v5359_v63, 16  ;;  %v825_v12 = vshrl.u32 %v5359_v63, 16 }
  0x43   : > { %4919 = vmatpush3.bf16.msra.mxu0 %v5335_v36  ;;  %v5345_v49 = vld [vmem:[%s6403_s1 + $0x8] sm:$0xff]   ;;  %v798_v50 = vshrl.u32 %v5350_v47, 16  ;;  %v800_v51 = vshll.u32 %v5350_v47, 16  ;;  %v805_v52 = vshll.u32 %v5351_v48, 16  ;;  %v5347_v55 = vld [vmem:[%s6403_s1] sm:$0xff]   ;;  %v809_v59 = vshrl.u32 %v5351_v48, 16 }
  0x44   : > { %4959 = vmatpush3.bf16.msra.mxu1 %v5336_v37  ;;  %4920 = vmatprep.subr.bf16.mxu0 %v5337_v38  ;;  %v5346_v54 = vld [vmem:[%s6403_s1 + $0x48] sm:$0xff]   ;;  %v813_v60 = vshll.u32 %v5353_v53, 16  ;;  %v5348_v61 = vld [vmem:[%s6403_s1 + $0x40] sm:$0xff]   ;;  %v817_v0 = vshrl.u32 %v5353_v53, 16  ;;  %v5354_v4 = vld [vmem:[%s6403_s1 + $0xb8] sm:$0xff]   ;;  %v823_v11 = vrot.slane %v821_v6, 1 }
  0x45   : > { %4960 = vmatprep.subr.bf16.mxu1 %v5338_v39  ;;  %v802_v56 = vrot.slane %v800_v51, 1  ;;  %v807_v57 = vrot.slane %v805_v52, 1  ;;  %v5352_v1 = vld [vmem:[%s5711_s10 + $0x8] sm:$0xff]   ;;  %v5355_v5 = vld [vmem:[%s6403_s1 + $0xf8] sm:$0xff]   ;;  %v5361_v7 = vld [vmem:[%s5711_s10 + $0x20] sm:$0xff]  }
  0x46   : > { %v815_v3 = vrot.slane %v813_v60, 1  ;;  %v5356_v8 = vld [vmem:[%s6403_s1 + $0xb0] sm:$0xff]   ;;  %v829_v13 = vshll.u32 %v5361_v7, 16  ;;  %v833_v17 = vshrl.u32 %v5361_v7, 16  ;;  %v5362_v20 = vld [vmem:[%s6403_s1 + $0xa8] sm:$0xff]   ;;  %v827_v23 = vor.u32 %v825_v12, %v823_v11  ;;  %v5360_v24 = vld [vmem:[%s5711_s10 + $0x18] sm:$0xff]  }
  0x47   : > { %4921 = vmatpush3.bf16.msra.mxu0 %v5337_v38  ;;  %v803_v58 = vor.u32 %v802_v56, %v798_v50  ;;  %v811_v2 = vor.u32 %v809_v59, %v807_v57  ;;  %v5357_v9 = vld [vmem:[%s6403_s1 + $0xf0] sm:$0xff]   ;;  %v5363_v25 = vld [vmem:[%s6403_s1 + $0xe8] sm:$0xff]   ;;  %v5371_v31 = vld [vmem:[%s5711_s10 + $0x38] sm:$0xff]  }
  0x48   : > { %4961 = vmatpush3.bf16.msra.mxu1 %v5338_v39  ;;  %4922 = vmatprep.subr.bf16.mxu0 %v5339_v40  ;;  %v819_v10 = vor.u32 %v817_v0, %v815_v3  ;;  %v5358_v15 = vld [vmem:[%s5711_s10 + $0x10] sm:$0xff]   ;;  %v5365_v16 = vld [vmem:[%s5711_s10 + $0x28] sm:$0xff]   ;;  %v831_v19 = vrot.slane %v829_v13, 1  ;;  %v5364_v28 = vld [vmem:[%s5711_s10 + $0x20] sm:$0xff]   ;;  %v853_v36 = vshll.u32 %v5371_v31, 16  ;;  %v857_v50 = vshrl.u32 %v5371_v31, 16 }
  0x49   : > { %4962 = vmatprep.subr.bf16.mxu1 %v5340_v41  ;;  %v808_v62 = vsel %vm796_vm0, %v803_v58, %v807_v57  ;;  %v816_v14 = vsel %vm796_vm0, %v811_v2, %v815_v3  ;;  %v837_v21 = vshll.u32 %v5365_v16, 16  ;;  %v5367_v22 = vld [vmem:[%s5711_s10 + $0x30] sm:$0xff]   ;;  %v841_v29 = vshrl.u32 %v5365_v16, 16  ;;  %v5368_v33 = vld [vmem:[%s6403_s1 + $0xa0] sm:$0xff]   ;;  %v5379_v48 = vld [vmem:[%s5711_s10 + $0x48] sm:$0xff]  }
  0x4a   : > { %4972 = vmatprep.mubr.bf16.mxu1 %v808_v62  ;;  %v824_v18 = vsel %vm796_vm0, %v819_v10, %v823_v11  ;;  %v835_v27 = vor.u32 %v833_v17, %v831_v19  ;;  %v845_v30 = vshll.u32 %v5367_v22, 16  ;;  %v832_v32 = vsel %vm796_vm0, %v827_v23, %v831_v19  ;;  %v5369_v34 = vld [vmem:[%s6403_s1 + $0xe0] sm:$0xff]   ;;  %v5370_v46 = vld [vmem:[%s5711_s10 + $0x30] sm:$0xff]   ;;  %v5382_v58 = vld [vmem:[%s6403_s1 + $0x88] sm:$0xff]  }
  0x4b   : > { %4923 = vmatpush3.bf16.msra.mxu0 %v5339_v40  ;;  %v839_v26 = vrot.slane %v837_v21, 1  ;;  %v849_v35 = vshrl.u32 %v5367_v22, 16  ;;  %v5373_v39 = vld [vmem:[%s5711_s10 + $0x40] sm:$0xff]   ;;  %v5374_v40 = vld [vmem:[%s6403_s1 + $0x98] sm:$0xff]   ;;  %v5376_v52 = vld [vmem:[%s6403_s1 + $0x90] sm:$0xff]   ;;  %v873_v2 = vshrl.u32 %v5379_v48, 16 }
  0x4c   : > { %4963 = vmatpush3.bf16.msra.mxu1 %v5340_v41  ;;  %4924 = vmatprep.subr.bf16.mxu0 %v5341_v42  ;;  %v847_v38 = vrot.slane %v845_v30, 1  ;;  %v5366_v41 = vld [vmem:[%s5711_s10 + $0x28] sm:$0xff]   ;;  %v861_v47 = vshll.u32 %v5373_v39, 16  ;;  %v5381_v57 = vld [vmem:[%s5711_s10 + $0x50] sm:$0xff]   ;;  %v5372_v59 = vld [vmem:[%s5711_s10 + $0x38] sm:$0xff]  }
  0x4d   : > { %4964 = vmatprep.subr.bf16.mxu1 %v5342_v43  ;;  %v840_v37 = vsel %vm796_vm0, %v835_v27, %v839_v26  ;;  %v5377_v53 = vld [vmem:[%s6403_s1 + $0xd0] sm:$0xff]   ;;  %v5383_v63 = vld [vmem:[%s6403_s1 + $0xc8] sm:$0xff]   ;;  %v5385_v0 = vld [vmem:[%s5711_s10 + $0x58] sm:$0xff]   ;;  %v877_v3 = vshll.u32 %v5381_v57, 16  ;;  %v881_v6 = vshrl.u32 %v5381_v57, 16 }
  0x4e   : > { %v863_v56 = vrot.slane %v861_v47, 1  ;;  %v885_v7 = vshll.u32 %v5385_v0, 16  ;;  %v5387_v11 = vld [vmem:[%s5711_s10 + $0x60] ss:$0 sps:$4 sm:$0x11]   ;;  %v5380_v12 = vld [vmem:[%s5711_s10 + $0x48] sm:$0xff]  }
  0x4f   : > { %4925 = vmatpush3.bf16.msra.mxu0 %v5341_v42  ;;  %v843_v42 = vor.u32 %v841_v29, %v839_v26  ;;  %v879_v10 = vrot.slane %v877_v3, 1  ;;  %v5390_v17 = vld [vmem:[%s5711_s10] sm:$0xfe]   ;;  %v893_v19 = vshll.u32 %v5387_v11, 16  ;;  %v889_v22 = vshrl.u32 %v5385_v0, 16  ;;  %v5396_v23 = vld [vmem:[%s6403_s1 + $0x178] sm:$0xff]  }
  0x50   : > { %4965 = vmatpush3.bf16.msra.mxu1 %v5342_v43  ;;  %4926 = vmatprep.subr.bf16.mxu0 %v5343_v44  ;;  %v851_v43 = vor.u32 %v849_v35, %v847_v38  ;;  %v887_v16 = vrot.slane %v885_v7, 1  ;;  %v1264_v27 = vrot.slane %v5390_v17, 1  ;;  %v5386_v29 = vld [vmem:[%s5711_s10 + $0x58] sm:$0xff]   ;;  %v5393_v30 = vld [vmem:[%s5711_s10 + $0x10] sm:$0xff]   ;;  %v5404_v47 = vld [vmem:[%s6403_s1 + $0x168] sm:$0xff]  }
  0x51   : > { %4966 = vmatprep.subr.bf16.mxu1 %v5344_v45  ;;  %v1267_v35 = vrot.slane %v5393_v30, 1  ;;  %v5412_v0 = vld [vmem:[%s5711_s10 + $0x3c] sm:$0xff]   ;;  %v5417_v3 = vld [vmem:[%s6403_s1 + $0x110] sm:$0xff]   ;;  %v5423_v7 = vld [vmem:[%s6403_s1 + $0x108] sm:$0xff]  }
  0x52   : > { %v891_v26 = vor.u32 %v889_v22, %v887_v16  ;;  %v5430_v17 = vld [vmem:[%s6403_s1 + $0x140] sm:$0xff]   ;;  %v5422_v22 = vld [vmem:[%s5711_s10 + $0x54] sm:$0xff]  }
  0x53   : > { %4927 = vmatpush3.bf16.msra.mxu0 %v5343_v44  ;;  %v855_v44 = vrot.slane %v853_v36, 1  ;;  %v5394_v36 = vld [vmem:[%s5711_s10 + $0x14] sm:$0xff]  }
  0x54   : > { %4967 = vmatpush3.bf16.msra.mxu1 %v5344_v45  ;;  %4928 = vmatprep.subr.bf16.mxu0 %v5345_v49  ;;  %v5375_v45 = vld [vmem:[%s6403_s1 + $0xd8] sm:$0xff]  }
  0x55   : > { %4968 = vmatprep.subr.bf16.mxu1 %v5346_v54  ;;  %v856_v51 = vsel %vm796_vm0, %v851_v43, %v855_v44  ;;  %v859_v60 = vor.u32 %v857_v50, %v855_v44  ;;  %v5400_v44 = vld [vmem:[%s5711_s10 + $0x1c] sm:$0xff]  }
  0x57   : > { %4929 = vmatpush3.bf16.msra.mxu0 %v5345_v49  ;;  %v848_v49 = vsel %vm796_vm0, %v843_v42, %v847_v38  ;;  %v5405_v42 = vld [vmem:[%s5711_s10 + $0x28] sm:$0xff]  }
  0x58   : > { %4969 = vmatpush3.bf16.msra.mxu1 %v5346_v54  ;;  %4930 = vmatprep.subr.bf16.mxu0 %v5347_v55  ;;  %v865_v54 = vshrl.u32 %v5373_v39, 16 }
  0x59   : > { %4970 = vmatprep.subr.bf16.mxu1 %v5348_v61 }
  0x5b   : > { %4931 = vmatpush3.bf16.msra.mxu0 %v5347_v55  ;;  %v869_v55 = vshll.u32 %v5379_v48, 16  ;;  %v1273_v48 = vrot.slane %v5405_v42, 1  ;;  %v5428_v42 = vld [vmem:[%s5711_s10 + $0x64] sm:$0xff]  }
  0x5c   : > { %4971 = vmatpush3.bf16.msra.mxu1 %v5348_v61  ;;  %4996 = vmatprep.subr.bf16.mxu0 %v5354_v4  ;;  %v867_v61 = vor.u32 %v865_v54, %v863_v56 }
  0x5d   : > { %5036 = vmatprep.subr.bf16.mxu1 %v5355_v5  ;;  %v871_v62 = vrot.slane %v869_v55, 1  ;;  %v5409_v55 = vld [vmem:[%s6403_s1 + $0x120] sm:$0xff]  }
  0x5e   : > { %4933 = vmatmul.mubr.bf16.vlgmr.msra.gmra.mxu0 %v5352_v1  ;;  %v5378_v1 = vld [vmem:[%s5711_s10 + $0x40] sm:$0xff]  }
  0x5f   : > { %4973 = vmatmul.mubr.bf16.vlgmr.msra.gmra.mxu1 %v816_v14  ;;  %4997 = vmatpush3.bf16.msra.mxu0 %v5354_v4  ;;  %v864_v4 = vsel %vm796_vm0, %v859_v60, %v863_v56  ;;  %v875_v13 = vor.u32 %v873_v2, %v871_v62  ;;  %v5384_v14 = vld [vmem:[%s5711_s10 + $0x50] sm:$0xff]   ;;  %v5410_v56 = vld [vmem:[%s6403_s1 + $0x160] sm:$0xff]   ;;  %v5419_v2 = vld [vmem:[%s5711_s10 + $0x48] sm:$0xff]  }
  0x60   : > { %5037 = vmatpush3.bf16.msra.mxu1 %v5355_v5  ;;  %4998 = vmatprep.subr.bf16.mxu0 %v5356_v8  ;;  %v872_v5 = vsel %vm796_vm0, %v867_v61, %v871_v62  ;;  %v5416_v60 = vld [vmem:[%s6403_s1 + $0x158] sm:$0xff]   ;;  %v5413_v61 = vld [vmem:[%s5711_s10 + $0x40] sm:$0xff]  }
  0x61   : > { %5038 = vmatprep.subr.bf16.mxu1 %v5357_v9  ;;  %4936 = vmatprep.mubr.bf16.mxu0 %v5358_v15  ;;  %v883_v15 = vor.u32 %v881_v6, %v879_v10  ;;  %v880_v21 = vsel %vm796_vm0, %v875_v13, %v879_v10  ;;  %v1281_v6 = vrot.slane %v5419_v2, 1  ;;  %v5424_v10 = vld [vmem:[%s6403_s1 + $0x148] sm:$0xff]   ;;  %v5425_v13 = vld [vmem:[%s5711_s10 + $0x58] sm:$0xff]  }
  0x62   : > { %4976 = vmatprep.mubr.bf16.mxu1 %v824_v18  ;;  %v5391_v18 = vld [vmem:[%s5711_s10 + $0x8] sm:$0xff]  }
  0x63   : > { %4999 = vmatpush3.bf16.msra.mxu0 %v5356_v8  ;;  %v5388_v8 = vld [vmem:[%s6403_s1 + $0x80] sm:$0xff]  }
  0x64   : > { %5039 = vmatpush3.bf16.msra.mxu1 %v5357_v9  ;;  %5000 = vmatprep.subr.bf16.mxu0 %v5362_v20  ;;  %v5389_v9 = vld [vmem:[%s6403_s1 + $0xc0] sm:$0xff]  }
  0x65   : > { %5040 = vmatprep.subr.bf16.mxu1 %v5363_v25 }
  0x66   : > { %4937 = vmatmul.mubr.bf16.gmra.mxu0 %v5360_v24  ;;  %v888_v24 = vsel %vm796_vm0, %v883_v15, %v887_v16  ;;  %v5429_v15 = vld [vmem:[%s6403_s1 + $0x100] sm:$0xff]   ;;  %v5431_v16 = vld [vmem:[%s5711_s10 + $0xc] sm:$0xff]  }
  0x67   : > { %4977 = vmatmul.mubr.bf16.gmra.mxu1 %v832_v32  ;;  %5001 = vmatpush3.bf16.msra.mxu0 %v5362_v20  ;;  %v5395_v20 = vld [vmem:[%s6403_s1 + $0x138] sm:$0xff]  }
  0x68   : > { %5041 = vmatpush3.bf16.msra.mxu1 %v5363_v25  ;;  %4940 = vmatprep.mubr.bf16.mxu0 %v5364_v28  ;;  %v895_v25 = vrot.slane %v893_v19, 1  ;;  %v1265_v28 = vrot.slane %v5391_v18, 1  ;;  %v5432_v18 = vld [vmem:[%s5711_s10 + $0x14] sm:$0xff]  }
  0x69   : > { %4980 = vmatprep.mubr.bf16.mxu1 %v840_v37  ;;  %5002 = vmatprep.subr.bf16.mxu0 %v5368_v33  ;;  %v5397_v37 = vld [vmem:[%s6403_s1 + $0x130] sm:$0xff]  }
  0x6a   : > { %5042 = vmatprep.subr.bf16.mxu1 %v5369_v34  ;;  %v896_v31 = vsel %vm796_vm0, %v891_v26, %v895_v25  ;;  %v1266_v32 = vsel %vm1263_vm1, %v1264_v27, %v1265_v28  ;;  %v1268_v39 = vsel %vm1263_vm1, %v1265_v28, %v1267_v35  ;;  %v5426_v25 = vld [vmem:[%s5711_s10 + $0x5c] sm:$0xff]   ;;  %v2025_v26 = vshll.u32 %v5432_v18, 16 }
  0x6b   : > { %5003 = vmatpush3.bf16.msra.mxu0 %v5368_v33  ;;  %v5392_v33 = vld [vmem:[%s5711_s10 + $0xc] sm:$0xff]   ;;  %v5438_v27 = vld [vmem:[%s6403_s1 + $0x1f8] sm:$0xff]  }
  0x6c   : > { %5043 = vmatpush3.bf16.msra.mxu1 %v5369_v34  ;;  %5004 = vmatprep.subr.bf16.mxu0 %v5374_v40  ;;  %v5399_v34 = vld [vmem:[%s5711_s10 + $0x18] sm:$0xff]  }
  0x6d   : > { %5044 = vmatprep.subr.bf16.mxu1 %v5375_v45  ;;  %v1269_v38 = vrot.slane %v5399_v34, 1 }
  0x6e   : > { %4941 = vmatmul.mubr.bf16.gmra.mxu0 %v5366_v41  ;;  %v5398_v41 = vld [vmem:[%s6403_s1 + $0x170] sm:$0xff]  }
  0x6f   : > { %4981 = vmatmul.mubr.bf16.gmra.mxu1 %v848_v49  ;;  %4944 = vmatprep.mubr.bf16.mxu0 %v5370_v46  ;;  %v1270_v43 = vsel %vm1263_vm1, %v1267_v35, %v1269_v38  ;;  %v5403_v46 = vld [vmem:[%s6403_s1 + $0x128] sm:$0xff]   ;;  %v2027_v35 = vrot.slane %v2025_v26, 1 }
  0x70   : > { %4984 = vmatprep.mubr.bf16.mxu1 %v856_v51  ;;  %5005 = vmatpush3.bf16.msra.mxu0 %v5374_v40  ;;  %v5401_v40 = vld [vmem:[%s5711_s10 + $0x20] sm:$0xff]   ;;  %v5406_v51 = vld [vmem:[%s5711_s10 + $0x2c] sm:$0xff]  }
  0x71   : > { %5045 = vmatpush3.bf16.msra.mxu1 %v5375_v45  ;;  %5006 = vmatprep.subr.bf16.mxu0 %v5376_v52  ;;  %v1271_v45 = vrot.slane %v5401_v40, 1  ;;  %v5402_v49 = vld [vmem:[%s5711_s10 + $0x24] sm:$0xff]  }
  0x72   : > { %5046 = vmatprep.subr.bf16.mxu1 %v5377_v53  ;;  %v5441_v40 = vld [vmem:[%s5711_s10 + $0x24] sm:$0xff]  }
  0x73   : > { %v1272_v50 = vsel %vm1263_vm1, %v1269_v38, %v1271_v45  ;;  %v1274_v54 = vsel %vm1263_vm1, %v1271_v45, %v1273_v48  ;;  %v5986_v26 = vld [vmem:[%s5711_s10 + $0x44] sm:$0xff]  }
  0x74   : > { %5007 = vmatpush3.bf16.msra.mxu0 %v5376_v52  ;;  %v5407_v52 = vld [vmem:[%s5711_s10 + $0x30] sm:$0xff]  }
  0x75   : > { %5047 = vmatpush3.bf16.msra.mxu1 %v5377_v53  ;;  %5008 = vmatprep.subr.bf16.mxu0 %v5382_v58  ;;  %v5411_v53 = vld [vmem:[%s5711_s10 + $0x38] sm:$0xff]   ;;  %v1275_v57 = vrot.slane %v5407_v52, 1 }
  0x76   : > { %4945 = vmatmul.mubr.bf16.gmra.mxu0 %v5372_v59  ;;  %5048 = vmatprep.subr.bf16.mxu1 %v5383_v63  ;;  %v5415_v59 = vld [vmem:[%s6403_s1 + $0x118] sm:$0xff]  }
  0x77   : > { %4985 = vmatmul.mubr.bf16.gmra.mxu1 %v864_v4  ;;  %4948 = vmatprep.mubr.bf16.mxu0 %v5378_v1  ;;  %v1276_v62 = vsel %vm1263_vm1, %v1273_v48, %v1275_v57  ;;  %v1279_v4 = vrot.slane %v5413_v61, 1 }
  0x78   : > { %4988 = vmatprep.mubr.bf16.mxu1 %v872_v5  ;;  %5009 = vmatpush3.bf16.msra.mxu0 %v5382_v58  ;;  %v1277_v58 = vrot.slane %v5411_v53, 1  ;;  %v5418_v5 = vld [vmem:[%s6403_s1 + $0x150] sm:$0xff]  }
  0x79   : > { %5049 = vmatpush3.bf16.msra.mxu1 %v5383_v63  ;;  %5010 = vmatprep.subr.bf16.mxu0 %v5388_v8  ;;  %v5408_v63 = vld [vmem:[%s5711_s10 + $0x34] sm:$0xff]   ;;  %v5443_v53 = vld [vmem:[%s5711_s10 + $0x2c] sm:$0xff]  }
  0x7a   : > { %5050 = vmatprep.subr.bf16.mxu1 %v5389_v9  ;;  %v1278_v1 = vsel %vm1263_vm1, %v1275_v57, %v1277_v58  ;;  %v1280_v11 = vsel %vm1263_vm1, %v1277_v58, %v1279_v4  ;;  %v2053_v2 = vshrl.u32 %v5443_v53, 16 }
  0x7c   : > { %5011 = vmatpush3.bf16.msra.mxu0 %v5388_v8  ;;  %v5414_v8 = vld [vmem:[%s5711_s10 + $0x44] sm:$0xff]  }
  0x7d   : > { %5051 = vmatpush3.bf16.msra.mxu1 %v5389_v9  ;;  %5076 = vmatprep.subr.bf16.mxu0 %v5395_v20  ;;  %v5420_v9 = vld [vmem:[%s5711_s10 + $0x4c] sm:$0xff]  }
  0x7e   : > { %4949 = vmatmul.mubr.bf16.gmra.mxu0 %v5380_v12  ;;  %5116 = vmatprep.subr.bf16.mxu1 %v5396_v23  ;;  %v5421_v12 = vld [vmem:[%s5711_s10 + $0x50] sm:$0xff]  }
  0x7f   : > { %4989 = vmatmul.mubr.bf16.gmra.mxu1 %v880_v21  ;;  %4952 = vmatprep.mubr.bf16.mxu0 %v5384_v14  ;;  %v1282_v14 = vsel %vm1263_vm1, %v1279_v4, %v1281_v6  ;;  %v1283_v19 = vrot.slane %v5421_v12, 1  ;;  %v2020_v21 = vshll.u32 %v5431_v16, 16  ;;  %v5960_v4 = vld [vmem:[%s5711_s10 + $0x34] sm:$0xff]   ;;  %v5969_v12 = vld [vmem:[%s5711_s10 + $0x44] sm:$0xff]  }
  0x80   : > { %4992 = vmatprep.mubr.bf16.mxu1 %v888_v24  ;;  %v5437_v24 = vld [vmem:[%s6403_s1 + $0x1b8] sm:$0xff]  }
  0x81   : > { %v1284_v28 = vsel %vm1263_vm1, %v1281_v6, %v1283_v19 }
  0x86   : > { %4953 = vmatmul.mubr.bf16.gmra.mxu0 %v5386_v29  ;;  %v5433_v29 = vld [vmem:[%s5711_s10 + $0xc] sm:$0xfe]  }
  0x87   : > { %4993 = vmatmul.mubr.bf16.gmra.mxu1 %v896_v31  ;;  %5012 = vmatprep.mubr.bf16.mxu0 %v1266_v32  ;;  %v2018_v31 = vshrl.u32 %v5431_v16, 16  ;;  %v2022_v32 = vrot.slane %v2020_v21, 1  ;;  %v2492_v16 = vrot.slane %v5960_v4, 1  ;;  %v5451_v21 = vld [vmem:[%s6403_s1 + $0x1a0] sm:$0xff]  }
  0x88   : > { %5052 = vmatprep.mubr.bf16.mxu1 %v5392_v33  ;;  %v5434_v33 = vld [vmem:[%s5711_s10 + $0x14] sm:$0xff]   ;;  %v5471_v4 = vld [vmem:[%s6403_s1 + $0x180] sm:$0xff]  }
  0x89   : > { %v2023_v38 = vor.u32 %v2022_v32, %v2018_v31 }
  0x8b   : > { %v2028_v45 = vsel %vm796_vm0, %v2023_v38, %v2027_v35  ;;  %v2077_v38 = vshrl.u32 %v5969_v12, 16 }
  0x8e   : > { %5013 = vmatmul.mubr.bf16.vlgmr.msra.gmra.mxu0 %v1268_v39  ;;  %v2484_v39 = vrot.slane %v5434_v33, 1 }
  0x8f   : > { %5053 = vmatmul.mubr.bf16.vlgmr.msra.gmra.mxu1 %v5394_v36  ;;  %5077 = vmatpush3.bf16.msra.mxu0 %v5395_v20  ;;  %v1285_v20 = vrot.slane %v5425_v13, 1  ;;  %v2483_v36 = vrot.slane %v5433_v29, 1  ;;  %v5446_v13 = vld [vmem:[%s6403_s1 + $0x1e8] sm:$0xff]  }
  0x90   : > { %5117 = vmatpush3.bf16.msra.mxu1 %v5396_v23  ;;  %5078 = vmatprep.subr.bf16.mxu0 %v5397_v37  ;;  %v5427_v23 = vld [vmem:[%s5711_s10 + $0x60] ss:$0 sps:$4 sm:$0x11]  }
  0x91   : > { %5118 = vmatprep.subr.bf16.mxu1 %v5398_v41  ;;  %5016 = vmatprep.mubr.bf16.mxu0 %v1270_v43  ;;  %v1286_v30 = vsel %vm1263_vm1, %v1283_v19, %v1285_v20  ;;  %v1287_v34 = vrot.slane %v5427_v23, 1  ;;  %v2029_v43 = vshrl.u32 %v5432_v18, 16  ;;  %v5450_v18 = vld [vmem:[%s5711_s10 + $0x3c] sm:$0xff]  }
  0x92   : > { %5056 = vmatprep.mubr.bf16.mxu1 %v5400_v44  ;;  %v5452_v23 = vld [vmem:[%s6403_s1 + $0x1e0] sm:$0xff]   ;;  %v2494_v32 = vrot.slane %v5450_v18, 1 }
  0x93   : > { %5079 = vmatpush3.bf16.msra.mxu0 %v5397_v37  ;;  %v5435_v37 = vld [vmem:[%s5711_s10 + $0x1c] sm:$0xff]  }
  0x94   : > { %5119 = vmatpush3.bf16.msra.mxu1 %v5398_v41  ;;  %5080 = vmatprep.subr.bf16.mxu0 %v5403_v46  ;;  %v1288_v41 = vsel %vm1263_vm1, %v1285_v20, %v1287_v34  ;;  %v2033_v44 = vshll.u32 %v5435_v37, 16  ;;  %v2037_v48 = vshrl.u32 %v5435_v37, 16  ;;  %v2496_v37 = vrot.slane %v5986_v26, 1 }
  0x95   : > { %5120 = vmatprep.subr.bf16.mxu1 %v5404_v47 }
  0x96   : > { %5017 = vmatmul.mubr.bf16.gmra.mxu0 %v1272_v50  ;;  %v5442_v50 = vld [vmem:[%s5711_s10 + $0x24] sm:$0xff]   ;;  %v2035_v52 = vrot.slane %v2033_v44, 1 }
  0x97   : > { %5057 = vmatmul.mubr.bf16.gmra.mxu1 %v5402_v49  ;;  %5081 = vmatpush3.bf16.msra.mxu0 %v5403_v46  ;;  %v5436_v46 = vld [vmem:[%s5711_s10 + $0x1c] sm:$0xff]   ;;  %v2041_v49 = vshll.u32 %v5441_v40, 16  ;;  %v2488_v61 = vrot.slane %v5442_v50, 1  ;;  %v2497_v50 = vsel %vm1263_vm1, %v2494_v32, %v2496_v37 }
  0x98   : > { %5121 = vmatpush3.bf16.msra.mxu1 %v5404_v47  ;;  %5020 = vmatprep.mubr.bf16.mxu0 %v1274_v54  ;;  %v2485_v47 = vsel %vm1263_vm1, %v2483_v36, %v2484_v39  ;;  %v2486_v54 = vrot.slane %v5436_v46, 1  ;;  %v2039_v57 = vor.u32 %v2037_v48, %v2035_v52  ;;  %v5995_v36 = vld [vmem:[%s5711_s10 + $0x54] sm:$0xff]   ;;  %v2495_v46 = vsel %vm1263_vm1, %v2492_v16, %v2494_v32 }
  0x99   : > { %5060 = vmatprep.mubr.bf16.mxu1 %v5406_v51  ;;  %5082 = vmatprep.subr.bf16.mxu0 %v5409_v55  ;;  %v2031_v51 = vor.u32 %v2029_v43, %v2027_v35  ;;  %v2043_v58 = vrot.slane %v2041_v49, 1  ;;  %v5457_v35 = vld [vmem:[%s6403_s1 + $0x198] sm:$0xff]   ;;  %v5459_v43 = vld [vmem:[%s6403_s1 + $0x190] sm:$0xff]   ;;  %v2089_v48 = vshll.u32 %v5995_v36, 16 }
  0x9a   : > { %5122 = vmatprep.subr.bf16.mxu1 %v5410_v56  ;;  %v5463_v49 = vld [vmem:[%s5711_s10 + $0x5c] sm:$0xff]  }
  0x9b   : > { %5083 = vmatpush3.bf16.msra.mxu0 %v5409_v55  ;;  %v5447_v55 = vld [vmem:[%s5711_s10 + $0x34] sm:$0xff]   ;;  %v2044_v6 = vsel %vm796_vm0, %v2039_v57, %v2043_v58  ;;  %v2091_v57 = vrot.slane %v2089_v48, 1  ;;  %v5476_v48 = vld [vmem:[%s5711_s10 + $0x20] sm:$0xff]  }
  0x9c   : > { %5123 = vmatpush3.bf16.msra.mxu1 %v5410_v56  ;;  %5084 = vmatprep.subr.bf16.mxu0 %v5415_v59  ;;  %v5439_v56 = vld [vmem:[%s6403_s1 + $0x1b0] sm:$0xff]   ;;  %v2061_v20 = vshrl.u32 %v5447_v55, 16 }
  0x9d   : > { %5124 = vmatprep.subr.bf16.mxu1 %v5416_v60 }
  0x9e   : > { %5021 = vmatmul.mubr.bf16.gmra.mxu0 %v1276_v62  ;;  %v2045_v62 = vshrl.u32 %v5441_v40, 16 }
  0x9f   : > { %5061 = vmatmul.mubr.bf16.gmra.mxu1 %v5408_v63  ;;  %5024 = vmatprep.mubr.bf16.mxu0 %v1278_v1  ;;  %v2049_v63 = vshll.u32 %v5443_v53, 16  ;;  %v2487_v1 = vsel %vm1263_vm1, %v2484_v39, %v2486_v54  ;;  %v5458_v39 = vld [vmem:[%s6403_s1 + $0x1d8] sm:$0xff]  }
  0xa0   : > { %5064 = vmatprep.mubr.bf16.mxu1 %v5412_v0  ;;  %5085 = vmatpush3.bf16.msra.mxu0 %v5415_v59  ;;  %v2036_v59 = vsel %vm796_vm0, %v2031_v51, %v2035_v52  ;;  %v5444_v0 = vld [vmem:[%s5711_s10 + $0x2c] sm:$0xff]  }
  0xa1   : > { %5125 = vmatpush3.bf16.msra.mxu1 %v5416_v60  ;;  %5086 = vmatprep.subr.bf16.mxu0 %v5417_v3  ;;  %v5440_v60 = vld [vmem:[%s6403_s1 + $0x1f0] sm:$0xff]  }
  0xa2   : > { %5126 = vmatprep.subr.bf16.mxu1 %v5418_v5  ;;  %v5460_v52 = vld [vmem:[%s6403_s1 + $0x1d0] sm:$0xff]  }
  0xa4   : > { %5087 = vmatpush3.bf16.msra.mxu0 %v5417_v3  ;;  %v2057_v3 = vshll.u32 %v5447_v55, 16 }
  0xa5   : > { %5127 = vmatpush3.bf16.msra.mxu1 %v5418_v5  ;;  %5088 = vmatprep.subr.bf16.mxu0 %v5423_v7  ;;  %v5449_v5 = vld [vmem:[%s5711_s10 + $0x3c] sm:$0xff]  }
  0xa6   : > { %5025 = vmatmul.mubr.bf16.gmra.mxu0 %v1280_v11  ;;  %5128 = vmatprep.subr.bf16.mxu1 %v5424_v10  ;;  %v2490_v11 = vrot.slane %v5444_v0, 1  ;;  %v2101_v0 = vshrl.u32 %v5463_v49, 16 }
  0xa7   : > { %5065 = vmatmul.mubr.bf16.gmra.mxu1 %v5414_v8  ;;  %5028 = vmatprep.mubr.bf16.mxu0 %v1282_v14  ;;  %v2047_v8 = vor.u32 %v2045_v62, %v2043_v58  ;;  %v2093_v62 = vshrl.u32 %v5995_v36, 16  ;;  %v5473_v36 = vld [vmem:[%s5711_s10 + $0x18] sm:$0xff]  }
  0xa8   : > { %5068 = vmatprep.mubr.bf16.mxu1 %v5420_v9  ;;  %5089 = vmatpush3.bf16.msra.mxu0 %v5423_v7  ;;  %v2489_v7 = vsel %vm1263_vm1, %v2486_v54, %v2488_v61  ;;  %v2051_v9 = vrot.slane %v2049_v63, 1  ;;  %v6019_v54 = vld [vmem:[%s5711_s10 + $0x64] sm:$0xff]  }
  0xa9   : > { %5129 = vmatpush3.bf16.msra.mxu1 %v5424_v10  ;;  %5090 = vmatprep.subr.bf16.mxu0 %v5429_v15  ;;  %v5445_v10 = vld [vmem:[%s6403_s1 + $0x1a8] sm:$0xff]  }
  0xaa   : > { %5130 = vmatprep.subr.bf16.mxu1 %v5430_v17  ;;  %v2055_v14 = vor.u32 %v2053_v2, %v2051_v9  ;;  %v2052_v19 = vsel %vm796_vm0, %v2047_v8, %v2051_v9  ;;  %v5466_v63 = vld [vmem:[%s6403_s1 + $0x1c8] sm:$0xff]   ;;  %v2105_v2 = vshll.u32 %v6019_v54, 16 }
  0xac   : > { %5091 = vmatpush3.bf16.msra.mxu0 %v5429_v15  ;;  %v2059_v15 = vrot.slane %v2057_v3, 1  ;;  %v5468_v3 = vld [vmem:[%s5711_s10 + $0x64] sm:$0xff]  }
  0xad   : > { %5131 = vmatpush3.bf16.msra.mxu1 %v5430_v17  ;;  %5156 = vmatprep.subr.bf16.mxu0 %v5437_v24  ;;  %v2065_v17 = vshll.u32 %v5449_v5, 16 }
  0xae   : > { %5029 = vmatmul.mubr.bf16.gmra.mxu0 %v1284_v28  ;;  %5196 = vmatprep.subr.bf16.mxu1 %v5438_v27  ;;  %v2493_v28 = vsel %vm1263_vm1, %v2490_v11, %v2492_v16  ;;  %v2063_v31 = vor.u32 %v2061_v20, %v2059_v15  ;;  %v2504_v16 = vrot.slane %v5468_v3, 1  ;;  %v5470_v20 = vld [vmem:[%s5711_s10 + $0x6c] ss:$0 sps:$4 sm:$0x11]  }
  0xaf   : > { %5069 = vmatmul.mubr.bf16.gmra.mxu1 %v5422_v22  ;;  %5032 = vmatprep.mubr.bf16.mxu0 %v1286_v30  ;;  %v2491_v22 = vsel %vm1263_vm1, %v2488_v61, %v2490_v11  ;;  %v2067_v29 = vrot.slane %v2065_v17, 1  ;;  %v5455_v30 = vld [vmem:[%s5711_s10 + $0x4c] sm:$0xff]   ;;  %v5474_v11 = vld [vmem:[%s5711_s10 + $0x18] sm:$0xff]   ;;  %v5475_v17 = vld [vmem:[%s5711_s10 + $0x20] sm:$0xff]   ;;  %v2506_v32 = vrot.slane %v5470_v20, 1 }
  0xb0   : > { %5072 = vmatprep.mubr.bf16.mxu1 %v5426_v25  ;;  %v2073_v25 = vshll.u32 %v5969_v12, 16  ;;  %v2081_v40 = vshll.u32 %v5455_v30, 16  ;;  %v2085_v44 = vshrl.u32 %v5455_v30, 16  ;;  %v5465_v61 = vld [vmem:[%s6403_s1 + $0x188] sm:$0xff]   ;;  %v2095_v12 = vor.u32 %v2093_v62, %v2091_v57 }
  0xb1   : > { %v3239_v18 = vshll.u32 %v5474_v11, 16  ;;  %v3237_v26 = vshrl.u32 %v5474_v11, 16  ;;  %v5490_v20 = vld [vmem:[%s5711_s10 + $0x48] sm:$0xff]  }
  0xb2   : > { %v2075_v34 = vrot.slane %v2073_v25, 1  ;;  %v2083_v51 = vrot.slane %v2081_v40, 1  ;;  %v3248_v40 = vshrl.u32 %v5475_v17, 16 }
  0xb4   : > { %v2079_v53 = vor.u32 %v2077_v38, %v2075_v34  ;;  %v5481_v38 = vld [vmem:[%s5711_s10 + $0x30] sm:$0xff]  }
  0xb6   : > { %5033 = vmatmul.mubr.bf16.gmra.mxu0 %v1288_v41  ;;  %v5456_v41 = vld [vmem:[%s5711_s10 + $0x4c] sm:$0xff]  }
  0xb7   : > { %5073 = vmatmul.mubr.bf16.gmra.mxu1 %v5428_v42  ;;  %5092 = vmatprep.mubr.bf16.mxu0 %v2028_v45  ;;  %v2068_v42 = vsel %vm796_vm0, %v2063_v31, %v2067_v29  ;;  %v6008_v45 = vld [vmem:[%s5711_s10 + $0x54] sm:$0xff]   ;;  %v2498_v55 = vrot.slane %v5456_v41, 1 }
  0xb8   : > { %5132 = vmatprep.mubr.bf16.mxu1 %v2485_v47  ;;  %v2500_v58 = vrot.slane %v6008_v45, 1 }
  0xbe   : > { %5093 = vmatmul.mubr.bf16.vlgmr.msra.gmra.mxu0 %v2036_v59  ;;  %v5464_v59 = vld [vmem:[%s5711_s10 + $0x5c] sm:$0xff]  }
  0xbf   : > { %5133 = vmatmul.mubr.bf16.vlgmr.msra.gmra.mxu1 %v2487_v1  ;;  %5157 = vmatpush3.bf16.msra.mxu0 %v5437_v24  ;;  %v2069_v24 = vshrl.u32 %v5449_v5, 16  ;;  %v2084_v1 = vsel %vm796_vm0, %v2079_v53, %v2083_v51  ;;  %v2499_v5 = vsel %vm1263_vm1, %v2496_v37, %v2498_v55  ;;  %v2502_v9 = vrot.slane %v5464_v59, 1 }
  0xc0   : > { %5197 = vmatpush3.bf16.msra.mxu1 %v5438_v27  ;;  %5158 = vmatprep.subr.bf16.mxu0 %v5439_v56  ;;  %v2060_v27 = vsel %vm796_vm0, %v2055_v14, %v2059_v15  ;;  %v5469_v14 = vld [vmem:[%s5711_s10 + $0x6c] ss:$0 sps:$4 sm:$0x11]  }
  0xc1   : > { %5198 = vmatprep.subr.bf16.mxu1 %v5440_v60  ;;  %5096 = vmatprep.mubr.bf16.mxu0 %v2044_v6  ;;  %v2071_v33 = vor.u32 %v2069_v24, %v2067_v29  ;;  %v2503_v24 = vsel %vm1263_vm1, %v2500_v58, %v2502_v9  ;;  %v3244_v29 = vshll.u32 %v5475_v17, 16 }
  0xc2   : > { %5136 = vmatprep.mubr.bf16.mxu1 %v2489_v7  ;;  %v2501_v7 = vsel %vm1263_vm1, %v2498_v55, %v2500_v58 }
  0xc3   : > { %5159 = vmatpush3.bf16.msra.mxu0 %v5439_v56  ;;  %v2076_v47 = vsel %vm796_vm0, %v2071_v33, %v2075_v34  ;;  %v2087_v56 = vor.u32 %v2085_v44, %v2083_v51  ;;  %v5477_v33 = vld [vmem:[%s5711_s10 + $0x28] sm:$0xff]   ;;  %v3260_v44 = vshll.u32 %v5481_v38, 16 }
  0xc4   : > { %5199 = vmatpush3.bf16.msra.mxu1 %v5440_v60  ;;  %5160 = vmatprep.subr.bf16.mxu0 %v5445_v10  ;;  %v2097_v60 = vshll.u32 %v5463_v49, 16  ;;  %v3252_v41 = vshll.u32 %v5477_v33, 16  ;;  %v5486_v49 = vld [vmem:[%s5711_s10 + $0x40] sm:$0xff]  }
  0xc5   : > { %5200 = vmatprep.subr.bf16.mxu1 %v5446_v13  ;;  %v2092_v6 = vsel %vm796_vm0, %v2087_v56, %v2091_v57  ;;  %v5480_v56 = vld [vmem:[%s5711_s10 + $0x28] sm:$0xff]   ;;  %v3276_v58 = vshll.u32 %v5486_v49, 16 }
  0xc6   : > { %5097 = vmatmul.mubr.bf16.gmra.mxu0 %v2052_v19  ;;  %v2099_v8 = vrot.slane %v2097_v60, 1  ;;  %v5478_v19 = vld [vmem:[%s6403_s1 + $0x238] sm:$0xff]   ;;  %v5488_v60 = vld [vmem:[%s5711_s10 + $0x48] sm:$0xff]  }
  0xc7   : > { %5137 = vmatmul.mubr.bf16.gmra.mxu1 %v2491_v22  ;;  %5161 = vmatpush3.bf16.msra.mxu0 %v5445_v10  ;;  %v5472_v10 = vld [vmem:[%s6403_s1 + $0x1c0] sm:$0xff]   ;;  %v2109_v22 = vshrl.u32 %v6019_v54, 16  ;;  %v3264_v54 = vshrl.u32 %v5481_v38, 16  ;;  %v3278_v3 = vrot.slane %v3276_v58, 1  ;;  %v5509_v58 = vld [vmem:[%s5711_s10 + $0x50] sm:$0xff]  }
  0xc8   : > { %5201 = vmatpush3.bf16.msra.mxu1 %v5446_v13  ;;  %5100 = vmatprep.mubr.bf16.mxu0 %v2060_v27  ;;  %v2107_v13 = vrot.slane %v2105_v2, 1  ;;  %v2103_v15 = vor.u32 %v2101_v0, %v2099_v8  ;;  %v2505_v27 = vsel %vm1263_vm1, %v2502_v9, %v2504_v16  ;;  %v5491_v0 = vld [vmem:[%s5711_s10 + $0x50] sm:$0xff]   ;;  %v3288_v9 = vshrl.u32 %v5488_v60, 16 }
  0xc9   : > { %5140 = vmatprep.mubr.bf16.mxu1 %v2493_v28  ;;  %5162 = vmatprep.subr.bf16.mxu0 %v5451_v21  ;;  %v3241_v28 = vrot.slane %v3239_v18, 1  ;;  %v5497_v18 = vld [vmem:[%s5711_s10 + $0x60] sm:$0xff]  }
  0xca   : > { %5202 = vmatprep.subr.bf16.mxu1 %v5452_v23  ;;  %v2108_v25 = vsel %vm796_vm0, %v2103_v15, %v2107_v13  ;;  %v2111_v30 = vor.u32 %v2109_v22, %v2107_v13  ;;  %v5493_v13 = vld [vmem:[%s5711_s10 + $0x58] sm:$0xff]  }
  0xcb   : > { %5163 = vmatpush3.bf16.msra.mxu0 %v5451_v21  ;;  %v2100_v21 = vsel %vm796_vm0, %v2095_v12, %v2099_v8  ;;  %v3242_v34 = vor.u32 %v3241_v28, %v3237_v26  ;;  %v5489_v8 = vld [vmem:[%s6403_s1 + $0x220] sm:$0xff]   ;;  %v5494_v15 = vld [vmem:[%s6403_s1 + $0x218] sm:$0xff]   ;;  %v3304_v26 = vshrl.u32 %v5493_v13, 16 }
  0xcc   : > { %5203 = vmatpush3.bf16.msra.mxu1 %v5452_v23  ;;  %5164 = vmatprep.subr.bf16.mxu0 %v5457_v35  ;;  %v2113_v23 = vshll.u32 %v5469_v14, 16 }
  0xcd   : > { %5204 = vmatprep.subr.bf16.mxu1 %v5458_v39 }
  0xce   : > { %5101 = vmatmul.mubr.bf16.gmra.mxu0 %v2068_v42  ;;  %v2115_v31 = vrot.slane %v2113_v23, 1  ;;  %v3296_v23 = vshrl.u32 %v5491_v0, 16 }
  0xcf   : > { %5141 = vmatmul.mubr.bf16.gmra.mxu1 %v2495_v46  ;;  %5104 = vmatprep.mubr.bf16.mxu0 %v2076_v47  ;;  %v3254_v46 = vrot.slane %v3252_v41, 1  ;;  %v5483_v47 = vld [vmem:[%s5711_s10 + $0x38] sm:$0xff]  }
  0xd0   : > { %5144 = vmatprep.mubr.bf16.mxu1 %v2497_v50  ;;  %5165 = vmatpush3.bf16.msra.mxu0 %v5457_v35  ;;  %v3246_v35 = vrot.slane %v3244_v29, 1  ;;  %v2116_v37 = vsel %vm796_vm0, %v2111_v30, %v2115_v31  ;;  %v5479_v50 = vld [vmem:[%s6403_s1 + $0x230] sm:$0xff]   ;;  %v3268_v55 = vshll.u32 %v5483_v47, 16  ;;  %v3272_v57 = vshrl.u32 %v5483_v47, 16 }
  0xd1   : > { %5205 = vmatpush3.bf16.msra.mxu1 %v5458_v39  ;;  %5166 = vmatprep.subr.bf16.mxu0 %v5459_v43  ;;  %v2507_v39 = vsel %vm1263_vm1, %v2504_v16, %v2506_v32  ;;  %v5499_v29 = vld [vmem:[%s5711_s10 + $0x68] sm:$0xff]  }
  0xd2   : > { %5206 = vmatprep.subr.bf16.mxu1 %v5460_v52  ;;  %v3247_v42 = vsel %vm796_vm0, %v3242_v34, %v3246_v35  ;;  %v3250_v45 = vor.u32 %v3248_v40, %v3246_v35  ;;  %v3270_v62 = vrot.slane %v3268_v55, 1  ;;  %v5502_v34 = vld [vmem:[%s5711_s10 + $0x70] sm:$0xff]   ;;  %v3320_v41 = vshrl.u32 %v5499_v29, 16  ;;  %v5507_v55 = vld [vmem:[%s5711_s10 + $0x20] sm:$0xff]  }
  0xd3   : > { %v5492_v35 = vld [vmem:[%s5711_s10 + $0x50] sm:$0xff]  }
  0xd4   : > { %5167 = vmatpush3.bf16.msra.mxu0 %v5459_v43  ;;  %v3256_v43 = vshrl.u32 %v5477_v33, 16  ;;  %v3255_v53 = vsel %vm796_vm0, %v3250_v45, %v3254_v46  ;;  %v3274_v2 = vor.u32 %v3272_v57, %v3270_v62  ;;  %v5500_v33 = vld [vmem:[%s6403_s1 + $0x208] sm:$0xff]  }
  0xd5   : > { %5207 = vmatpush3.bf16.msra.mxu1 %v5460_v52  ;;  %5168 = vmatprep.subr.bf16.mxu0 %v5465_v61  ;;  %v3262_v52 = vrot.slane %v3260_v44, 1  ;;  %v6113_v57 = vld [vmem:[%s5711_s10 + $0x48] sm:$0xff]  }
  0xd6   : > { %5105 = vmatmul.mubr.bf16.gmra.mxu0 %v2084_v1  ;;  %5208 = vmatprep.subr.bf16.mxu1 %v5466_v63  ;;  %v3258_v51 = vor.u32 %v3256_v43, %v3254_v46  ;;  %v5482_v1 = vld [vmem:[%s5711_s10 + $0x30] sm:$0xff]   ;;  %v3279_v11 = vsel %vm796_vm0, %v3274_v2, %v3278_v3  ;;  %v5505_v43 = vld [vmem:[%s6403_s1 + $0x200] sm:$0xff]   ;;  %v5504_v46 = vld [vmem:[%s5711_s10 + $0x78] ss:$0 sps:$4 sm:$0x11]  }
  0xd7   : > { %5145 = vmatmul.mubr.bf16.gmra.mxu1 %v2499_v5  ;;  %5108 = vmatprep.mubr.bf16.mxu0 %v2092_v6  ;;  %v3284_v5 = vshll.u32 %v5488_v60, 16  ;;  %v5510_v2 = vld [vmem:[%s5711_s10 + $0x28] sm:$0xff]  }
  0xd8   : > { %5148 = vmatprep.mubr.bf16.mxu1 %v2501_v7  ;;  %5169 = vmatpush3.bf16.msra.mxu0 %v5465_v61  ;;  %v3263_v59 = vsel %vm796_vm0, %v3258_v51, %v3262_v52  ;;  %v3266_v61 = vor.u32 %v3264_v54, %v3262_v52  ;;  %v3280_v7 = vshrl.u32 %v5486_v49, 16  ;;  %v5498_v49 = vld [vmem:[%s5711_s10 + $0x60] sm:$0xff]   ;;  %v3328_v52 = vshrl.u32 %v5502_v34, 16  ;;  %v5506_v54 = vld [vmem:[%s5711_s10 + $0x18] sm:$0xfe]  }
  0xd9   : > { %5209 = vmatpush3.bf16.msra.mxu1 %v5466_v63  ;;  %5170 = vmatprep.subr.bf16.mxu0 %v5471_v4  ;;  %v5484_v63 = vld [vmem:[%s6403_s1 + $0x228] sm:$0xff]   ;;  %v3286_v12 = vrot.slane %v3284_v5, 1  ;;  %v5511_v5 = vld [vmem:[%s5711_s10 + $0x58] sm:$0xff]  }
  0xda   : > { %5210 = vmatprep.subr.bf16.mxu1 %v5472_v10  ;;  %v3271_v6 = vsel %vm796_vm0, %v3266_v61, %v3270_v62  ;;  %v3282_v14 = vor.u32 %v3280_v7, %v3278_v3  ;;  %v3702_v61 = vrot.slane %v5506_v54, 1  ;;  %v3703_v62 = vrot.slane %v5507_v55, 1 }
  0xdb   : > { %v3290_v16 = vor.u32 %v3288_v9, %v3286_v12  ;;  %v3705_v9 = vrot.slane %v5510_v2, 1 }
  0xdc   : > { %5171 = vmatpush3.bf16.msra.mxu0 %v5471_v4  ;;  %v5485_v4 = vld [vmem:[%s5711_s10 + $0x38] sm:$0xff]   ;;  %v3287_v22 = vsel %vm796_vm0, %v3282_v14, %v3286_v12 }
  0xdd   : > { %5211 = vmatpush3.bf16.msra.mxu1 %v5472_v10  ;;  %5236 = vmatprep.subr.bf16.mxu0 %v5478_v19  ;;  %v3292_v10 = vshll.u32 %v5491_v0, 16  ;;  %v3715_v0 = vrot.slane %v5509_v58, 1  ;;  %v5514_v14 = vld [vmem:[%s5711_s10 + $0x38] sm:$0xff]  }
  0xde   : > { %5109 = vmatmul.mubr.bf16.gmra.mxu0 %v2100_v21  ;;  %5276 = vmatprep.subr.bf16.mxu1 %v5478_v19  ;;  %v3300_v21 = vshll.u32 %v5493_v13, 16  ;;  %v3706_v13 = vsel %vm1263_vm1, %v3703_v62, %v3705_v9 }
  0xdf   : > { %5149 = vmatmul.mubr.bf16.gmra.mxu1 %v2503_v24  ;;  %5112 = vmatprep.mubr.bf16.mxu0 %v2108_v25  ;;  %v3294_v17 = vrot.slane %v3292_v10, 1  ;;  %v5495_v25 = vld [vmem:[%s6403_s1 + $0x210] sm:$0xff]   ;;  %v3717_v10 = vrot.slane %v5511_v5, 1 }
  0xe0   : > { %5152 = vmatprep.mubr.bf16.mxu1 %v2505_v27  ;;  %v3308_v27 = vshll.u32 %v5497_v18, 16  ;;  %v3302_v28 = vrot.slane %v3300_v21, 1 }
  0xe1   : > { %v3295_v24 = vsel %vm796_vm0, %v3290_v16, %v3294_v17  ;;  %v3298_v30 = vor.u32 %v3296_v23, %v3294_v17  ;;  %v5515_v17 = vld [vmem:[%s5711_s10 + $0x68] sm:$0xff]   ;;  %v3709_v23 = vrot.slane %v5514_v14, 1 }
  0xe2   : > { %v3306_v31 = vor.u32 %v3304_v26, %v3302_v28  ;;  %v3310_v32 = vrot.slane %v3308_v27, 1 }
  0xe3   : > { %v3303_v38 = vsel %vm796_vm0, %v3298_v30, %v3302_v28 }
  0xe4   : > { %v3311_v40 = vsel %vm796_vm0, %v3306_v31, %v3310_v32 }
  0xe6   : > { %5113 = vmatmul.mubr.bf16.gmra.mxu0 %v2116_v37  ;;  %v3316_v37 = vshll.u32 %v5499_v29, 16 }
  0xe7   : > { %5153 = vmatmul.mubr.bf16.gmra.mxu1 %v2507_v39  ;;  %5172 = vmatprep.mubr.bf16.mxu0 %v5473_v36  ;;  %v5496_v36 = vld [vmem:[%s5711_s10 + $0x58] sm:$0xff]   ;;  %v3312_v39 = vshrl.u32 %v5497_v18, 16  ;;  %v5516_v18 = vld [vmem:[%s5711_s10 + $0x40] sm:$0xff]  }
  0xe8   : > { %5212 = vmatprep.mubr.bf16.mxu1 %v3247_v42  ;;  %v3324_v42 = vshll.u32 %v5502_v34, 16  ;;  %v3318_v44 = vrot.slane %v3316_v37, 1  ;;  %v3711_v26 = vrot.slane %v5516_v18, 1  ;;  %v5518_v37 = vld [vmem:[%s5711_s10 + $0x78] ss:$0 sps:$4 sm:$0x11]  }
  0xe9   : > { %v3314_v45 = vor.u32 %v3312_v39, %v3310_v32 }
  0xea   : > { %v3322_v47 = vor.u32 %v3320_v41, %v3318_v44 }
  0xeb   : > { %v3319_v51 = vsel %vm796_vm0, %v3314_v45, %v3318_v44  ;;  %v3725_v45 = vrot.slane %v5518_v37, 1 }
  0xee   : > { %5173 = vmatmul.mubr.bf16.vlgmr.msra.gmra.mxu0 %v5476_v48  ;;  %v3326_v48 = vrot.slane %v3324_v42, 1 }
  0xef   : > { %5213 = vmatmul.mubr.bf16.vlgmr.msra.gmra.mxu1 %v3255_v53  ;;  %5237 = vmatpush3.bf16.msra.mxu0 %v5478_v19  ;;  %v3332_v53 = vshll.u32 %v5504_v46, 16 }
  0xf0   : > { %5284 = vmatpush3.bf16.msra.mxu1 %v5478_v19  ;;  %5238 = vmatprep.subr.bf16.mxu0 %v5479_v50  ;;  %v5487_v19 = vld [vmem:[%s5711_s10 + $0x40] sm:$0xff]  }
  0xf1   : > { %5277 = vmatprep.subr.bf16.mxu1 %v5479_v50  ;;  %5176 = vmatprep.mubr.bf16.mxu0 %v5480_v56  ;;  %v3327_v56 = vsel %vm796_vm0, %v3322_v47, %v3326_v48  ;;  %v3334_v60 = vrot.slane %v3332_v53, 1 }
  0xf2   : > { %5216 = vmatprep.mubr.bf16.mxu1 %v3263_v59  ;;  %v3330_v59 = vor.u32 %v3328_v52, %v3326_v48 }
  0xf3   : > { %5239 = vmatpush3.bf16.msra.mxu0 %v5479_v50 }
  0xf4   : > { %5285 = vmatpush3.bf16.msra.mxu1 %v5479_v50  ;;  %5240 = vmatprep.subr.bf16.mxu0 %v5484_v63  ;;  %v5501_v50 = vld [vmem:[%s5711_s10 + $0x68] sm:$0xff]   ;;  %v3335_v3 = vsel %vm796_vm0, %v3330_v59, %v3334_v60 }
  0xf5   : > { %5278 = vmatprep.subr.bf16.mxu1 %v5484_v63 }
  0xf6   : > { %5177 = vmatmul.mubr.bf16.gmra.mxu0 %v5482_v1  ;;  %v5503_v1 = vld [vmem:[%s5711_s10 + $0x70] sm:$0xff]  }
  0xf7   : > { %5217 = vmatmul.mubr.bf16.gmra.mxu1 %v3271_v6  ;;  %5241 = vmatpush3.bf16.msra.mxu0 %v5484_v63  ;;  %v5512_v6 = vld [vmem:[%s5711_s10 + $0x30] sm:$0xff]  }
  0xf8   : > { %5286 = vmatpush3.bf16.msra.mxu1 %v5484_v63  ;;  %5180 = vmatprep.mubr.bf16.mxu0 %v5485_v4  ;;  %v3713_v63 = vrot.slane %v6113_v57, 1  ;;  %v3704_v4 = vsel %vm1263_vm1, %v3702_v61, %v3703_v62 }
  0xf9   : > { %5220 = vmatprep.mubr.bf16.mxu1 %v3279_v11  ;;  %5242 = vmatprep.subr.bf16.mxu0 %v5489_v8  ;;  %v3707_v11 = vrot.slane %v5512_v6, 1 }
  0xfa   : > { %5279 = vmatprep.subr.bf16.mxu1 %v5489_v8  ;;  %v3716_v7 = vsel %vm1263_vm1, %v3713_v63, %v3715_v0 }
  0xfb   : > { %5243 = vmatpush3.bf16.msra.mxu0 %v5489_v8  ;;  %v3708_v16 = vsel %vm1263_vm1, %v3705_v9, %v3707_v11  ;;  %v3710_v32 = vsel %vm1263_vm1, %v3707_v11, %v3709_v23 }
  0xfc   : > { %5287 = vmatpush3.bf16.msra.mxu1 %v5489_v8  ;;  %5244 = vmatprep.subr.bf16.mxu0 %v5494_v15  ;;  %v5513_v8 = vld [vmem:[%s5711_s10 + $0x60] sm:$0xff]  }
  0xfd   : > { %5280 = vmatprep.subr.bf16.mxu1 %v5494_v15  ;;  %v3719_v12 = vrot.slane %v5513_v8, 1 }
  0xfe   : > { %5181 = vmatmul.mubr.bf16.gmra.mxu0 %v5487_v19 }
  0xff   : > { %5221 = vmatmul.mubr.bf16.gmra.mxu1 %v3287_v22  ;;  %5184 = vmatprep.mubr.bf16.mxu0 %v5490_v20  ;;  %v3720_v19 = vsel %vm1263_vm1, %v3717_v10, %v3719_v12  ;;  %v5517_v20 = vld [vmem:[%s5711_s10 + $0x70] sm:$0xff]  }
 0x100   : > { %5224 = vmatprep.mubr.bf16.mxu1 %v3295_v24  ;;  %5245 = vmatpush3.bf16.msra.mxu0 %v5494_v15  ;;  %v3723_v28 = vrot.slane %v5517_v20, 1 }
 0x101   : > { %5288 = vmatpush3.bf16.msra.mxu1 %v5494_v15  ;;  %5246 = vmatprep.subr.bf16.mxu0 %v5495_v25  ;;  %v3718_v15 = vsel %vm1263_vm1, %v3715_v0, %v3717_v10 }
 0x102   : > { %5281 = vmatprep.subr.bf16.mxu1 %v5495_v25  ;;  %v3726_v53 = vsel %vm1263_vm1, %v3723_v28, %v3725_v45 }
 0x104   : > { %5247 = vmatpush3.bf16.msra.mxu0 %v5495_v25 }
 0x105   : > { %5289 = vmatpush3.bf16.msra.mxu1 %v5495_v25  ;;  %5248 = vmatprep.subr.bf16.mxu0 %v5500_v33  ;;  %v3721_v25 = vrot.slane %v5515_v17, 1 }
 0x106   : > { %5185 = vmatmul.mubr.bf16.gmra.mxu0 %v5492_v35  ;;  %5282 = vmatprep.subr.bf16.mxu1 %v5500_v33 }
 0x107   : > { %5225 = vmatmul.mubr.bf16.gmra.mxu1 %v3303_v38  ;;  %5188 = vmatprep.mubr.bf16.mxu0 %v5496_v36  ;;  %v3722_v35 = vsel %vm1263_vm1, %v3719_v12, %v3721_v25  ;;  %v3712_v36 = vsel %vm1263_vm1, %v3709_v23, %v3711_v26  ;;  %v3724_v39 = vsel %vm1263_vm1, %v3721_v25, %v3723_v28 }
 0x108   : > { %5228 = vmatprep.mubr.bf16.mxu1 %v3311_v40  ;;  %5249 = vmatpush3.bf16.msra.mxu0 %v5500_v33 }
 0x109   : > { %5290 = vmatpush3.bf16.msra.mxu1 %v5500_v33  ;;  %5250 = vmatprep.subr.bf16.mxu0 %v5505_v43 }
 0x10a   : > { %5283 = vmatprep.subr.bf16.mxu1 %v5505_v43 }
 0x10c   : > { %5251 = vmatpush3.bf16.msra.mxu0 %v5505_v43 }
 0x10d   : > { %5291 = vmatpush3.bf16.msra.mxu1 %v5505_v43 }
 0x10e   : > { %5189 = vmatmul.mubr.bf16.gmra.mxu0 %v5498_v49 }
 0x10f   : > { %5229 = vmatmul.mubr.bf16.gmra.mxu1 %v3319_v51  ;;  %5192 = vmatprep.mubr.bf16.mxu0 %v5501_v50  ;;  %v3714_v50 = vsel %vm1263_vm1, %v3711_v26, %v3713_v63 }
 0x110   : > { %5232 = vmatprep.mubr.bf16.mxu1 %v3327_v56 }
 0x116   : > { %5193 = vmatmul.mubr.bf16.gmra.mxu0 %v5503_v1 }
 0x117   : > { %5233 = vmatmul.mubr.bf16.gmra.mxu1 %v3335_v3  ;;  %5252 = vmatprep.mubr.bf16.mxu0 %v3704_v4 }
 0x118   : > { %5264 = vmatprep.mubr.bf16.mxu1 %v3716_v7 }
 0x11e   : > { %v4934_v21 = vpop.f32.mrf.mxu0  ;;  %5253 = vmatmul.mubr.bf16.vlgmr.msra.gmra.mxu0 %v3706_v13 }
 0x11f   : > { %v4974_v22 = vpop.f32.mrf.mxu1  ;;  %5265 = vmatmul.mubr.bf16.vlgmr.msra.gmra.mxu1 %v3718_v15  ;;  %5256 = vmatprep.mubr.bf16.mxu0 %v3708_v16 }
 0x120   : > { %v572_v24 = vpop.f32.mrf.mxu0  ;;  %5268 = vmatprep.mubr.bf16.mxu1 %v3720_v19 }
 0x121   : > { %v991_v27 = vpop.f32.mrf.mxu1 }
 0x122   : > { %v6135_v29 = vadd.f32 %v991_v27, %v572_v24  ;;  %v4935_v30 = vpop.f32.mrf.mxu0 }
 0x123   : > { %v4975_v31 = vpop.f32.mrf.mxu1 }
 0x124   : > { %v6138_v33 = vadd.f32 %v4975_v31, %v4935_v30  ;;  %v575_v34 = vpop.f32.mrf.mxu0 }
 0x125   : > { %v994_v38 = vpop.f32.mrf.mxu1 }
 0x126   : > { %v6144_v40 = vadd.f32 %v994_v38, %v575_v34  ;;  %v4938_v41 = vpop.f32.mrf.mxu0  ;;  %5257 = vmatmul.mubr.bf16.gmra.mxu0 %v3710_v32 }
 0x127   : > { %v4978_v42 = vpop.f32.mrf.mxu1  ;;  %5269 = vmatmul.mubr.bf16.gmra.mxu1 %v3722_v35  ;;  %5260 = vmatprep.mubr.bf16.mxu0 %v3712_v36 }
 0x128   : > { %v6146_v43 = vadd.f32 %v4978_v42, %v4938_v41  ;;  %v588_v44 = vpop.f32.mrf.mxu0  ;;  %5272 = vmatprep.mubr.bf16.mxu1 %v3724_v39 }
 0x129   : > { %v1007_v46 = vpop.f32.mrf.mxu1 }
 0x12a   : > { %v6148_v47 = vadd.f32 %v1007_v46, %v588_v44  ;;  %v4939_v48 = vpop.f32.mrf.mxu0 }
 0x12b   : > { %v4979_v49 = vpop.f32.mrf.mxu1 }
 0x12c   : > { %v6153_v51 = vadd.f32 %v4979_v49, %v4939_v48  ;;  %v591_v52 = vpop.f32.mrf.mxu0 }
 0x12d   : > { %v1010_v54 = vpop.f32.mrf.mxu1 }
 0x12e   : > { %v4942_v55 = vpop.f32.mrf.mxu0  ;;  %5261 = vmatmul.mubr.bf16.gmra.mxu0 %v3714_v50 }
 0x12f   : > { %v4982_v56 = vpop.f32.mrf.mxu1  ;;  %5273 = vmatmul.mubr.bf16.gmra.mxu1 %v3726_v53 }
 0x130   : > { %v6156_v58 = vadd.f32 %v4982_v56, %v4942_v55  ;;  %v604_v59 = vpop.f32.mrf.mxu0 }
 0x131   : > { %v1023_v60 = vpop.f32.mrf.mxu1 }
 0x132   : > { %v4943_v61 = vpop.f32.mrf.mxu0 }
 0x133   : > { %v4983_v62 = vpop.f32.mrf.mxu1 }
 0x134   : > { %v607_v0 = vpop.f32.mrf.mxu0 }
 0x135   : > { %v1026_v57 = vpop.f32.mrf.mxu1 }
 0x136   : > { %v6158_v1 = vadd.f32 %v1026_v57, %v607_v0  ;;  %v4946_v63 = vpop.f32.mrf.mxu0 }
 0x137   : > { %v4986_v2 = vpop.f32.mrf.mxu1 }
 0x138   : > { %v620_v3 = vpop.f32.mrf.mxu0 }
 0x139   : > { %v1039_v4 = vpop.f32.mrf.mxu1 }
 0x13a   : > { %v6160_v5 = vadd.f32 %v1039_v4, %v620_v3  ;;  %v4947_v6 = vpop.f32.mrf.mxu0 }
 0x13b   : > { %v4987_v7 = vpop.f32.mrf.mxu1 }
 0x13c   : > { %v6162_v8 = vadd.f32 %v4987_v7, %v4947_v6  ;;  %v623_v9 = vpop.f32.mrf.mxu0 }
 0x13d   : > { %v1042_v10 = vpop.f32.mrf.mxu1 }
 0x13e   : > { %v6164_v11 = vadd.f32 %v1042_v10, %v623_v9  ;;  %v4950_v12 = vpop.f32.mrf.mxu0 }
 0x13f   : > { %v4990_v13 = vpop.f32.mrf.mxu1 }
 0x140   : > { %v6166_v14 = vadd.f32 %v4990_v13, %v4950_v12  ;;  %v636_v15 = vpop.f32.mrf.mxu0 }
 0x141   : > { %v1055_v16 = vpop.f32.mrf.mxu1 }
 0x142   : > { %v6168_v17 = vadd.f32 %v1055_v16, %v636_v15  ;;  %v4951_v18 = vpop.f32.mrf.mxu0 }
 0x143   : > { %v4991_v19 = vpop.f32.mrf.mxu1 }
 0x144   : > { %v6170_v20 = vadd.f32 %v4991_v19, %v4951_v18  ;;  %v639_v21 = vpop.f32.mrf.mxu0 }
 0x145   : > { %v1058_v22 = vpop.f32.mrf.mxu1 }
 0x146   : > { %v4954_v23 = vpop.f32.mrf.mxu0 }
 0x147   : > { %v4994_v24 = vpop.f32.mrf.mxu1 }
 0x148   : > { %v6172_v25 = vadd.f32 %v4994_v24, %v4954_v23  ;;  %v652_v26 = vpop.f32.mrf.mxu0 }
 0x149   : > { %v1071_v27 = vpop.f32.mrf.mxu1 }
 0x14a   : > { %v4955_v28 = vpop.f32.mrf.mxu0 }
 0x14b   : > { %v4995_v30 = vpop.f32.mrf.mxu1 }
 0x14c   : > { %v655_v31 = vpop.f32.mrf.mxu0 }
 0x14d   : > { %v1074_v32 = vpop.f32.mrf.mxu1 }
 0x14e   : > { %v6174_v34 = vadd.f32 %v1074_v32, %v655_v31  ;;  %v5014_v35 = vpop.f32.mrf.mxu0 }
 0x14f   : > { %v5054_v36 = vpop.f32.mrf.mxu1 }
 0x150   : > { %v1383_v37 = vpop.f32.mrf.mxu0 }
 0x151   : > { %v1502_v38 = vadd.f32 %v1383_v37, %v6135_v29  ;;  %v1745_v39 = vpop.f32.mrf.mxu1 }
 0x152   : > { %v5015_v41 = vpop.f32.mrf.mxu0 }
 0x153   : > { %v6177_v42 = vadd.f32 %v1745_v39, %v1502_v38  ;;  %v1505_v44 = vadd.f32 %v5015_v41, %v6138_v33  ;;  %v5055_v45 = vpop.f32.mrf.mxu1 }
 0x154   : > { %v1386_v46 = vpop.f32.mrf.mxu0 }
 0x155   : > { %v6180_v48 = vadd.f32 %v5055_v45, %v1505_v44  ;;  %v1503_v49 = vadd.f32 %v1386_v46, %v6144_v40  ;;  %v1748_v50 = vpop.f32.mrf.mxu1 }
 0x156   : > { %v5018_v52 = vpop.f32.mrf.mxu0 }
 0x157   : > { %v6183_v53 = vadd.f32 %v1748_v50, %v1503_v49  ;;  %v1508_v54 = vadd.f32 %v5018_v52, %v6146_v43  ;;  %v5058_v55 = vpop.f32.mrf.mxu1 }
 0x158   : > { %v1399_v29 = vpop.f32.mrf.mxu0 }
 0x159   : > { %v6186_v56 = vadd.f32 %v5058_v55, %v1508_v54  ;;  %v1506_v59 = vadd.f32 %v1399_v29, %v6148_v47  ;;  %v1761_v60 = vpop.f32.mrf.mxu1 }
 0x15a   : > { %v5019_v33 = vpop.f32.mrf.mxu0 }
 0x15b   : > { %v6189_v61 = vadd.f32 %v1761_v60, %v1506_v59  ;;  %v1509_v62 = vadd.f32 %v5019_v33, %v6153_v51  ;;  %v5059_v0 = vpop.f32.mrf.mxu1 }
 0x15c   : > { %v1402_v40 = vpop.f32.mrf.mxu0 }
 0x15d   : > { %v6192_v57 = vadd.f32 %v5059_v0, %v1509_v62  ;;  %v1764_v63 = vpop.f32.mrf.mxu1 }
 0x15e   : > { %v5022_v2 = vpop.f32.mrf.mxu0 }
 0x15f   : > { %v1512_v43 = vadd.f32 %v5022_v2, %v6156_v58  ;;  %v5062_v3 = vpop.f32.mrf.mxu1 }
 0x160   : > { %v1415_v4 = vpop.f32.mrf.mxu0 }
 0x161   : > { %v6195_v6 = vadd.f32 %v5062_v3, %v1512_v43  ;;  %v1777_v7 = vpop.f32.mrf.mxu1 }
 0x162   : > { %v5023_v47 = vpop.f32.mrf.mxu0 }
 0x163   : > { %v5063_v9 = vpop.f32.mrf.mxu1 }
 0x164   : > { %v1418_v10 = vpop.f32.mrf.mxu0 }
 0x165   : > { %v1511_v12 = vadd.f32 %v1418_v10, %v6158_v1  ;;  %v1780_v13 = vpop.f32.mrf.mxu1 }
 0x166   : > { %v5026_v51 = vpop.f32.mrf.mxu0 }
 0x167   : > { %v6198_v15 = vadd.f32 %v1780_v13, %v1511_v12  ;;  %v5066_v16 = vpop.f32.mrf.mxu1 }
 0x168   : > { %v1431_v18 = vpop.f32.mrf.mxu0 }
 0x169   : > { %v1514_v19 = vadd.f32 %v1431_v18, %v6160_v5  ;;  %v1793_v21 = vpop.f32.mrf.mxu1 }
 0x16a   : > { %v5027_v58 = vpop.f32.mrf.mxu0 }
 0x16b   : > { %v6201_v22 = vadd.f32 %v1793_v21, %v1514_v19  ;;  %v1517_v23 = vadd.f32 %v5027_v58, %v6162_v8  ;;  %v5067_v24 = vpop.f32.mrf.mxu1 }
 0x16c   : > { %v1434_v26 = vpop.f32.mrf.mxu0 }
 0x16d   : > { %v6204_v27 = vadd.f32 %v5067_v24, %v1517_v23  ;;  %v1515_v1 = vadd.f32 %v1434_v26, %v6164_v11  ;;  %v1796_v28 = vpop.f32.mrf.mxu1 }
 0x16e   : > { %v5030_v30 = vpop.f32.mrf.mxu0 }
 0x16f   : > { %v6207_v31 = vadd.f32 %v1796_v28, %v1515_v1  ;;  %v1520_v32 = vadd.f32 %v5030_v30, %v6166_v14  ;;  %v5070_v35 = vpop.f32.mrf.mxu1 }
 0x170   : > { %v1447_v5 = vpop.f32.mrf.mxu0 }
 0x171   : > { %v6210_v36 = vadd.f32 %v5070_v35, %v1520_v32  ;;  %v1518_v37 = vadd.f32 %v1447_v5, %v6168_v17  ;;  %v1809_v38 = vpop.f32.mrf.mxu1 }
 0x172   : > { %v5031_v8 = vpop.f32.mrf.mxu0 }
 0x173   : > { %v6213_v39 = vadd.f32 %v1809_v38, %v1518_v37  ;;  %v1521_v41 = vadd.f32 %v5031_v8, %v6170_v20  ;;  %v5071_v44 = vpop.f32.mrf.mxu1 }
 0x174   : > { %v1450_v11 = vpop.f32.mrf.mxu0 }
 0x175   : > { %v6216_v45 = vadd.f32 %v5071_v44, %v1521_v41  ;;  %v1812_v46 = vpop.f32.mrf.mxu1 }
 0x176   : > { %v5034_v49 = vpop.f32.mrf.mxu0 }
 0x177   : > { %v1524_v14 = vadd.f32 %v5034_v49, %v6172_v25  ;;  %v5074_v50 = vpop.f32.mrf.mxu1 }
 0x178   : > { %v1463_v52 = vpop.f32.mrf.mxu0 }
 0x179   : > { %v6219_v54 = vadd.f32 %v5074_v50, %v1524_v14  ;;  %v1825_v55 = vpop.f32.mrf.mxu1 }
 0x17a   : > { %v5035_v17 = vpop.f32.mrf.mxu0 }
 0x17b   : > { %v5075_v29 = vpop.f32.mrf.mxu1 }
 0x17c   : > { %v1466_v59 = vpop.f32.mrf.mxu0 }
 0x17d   : > { %v1523_v60 = vadd.f32 %v1466_v59, %v6174_v34  ;;  %v1828_v33 = vpop.f32.mrf.mxu1 }
 0x17e   : > { %v5094_v20 = vpop.f32.mrf.mxu0 }
 0x17f   : > { %v6222_v62 = vadd.f32 %v1828_v33, %v1523_v60  ;;  %v5134_v0 = vpop.f32.mrf.mxu1 }
 0x180   : > { %v2211_v40 = vpop.f32.mrf.mxu0 }
 0x181   : > { %v2330_v63 = vadd.f32 %v2211_v40, %v6177_v42  ;;  %v2602_v2 = vpop.f32.mrf.mxu1 }
 0x182   : > { %v5095_v25 = vpop.f32.mrf.mxu0 }
 0x183   : > { %v6225_v43 = vadd.f32 %v2602_v2, %v2330_v63  ;;  %v2333_v3 = vadd.f32 %v5095_v25, %v6180_v48  ;;  %v5135_v4 = vpop.f32.mrf.mxu1 }
 0x184   : > { %v2214_v7 = vpop.f32.mrf.mxu0 }
 0x185   : > { %v6228_v47 = vadd.f32 %v5135_v4, %v2333_v3  ;;  %v2331_v34 = vadd.f32 %v2214_v7, %v6183_v53  ;;  %v2605_v9 = vpop.f32.mrf.mxu1 }
 0x186   : > { %v5098_v10 = vpop.f32.mrf.mxu0 }
 0x187   : > { %v6231_v12 = vadd.f32 %v2605_v9, %v2331_v34  ;;  %v2336_v13 = vadd.f32 %v5098_v10, %v6186_v56  ;;  %v5138_v51 = vpop.f32.mrf.mxu1 }
 0x188   : > { %v2227_v42 = vpop.f32.mrf.mxu0 }
 0x189   : > { %v6234_v16 = vadd.f32 %v5138_v51, %v2336_v13  ;;  %v2334_v18 = vadd.f32 %v2227_v42, %v6189_v61  ;;  %v2618_v19 = vpop.f32.mrf.mxu1 }
 0x18a   : > { %v5099_v48 = vpop.f32.mrf.mxu0 }
 0x18b   : > { %v6237_v21 = vadd.f32 %v2618_v19, %v2334_v18  ;;  %v2337_v58 = vadd.f32 %v5099_v48, %v6192_v57  ;;  %v5139_v23 = vpop.f32.mrf.mxu1 }
 0x18c   : > { %v2230_v53 = vpop.f32.mrf.mxu0 }
 0x18d   : > { %v6240_v24 = vadd.f32 %v5139_v23, %v2337_v58  ;;  %v2621_v26 = vpop.f32.mrf.mxu1 }
 0x18e   : > { %v5102_v1 = vpop.f32.mrf.mxu0 }
 0x18f   : > { %v2340_v56 = vadd.f32 %v5102_v1, %v6195_v6  ;;  %v5142_v28 = vpop.f32.mrf.mxu1 }
 0x190   : > { %v2243_v30 = vpop.f32.mrf.mxu0 }
 0x191   : > { %v6243_v32 = vadd.f32 %v5142_v28, %v2340_v56  ;;  %v2634_v35 = vpop.f32.mrf.mxu1 }
 0x192   : > { %v5103_v61 = vpop.f32.mrf.mxu0 }
 0x193   : > { %v5143_v5 = vpop.f32.mrf.mxu1 }
 0x194   : > { %v2246_v37 = vpop.f32.mrf.mxu0 }
 0x195   : > { %v2339_v38 = vadd.f32 %v2246_v37, %v6198_v15  ;;  %v2637_v8 = vpop.f32.mrf.mxu1 }
 0x196   : > { %v5106_v57 = vpop.f32.mrf.mxu0 }
 0x197   : > { %v6246_v41 = vadd.f32 %v2637_v8, %v2339_v38  ;;  %v5146_v44 = vpop.f32.mrf.mxu1 }
 0x198   : > { %v2259_v11 = vpop.f32.mrf.mxu0 }
 0x199   : > { %v2342_v46 = vadd.f32 %v2259_v11, %v6201_v22  ;;  %v2650_v49 = vpop.f32.mrf.mxu1 }
 0x19a   : > { %v5107_v6 = vpop.f32.mrf.mxu0 }
 0x19b   : > { %v6249_v14 = vadd.f32 %v2650_v49, %v2342_v46  ;;  %v2345_v50 = vadd.f32 %v5107_v6, %v6204_v27  ;;  %v5147_v52 = vpop.f32.mrf.mxu1 }
 0x19c   : > { %v2262_v55 = vpop.f32.mrf.mxu0 }
 0x19d   : > { %v6252_v17 = vadd.f32 %v5147_v52, %v2345_v50  ;;  %v2343_v15 = vadd.f32 %v2262_v55, %v6207_v31  ;;  %v2653_v29 = vpop.f32.mrf.mxu1 }
 0x19e   : > { %v5110_v59 = vpop.f32.mrf.mxu0 }
 0x19f   : > { %v6255_v60 = vadd.f32 %v2653_v29, %v2343_v15  ;;  %v2348_v33 = vadd.f32 %v5110_v59, %v6210_v36  ;;  %v5150_v20 = vpop.f32.mrf.mxu1 }
 0x1a0   : > { %v2275_v22 = vpop.f32.mrf.mxu0 }
 0x1a1   : > { %v6258_v0 = vadd.f32 %v5150_v20, %v2348_v33  ;;  %v2346_v40 = vadd.f32 %v2275_v22, %v6213_v39  ;;  %v2666_v63 = vpop.f32.mrf.mxu1 }
 0x1a2   : > { %v5111_v27 = vpop.f32.mrf.mxu0 }
 0x1a3   : > { %v6261_v2 = vadd.f32 %v2666_v63, %v2346_v40  ;;  %v2349_v25 = vadd.f32 %v5111_v27, %v6216_v45  ;;  %v5151_v3 = vpop.f32.mrf.mxu1 }
 0x1a4   : > { %v2278_v31 = vpop.f32.mrf.mxu0 }
 0x1a5   : > { %v6264_v4 = vadd.f32 %v5151_v3, %v2349_v25  ;;  %v2669_v7 = vpop.f32.mrf.mxu1 }
 0x1a6   : > { %v5114_v34 = vpop.f32.mrf.mxu0 }
 0x1a7   : > { %v2352_v36 = vadd.f32 %v5114_v34, %v6219_v54  ;;  %v5154_v9 = vpop.f32.mrf.mxu1 }
 0x1a8   : > { %v2291_v10 = vpop.f32.mrf.mxu0 }
 0x1a9   : > { %v6267_v13 = vadd.f32 %v5154_v9, %v2352_v36  ;;  %v2682_v51 = vpop.f32.mrf.mxu1 }
 0x1aa   : > { %v5115_v39 = vpop.f32.mrf.mxu0 }
 0x1ab   : > { %v5155_v42 = vpop.f32.mrf.mxu1 }
 0x1ac   : > { %v2294_v18 = vpop.f32.mrf.mxu0 }
 0x1ad   : > { %v2351_v19 = vadd.f32 %v2294_v18, %v6222_v62  ;;  %v2685_v48 = vpop.f32.mrf.mxu1 }
 0x1ae   : > { %v5174_v45 = vpop.f32.mrf.mxu0 }
 0x1af   : > { %v6270_v58 = vadd.f32 %v2685_v48, %v2351_v19  ;;  %v5214_v23 = vpop.f32.mrf.mxu1 }
 0x1b0   : > { %v2964_v53 = vpop.f32.mrf.mxu0 }
 0x1b1   : > { %v3430_v26 = vpop.f32.mrf.mxu1  ;;  %v3083_v23 = vadd.f32 %v2964_v53, %v6225_v43 }
 0x1b2   : > { %v5175_v1 = vpop.f32.mrf.mxu0 }
 0x1b3   : > { %v6272_v56 = vpop.f32.mrf.mxu1 }
 0x1b4   : > { %v2967_v54 = vpop.f32.mrf.mxu0 }
 0x1b5   : > { %v3433_v28 = vpop.f32.mrf.mxu1 }
 0x1b6   : > { %v5178_v30 = vpop.f32.mrf.mxu0 }
 0x1b7   : > { %v6274_v35 = vpop.f32.mrf.mxu1 }
 0x1b8   : > { %v2980_v61 = vpop.f32.mrf.mxu0 }
 0x1b9   : > { %v6276_v5 = vpop.f32.mrf.mxu1 }
 0x1ba   : > { %v5179_v37 = vpop.f32.mrf.mxu0 }
 0x1bb   : > { %v6278_v62 = vpop.f32.mrf.mxu1 }
 0x1bc   : > { %v2983_v38 = vpop.f32.mrf.mxu0 }
 0x1bd   : > { %v3449_v8 = vpop.f32.mrf.mxu1  ;;  %v3084_v38 = vadd.f32 %v2967_v54, %v6231_v12 }
 0x1be   : > { %v6280_v57 = vpop.f32.mrf.mxu0 }
 0x1bf   : > { %v6282_v44 = vpop.f32.mrf.mxu1 }
 0x1c0   : > { %v2996_v11 = vpop.f32.mrf.mxu0 }
 0x1c1   : > { %v3462_v46 = vpop.f32.mrf.mxu1 }
 0x1c2   : > { %v5183_v49 = vpop.f32.mrf.mxu0 }
 0x1c3   : > { %v5223_v6 = vpop.f32.mrf.mxu1 }
 0x1c4   : > { %v6284_v50 = vpop.f32.mrf.mxu0 }
 0x1c5   : > { %v6286_v52 = vpop.f32.mrf.mxu1 }
 0x1c6   : > { %v5186_v55 = vpop.f32.mrf.mxu0 }
 0x1c7   : > { %v5226_v15 = vpop.f32.mrf.mxu1 }
 0x1c8   : > { %v3012_v29 = vpop.f32.mrf.mxu0  ;;  %v3549_v15 = vadd.f32 %v3430_v26, %v3083_v23 }
 0x1c9   : > { %v3478_v59 = vpop.f32.mrf.mxu1  ;;  %v3095_v11 = vadd.f32 %v3012_v29, %v6249_v14  ;;  %v3089_v14 = vadd.f32 %v5178_v30, %v6234_v16 }
 0x1ca   : > { %v5187_v33 = vpop.f32.mrf.mxu0 }
 0x1cb   : > { %v5227_v20 = vpop.f32.mrf.mxu1  ;;  %v3098_v43 = vadd.f32 %v5187_v33, %v6252_v17  ;;  %v3555_v33 = vadd.f32 %v6274_v35, %v3089_v14 }
 0x1cc   : > { %v3015_v22 = vpop.f32.mrf.mxu0 }
 0x1cd   : > { %v3481_v40 = vpop.f32.mrf.mxu1  ;;  %v3096_v46 = vadd.f32 %v3015_v22, %v6255_v60  ;;  %v3090_v60 = vadd.f32 %v5179_v37, %v6240_v24  ;;  %v3564_v37 = vadd.f32 %v5227_v20, %v3098_v43 }
 0x1ce   : > { %v5190_v63 = vpop.f32.mrf.mxu0 }
 0x1cf   : > { %v5230_v27 = vpop.f32.mrf.mxu1  ;;  %v3562_v53 = vadd.f32 %v3481_v40, %v3096_v46  ;;  %v3556_v22 = vadd.f32 %v6278_v62, %v3090_v60 }
 0x1d0   : > { %v3028_v25 = vpop.f32.mrf.mxu0 }
 0x1d1   : > { %v3494_v3 = vpop.f32.mrf.mxu1  ;;  %v3099_v12 = vadd.f32 %v3028_v25, %v6261_v2 }
 0x1d2   : > { %v5191_v31 = vpop.f32.mrf.mxu0 }
 0x1d3   : > { %v5231_v7 = vpop.f32.mrf.mxu1 }
 0x1d4   : > { %v3031_v34 = vpop.f32.mrf.mxu0 }
 0x1d5   : > { %v3497_v36 = vpop.f32.mrf.mxu1  ;;  %v3086_v34 = vadd.f32 %v5175_v1, %v6228_v47  ;;  %v3101_v1 = vadd.f32 %v5190_v63, %v6258_v0 }
 0x1d6   : > { %v6288_v9 = vpop.f32.mrf.mxu0  ;;  %v3550_v36 = vadd.f32 %v3433_v28, %v3084_v38 }
 0x1d7   : > { %v6290_v10 = vpop.f32.mrf.mxu1  ;;  %v3567_v63 = vadd.f32 %v5230_v27, %v3101_v1 }
 0x1d8   : > { %v3044_v51 = vpop.f32.mrf.mxu0 }
 0x1d9   : > { %v3510_v39 = vpop.f32.mrf.mxu1  ;;  %v3087_v51 = vadd.f32 %v2980_v61, %v6237_v21  ;;  %v3102_v21 = vadd.f32 %v5191_v31, %v6264_v4  ;;  %v3552_v61 = vadd.f32 %v6272_v56, %v3086_v34  ;;  %v3105_v34 = vadd.f32 %v6288_v9, %v6267_v13 }
 0x1da   : > { %v5195_v42 = vpop.f32.mrf.mxu0 }
 0x1db   : > { %v5235_v18 = vpop.f32.mrf.mxu1  ;;  %v3561_v42 = vadd.f32 %v3478_v59, %v3095_v11  ;;  %v3553_v16 = vadd.f32 %v6276_v5, %v3087_v51  ;;  %v3565_v59 = vadd.f32 %v3494_v3, %v3099_v12  ;;  %v3568_v25 = vadd.f32 %v5231_v7, %v3102_v21 }
 0x1dc   : > { %v6292_v19 = vpop.f32.mrf.mxu0 }
 0x1dd   : > { %v6294_v48 = vpop.f32.mrf.mxu1 }
 0x1de   : > { %v5254_v45 = vpop.f32.mrf.mxu0 }
 0x1df   : > { %v5266_v8 = vpop.f32.mrf.mxu1 }
 0x1e0   : > { %v3821_v49 = vpop.f32.mrf.mxu0 }
 0x1e1   : > { %v3869_v6 = vpop.f32.mrf.mxu1  ;;  %v6306_v29 = vadd.f32 %v3821_v49, %v3549_v15 }
 0x1e2   : > { %v5255_v55 = vpop.f32.mrf.mxu0  ;;  %v6312_v28 = vadd.f32 %v3869_v6, %v3561_v42  ;;  %v3093_v6 = vadd.f32 %v6280_v57, %v6243_v32 }
 0x1e3   : > { %v5267_v39 = vpop.f32.mrf.mxu1  ;;  %v3943_v40 = vadd.f32 %v5255_v55, %v3552_v61  ;;  %v3092_v55 = vadd.f32 %v6284_v50, %v6246_v41  ;;  %v3571_v41 = vadd.f32 %v6290_v10, %v3105_v34 }
 0x1e4   : > { %v3824_v54 = vpop.f32.mrf.mxu0  ;;  %v6325_v31 = vadd.f32 %v5267_v39, %v3564_v37  ;;  %v3559_v43 = vadd.f32 %v6282_v44, %v3093_v6 }
 0x1e5   : > { %v6308_v26 = vadd.f32 %v3824_v54, %v3550_v36  ;;  %v3872_v47 = vpop.f32.mrf.mxu1  ;;  %v3104_v36 = vadd.f32 %v6292_v19, %v6270_v58  ;;  %v3558_v32 = vadd.f32 %v6286_v52, %v3092_v55 }
 0x1e6   : > { %v6314_v17 = vadd.f32 %v3872_v47, %v3562_v53  ;;  %v5258_v2 = vpop.f32.mrf.mxu0 }
 0x1e7   : > { %v4692_v24 = vpack.c.bf16 %v6308_v26, %v6306_v29  ;;  %v5270_v30 = vpop.f32.mrf.mxu1  ;;  %v3946_v18 = vadd.f32 %v5258_v2, %v3555_v33  ;;  %v3570_v50 = vadd.f32 %v6294_v48, %v3104_v36 }
 0x1e8   : > { %v4712_v0 = vpack.c.bf16 %v6314_v17, %v6312_v28  ;;  %v3837_v4 = vpop.f32.mrf.mxu0  ;;  %v6330_v62 = vadd.f32 %v5270_v30, %v3567_v63 }
 0x1e9   : > { %4693 = vst [vmem:[%s5630_s6] sm:$0xff] %v4692_v24   ;;  %v3944_v56 = vadd.f32 %v3837_v4, %v3553_v16  ;;  %v3885_v5 = vpop.f32.mrf.mxu1 }
 0x1ea   : > { %4732 = vst [vmem:[%s5630_s6 + $0x20] sm:$0xff] %v4712_v0   ;;  %v6328_v20 = vadd.f32 %v3885_v5, %v3565_v59  ;;  %v5259_v3 = vpop.f32.mrf.mxu0 }
 0x1eb   : > { %v4697_v45 = vpack.c.bf16 %v3944_v56, %v3943_v40  ;;  %v3947_v35 = vadd.f32 %v5259_v3, %v3556_v22  ;;  %v5271_v23 = vpop.f32.mrf.mxu1 }
 0x1ec   : > { %v4717_v38 = vpack.c.bf16 %v6328_v20, %v6325_v31  ;;  %v6334_v27 = vadd.f32 %v5271_v23, %v3568_v25  ;;  %v3840_v7 = vpop.f32.mrf.mxu0 }
 0x1ed   : > { %4729 = vst [vmem:[%s5630_s6 + $0x8] sm:$0xff] %v4697_v45   ;;  %v4702_v8 = vpack.c.bf16 %v3947_v35, %v3946_v18  ;;  %v3888_v11 = vpop.f32.mrf.mxu1 }
 0x1ee   : > { %4733 = vst [vmem:[%s5630_s6 + $0x28] sm:$0xff] %v4717_v38   ;;  %v4722_v46 = vpack.c.bf16 %v6334_v27, %v6330_v62  ;;  %v5262_v49 = vpop.f32.mrf.mxu0 }
 0x1ef   : > { %4730 = vst [vmem:[%s5630_s6 + $0x10] sm:$0xff] %v4702_v8   ;;  %v5274_v15 = vpop.f32.mrf.mxu1  ;;  %v3950_v13 = vadd.f32 %v5262_v49, %v3559_v43 }
 0x1f0   : > { %4734 = vst [vmem:[%s5630_s6 + $0x30] sm:$0xff] %v4722_v46   ;;  %v3853_v51 = vpop.f32.mrf.mxu0  ;;  %v3962_v58 = vadd.f32 %v5274_v15, %v3571_v41 }
 0x1f1   : > { %v3901_v39 = vpop.f32.mrf.mxu1 }
 0x1f2   : > { %v5263_v42 = vpop.f32.mrf.mxu0 }
 0x1f3   : > { %v5275_v57 = vpop.f32.mrf.mxu1 }
 0x1f4   : > { %v3856_v53 = vpop.f32.mrf.mxu0 }
 0x1f5   : > { %v3949_v9 = vadd.f32 %v3856_v53, %v3558_v32  ;;  %v3904_v12 = vpop.f32.mrf.mxu1 }
 0x1f6   : > { %v3961_v19 = vadd.f32 %v3904_v12, %v3570_v50  ;;  %4086 = sbr.rel (%p4326_p9) target bundleno = 509 (0x1fd), region = 110 }
 0x1f7   : > { %v4707_v54 = vpack.c.bf16 %v3950_v13, %v3949_v9 }
 0x1f8   : > { %v4727_v14 = vpack.c.bf16 %v3962_v58, %v3961_v19 }
 0x1f9   : > { %4731 = vst [vmem:[%s5630_s6 + $0x18] sm:$0xff] %v4707_v54  }
 0x1fa   : > { %4735 = vst [vmem:[%s5630_s6 + $0x38] sm:$0xff] %v4727_v14  }
 0x1fb   : > { %v5561_v44 = vmov 0.0  }
 0x1fc   : > { %4087 = vst [vmem:[%s5623_s26] sm:$0xff] %v5561_v44 }
 0x1fd PF: > { %v4089_v52 = vadd.f32 %v6308_v26, %v6306_v29  ;;  %v4113_v10 = vmul.f32 %v6306_v29, %v6306_v29  ;;  %v4114_v48 = vmul.f32 %v6308_v26, %v6308_v26  ;;  %v4115_v47 = vmul.f32 %v3943_v40, %v3943_v40 }
 0x1fe   : > { %v4116_v21 = vmul.f32 %v3944_v56, %v3944_v56  ;;  %v4117_v16 = vmul.f32 %v3946_v18, %v3946_v18  ;;  %v4118_v37 = vmul.f32 %v3947_v35, %v3947_v35  ;;  %v4119_v4 = vmul.f32 %v3949_v9, %v3949_v9 }
 0x1ff   : > { %v4090_v60 = vadd.f32 %v4089_v52, %v3943_v40  ;;  %v4129_v2 = vadd.f32 %v4114_v48, %v4113_v10  ;;  %v4120_v5 = vmul.f32 %v3950_v13, %v3950_v13  ;;  %v4121_v26 = vmul.f32 %v6312_v28, %v6312_v28 }
 0x200   : > { %v4122_v25 = vmul.f32 %v6314_v17, %v6314_v17  ;;  %v4123_v45 = vmul.f32 %v6325_v31, %v6325_v31  ;;  %v4124_v38 = vmul.f32 %v6328_v20, %v6328_v20  ;;  %v4125_v8 = vmul.f32 %v6330_v62, %v6330_v62 }
 0x201   : > { %v4091_v1 = vadd.f32 %v4090_v60, %v3944_v56  ;;  %v4130_v24 = vadd.f32 %v4129_v2, %v4115_v47  ;;  %v4126_v46 = vmul.f32 %v6334_v27, %v6334_v27  ;;  %v4127_v6 = vmul.f32 %v3961_v19, %v3961_v19 }
 0x202   : > { %v4128_v34 = vmul.f32 %v3962_v58, %v3962_v58 }
 0x203   : > { %v4092_v61 = vadd.f32 %v4091_v1, %v3946_v18  ;;  %v4131_v59 = vadd.f32 %v4130_v24, %v4116_v21  ;;  %v4088_v50 = vld [vmem:[%s5623_s26] sm:$0x1] }
 0x205   : > { %v4093_v30 = vadd.f32 %v4092_v61, %v3947_v35  ;;  %v4132_v33 = vadd.f32 %v4131_v59, %v4117_v16 }
 0x207   : > { %v4094_v0 = vadd.f32 %v4093_v30, %v3949_v9  ;;  %v4133_v29 = vadd.f32 %v4132_v33, %v4118_v37 }
 0x209   : > { %v4095_v22 = vadd.f32 %v4094_v0, %v3950_v13  ;;  %v4134_v40 = vadd.f32 %v4133_v29, %v4119_v4 }
 0x20b   : > { %v4096_v63 = vadd.f32 %v4095_v22, %v6312_v28  ;;  %v4135_v3 = vadd.f32 %v4134_v40, %v4120_v5 }
 0x20d   : > { %v4097_v56 = vadd.f32 %v4096_v63, %v6314_v17  ;;  %v4136_v35 = vadd.f32 %v4135_v3, %v4121_v26 }
 0x20f   : > { %v4098_v18 = vadd.f32 %v4097_v56, %v6325_v31  ;;  %v4137_v7 = vadd.f32 %v4136_v35, %v4122_v25 }
 0x211   : > { %v4099_v23 = vadd.f32 %v4098_v18, %v6328_v20  ;;  %v4138_v11 = vadd.f32 %v4137_v7, %v4123_v45 }
 0x213   : > { %v4100_v28 = vadd.f32 %v4099_v23, %v6330_v62  ;;  %v4139_v49 = vadd.f32 %v4138_v11, %v4124_v38 }
 0x215   : > { %v4101_v17 = vadd.f32 %v4100_v28, %v6334_v27  ;;  %v4140_v55 = vadd.f32 %v4139_v49, %v4125_v8 }
 0x217   : > { %v4102_v31 = vadd.f32 %v4101_v17, %v3961_v19  ;;  %v4141_v20 = vadd.f32 %v4140_v55, %v4126_v46 }
 0x219   : > { %v4103_v15 = vadd.f32 %v4102_v31, %v3962_v58  ;;  %v4142_v51 = vadd.f32 %v4141_v20, %v4127_v6  ;;  %v4112_v58 = vld [vmem:[%s5623_s26 + $0x1] sm:$0x1] }
 0x21b   : > { %v4104_v36 = vrot.slane %v4103_v15, 4  ;;  %v4143_v62 = vadd.f32 %v4142_v51, %v4128_v34 }
 0x21d   : > { %v4105_v39 = vadd.f32 %v4104_v36, %v4103_v15  ;;  %v4144_v43 = vrot.slane %v4143_v62, 4 }
 0x21f   : > { %v4106_v42 = vrot.slane %v4105_v39, 2  ;;  %v4145_v57 = vadd.f32 %v4144_v43, %v4143_v62 }
 0x221   : > { %v4107_v32 = vadd.f32 %v4106_v42, %v4105_v39  ;;  %v4146_v41 = vrot.slane %v4145_v57, 2 }
 0x223   : > { %v4108_v27 = vrot.slane %v4107_v32, 1  ;;  %v4147_v13 = vadd.f32 %v4146_v41, %v4145_v57 }
 0x225   : > { %v4109_v53 = vadd.f32 %v4108_v27, %v4107_v32  ;;  %v4148_v12 = vrot.slane %v4147_v13, 1 }
 0x227   : > { %v4110_v9 = vadd.f32 %v4109_v53, %v4088_v50  ;;  %v4149_v19 = vadd.f32 %v4148_v12, %v4147_v13 }
 0x229   : > { %4111 = vst [vmem:[%s5623_s26] sm:$0x1] %v4110_v9  ;;  %v4150_v54 = vadd.f32 %v4149_v19, %v4112_v58 }
 0x22b   : > { %4151 = vst [vmem:[%s5623_s26 + $0x1] sm:$0x1] %v4150_v54 }
 0x22c PF: > { %s14_s16 = sadd.s32 1, %s5559_s16   ;;  %s6406_s12 = smov %s5551_s14 }
 0x22d   : > { %p11_p11 = scmp.ge.s32.totalorder %s14_s16, 6   ;;  %s6407_s13 = smov %s5555_s15 }
 0x22e   : > { %s6408_s14 = smov %s6411_s17  ;;  %s6409_s15 = smov %s6415_s18 }
 0x22f   :  { %13 = sbr.rel (!%p11_p11) target bundleno = 3 (0x3), region = 192 }
 0x234   :  { %4198 = vsyncmov [#allocation3] }
 0x237   :  { %s4199_s26 = vpop.sfrf %4198 }
 0x238   :  { %p4668_p12 = scmp.ne.s32.totalorder %s4199_s26, 0 }
 0x23a   :  { %4203 = shalt.err (%p4668_p12)  }
 0x23b   :  { %4205 = vsyncmov [#allocation3 + $0x1] }
 0x23e   :  { %s4206_s6 = vpop.sfrf %4205 }
 0x23f   :  { %p4669_p13 = scmp.ne.s32.totalorder %s4206_s6, 0 }
 0x241   :  { %4210 = shalt.err (%p4669_p13)  }

</bundles_post_ra>
